<compile_context>
chip_gen: v7x
topology: tpu7x:2x2x1
jax: 0.10.0
libtpu: 0.0.40
codegen_flags: <defaults>
</compile_context>

<pallas_src>
import jax
import jax.numpy as jnp
from jax.experimental import pallas as pl
from jax.experimental.pallas import tpu as pltpu

LANE = 128


def basic_block_kernel(xp_ref, w1_ref, w2_ref, b1_ref, b2_ref, mask_ref,
                       out_ref, mid_ref):
    """Fused conv3x3 -> BN -> ReLU -> conv3x3 -> BN -> +residual -> ReLU.

    xp_ref : ((H+3)*Wp, Cp) f32   one zero-padded image, flattened over
                                  (row, col); 1 top / 2 bottom halo rows,
                                  1 left / Wp-W-1 right halo cols, channels
                                  zero-padded to Cp (lane width).
    w*_ref : (9, Cp, Cp)    bf16  conv taps (kh*3+kw, Cin, Cout), BN scale
                                  already folded into the Cout axis.
    b*_ref : (1, Cp)        f32   folded eval-mode BN bias (zero in pad).
    mask   : (HW, 1)        f32   1.0 where padded col j < W else 0.0.
    out_ref: (HW, Cp)             flat padded-width output (junk cols j>=W and
                                  channels c>=C are sliced off in the wrapper).
    mid_ref: ((H+4)*Wp, Cp) bf16  VMEM scratch: zero-padded conv1 output.
    """
    HW, Cp = out_ref.shape
    Wp = mid_ref.shape[0] // (HW // out_ref.shape[1] + 4) if False else None  # unused
    Wp = (mid_ref.shape[0] - HW) // 4           # MID_ROWS = (H+4)*Wp, HW = H*Wp

    # ---- conv1 (BN1 scale folded into w1) -----------------------------------
    acc = jnp.zeros((HW, Cp), jnp.float32)
    residual = None
    for kh in range(3):
        for kw in range(3):
            patch = xp_ref[pl.ds(kh * Wp + kw, HW), :]          # f32
            if kh == 1 and kw == 1:
                residual = patch          # center tap == residual (reuse load)
            acc = acc + jnp.dot(patch.astype(jnp.bfloat16),
                                w1_ref[kh * 3 + kw],
                                preferred_element_type=jnp.float32)

    # bias + ReLU, then zero the junk columns (j >= W) so they become conv2's
    # zero padding; store as a zero-padded bf16 image in mid_ref.  The interior
    # is one contiguous, sublane-aligned, lane-dense store at offset 2*Wp.
    h = jnp.maximum(acc + b1_ref[...], 0.0) * mask_ref[...]
    zhalo = jnp.zeros((2 * Wp, Cp), jnp.bfloat16)
    mid_ref[pl.ds(0, 2 * Wp), :] = zhalo
    mid_ref[pl.ds(2 * Wp, HW), :] = h.astype(jnp.bfloat16)
    mid_ref[pl.ds(2 * Wp + HW, 2 * Wp), :] = zhalo

    # ---- conv2 (BN2 scale folded into w2) + residual + relu ------------------
    # mid_ref maps padded pixel (r, c) to flat row (r+1)*Wp + c - 1 => base Wp-1.
    base = Wp - 1
    acc2 = jnp.zeros((HW, Cp), jnp.float32)
    for kh in range(3):
        for kw in range(3):
            patch = mid_ref[pl.ds(base + kh * Wp + kw, HW), :]  # bf16
            acc2 = acc2 + jnp.dot(patch, w2_ref[kh * 3 + kw],
                                  preferred_element_type=jnp.float32)

    y = jnp.maximum(acc2 + b2_ref[...] + residual, 0.0)
    out_ref[...] = y.astype(out_ref.dtype)      # full-width, unmasked store


def basic_block_forward(x_nhwc, w1, w2, bn1, bn2, eps=1e-5):
    """x_nhwc: (N,H,W,C) f32.  w1,w2: (9,C,C) conv taps.  bn*: dicts of (C,)."""
    N, H, W, C = x_nhwc.shape
    assert w1.shape == (9, C, C) and w2.shape == (9, C, C), \
        "no-downsample BasicBlock requires inplanes == outplanes"

    Cp = ((C + LANE - 1) // LANE) * LANE          # lane-dense channel width
    Wp = ((W + 2 + 7) // 8) * 8                   # sublane-aligned padded width
    HW = H * Wp                                   # flat rows of one conv output
    ROWS = (H + 3) * Wp                           # flat rows of the padded image
    MID_ROWS = (H + 4) * Wp                       # flat rows of the mid scratch
    cpad = Cp - C

    # ---- fold eval-mode BN: scale into the conv weights, keep only the bias --
    def fold_bn(bn):
        scale = bn["gamma"] * jax.lax.rsqrt(bn["var"] + eps)
        bias = bn["beta"] - bn["mean"] * scale
        return scale, bias

    s1, b1 = fold_bn(bn1)
    s2, b2 = fold_bn(bn2)
    w1p = jnp.pad(w1 * s1[None, None, :], ((0, 0), (0, cpad), (0, cpad)))
    w2p = jnp.pad(w2 * s2[None, None, :], ((0, 0), (0, cpad), (0, cpad)))
    w1p = w1p.astype(jnp.bfloat16)                # bf16 MXU operands
    w2p = w2p.astype(jnp.bfloat16)
    b1p = jnp.pad(b1, (0, cpad)).reshape(1, Cp).astype(jnp.float32)
    b2p = jnp.pad(b2, (0, cpad)).reshape(1, Cp).astype(jnp.float32)

    # junk-column mask: 1.0 for padded col j < W, else 0.0 (resident input)
    mask = jnp.tile((jnp.arange(Wp) < W).astype(jnp.float32), H).reshape(HW, 1)

    # One HBM-side pad for everything: spatial halo (1 top / 2 bottom rows,
    # 1 left / Wp-W-1 right cols) + channel pad to Cp, flattened over (row,col).
    xp = jnp.pad(x_nhwc.astype(jnp.float32),
                 ((0, 0), (1, 2), (1, Wp - W - 1), (0, cpad)))
    xp = xp.reshape(N, ROWS, Cp)

    # ---- weight pipelining + generation-aware VMEM budget --------------------
    single_buffer_weights = Cp >= 256             # C=512 etc.: keep weights 1x
    w_pipeline = ({"pipeline_mode": pl.Buffered(1)}
                  if single_buffer_weights else {})
    w_spec = pl.BlockSpec((9, Cp, Cp), lambda n: (0, 0, 0), **w_pipeline)

    F32, BF16 = 4, 2
    n_wbuf = 1 if single_buffer_weights else 2
    est = (2 * ROWS * Cp * F32            # double-buffered padded-input tile
           + 2 * HW * Cp * F32            # double-buffered output tile
           + n_wbuf * 2 * 9 * Cp * Cp * BF16   # conv1 + conv2 weights (bf16)
           + MID_ROWS * Cp * BF16         # bf16 mid scratch
           + 2 * HW * 512                 # lane-padded (HW,1) mask, 2 bufs
           + 6 * HW * Cp * F32)           # live f32 temporaries (acc/patch/h..)
    try:
        vmem_cap = pltpu.get_tpu_info().vmem_capacity_bytes
    except Exception:
        vmem_cap = 64 * 2**20             # conservative (v7x-sized) fallback
    vmem_limit = int(min(max(2 * est, 16 * 2**20), int(0.75 * vmem_cap)))

    # NOTE: grid=(N,) marked "parallel" -> on v7x both TensorCores only get
    # work when N >= 2 per chip (balanced when N is even).  v5e/v6e: 1 TC.
    out = pl.pallas_call(
        basic_block_kernel,
        out_shape=jax.ShapeDtypeStruct((N, HW, Cp), x_nhwc.dtype),
        grid=(N,),
        in_specs=[
            pl.BlockSpec((None, ROWS, Cp), lambda n: (n, 0, 0)),   # padded x
            w_spec,                                                # w1 (bf16)
            w_spec,                                                # w2 (bf16)
            pl.BlockSpec((1, Cp), lambda n: (0, 0)),               # bn1 bias
            pl.BlockSpec((1, Cp), lambda n: (0, 0)),               # bn2 bias
            pl.BlockSpec((HW, 1), lambda n: (0, 0)),               # col mask
        ],
        out_specs=pl.BlockSpec((None, HW, Cp), lambda n: (n, 0, 0)),
        scratch_shapes=[pltpu.VMEM((MID_ROWS, Cp), jnp.bfloat16)],
        compiler_params=pltpu.CompilerParams(
            dimension_semantics=("parallel",),
            vmem_limit_bytes=vmem_limit),
    )(xp, w1p, w2p, b1p, b2p, mask)

    # drop the W padding (junk columns) and channel padding in HBM
    return out.reshape(N, H, Wp, Cp)[:, :, :W, :C]


def _reference(x_nhwc, w1, w2, bn1, bn2, eps=1e-5):
    """Pure-JAX f32 reference (lax conv) for sanity checking."""
    def conv(x, w):  # w: (9, Cin, Cout) -> (3,3,Cin,Cout)
        w4 = w.reshape(3, 3, w.shape[1], w.shape[2])
        return jax.lax.conv_general_dilated(
            x, w4, window_strides=(1, 1), padding="SAME",
            dimension_numbers=("NHWC", "HWIO", "NHWC"))

    def bn(x, p):
        return (x - p["mean"]) / jnp.sqrt(p["var"] + eps) * p["gamma"] + p["beta"]

    out = jax.nn.relu(bn(conv(x_nhwc, w1), bn1))
    out = bn(conv(out, w2), bn2)
    return jax.nn.relu(out + x_nhwc)


if __name__ == "__main__":
    # Small shapes: N=2, C=4, H=W=16 (PyTorch input would be NCHW (2,4,16,16)).
    N, C, H, W = 2, 4, 16, 16
    key = jax.random.PRNGKey(0)
    (kx, kw1, kw2, kg1, kb1, km1, kv1, kg2, kb2, km2, kv2) = jax.random.split(key, 11)

    x_nchw = jax.random.normal(kx, (N, C, H, W), jnp.float32)
    x_nhwc = jnp.transpose(x_nchw, (0, 2, 3, 1))

    # conv3x3 weights, kaiming-ish deterministic init, stored as (9, Cin, Cout).
    fan = 9 * C
    w1 = jax.random.normal(kw1, (9, C, C), jnp.float32) * (2.0 / fan) ** 0.5
    w2 = jax.random.normal(kw2, (9, C, C), jnp.float32) * (2.0 / fan) ** 0.5

    bn1 = dict(gamma=1.0 + 0.1 * jax.random.normal(kg1, (C,), jnp.float32),
               beta=0.1 * jax.random.normal(kb1, (C,), jnp.float32),
               mean=0.1 * jax.random.normal(km1, (C,), jnp.float32),
               var=1.0 + 0.1 * jax.random.uniform(kv1, (C,), jnp.float32))
    bn2 = dict(gamma=1.0 + 0.1 * jax.random.normal(kg2, (C,), jnp.float32),
               beta=0.1 * jax.random.normal(kb2, (C,), jnp.float32),
               mean=0.1 * jax.random.normal(km2, (C,), jnp.float32),
               var=1.0 + 0.1 * jax.random.uniform(kv2, (C,), jnp.float32))

    out = basic_block_forward(x_nhwc, w1, w2, bn1, bn2)
    out = jax.block_until_ready(out)

    ref = _reference(x_nhwc, w1, w2, bn1, bn2)
    assert out.shape == (N, H, W, C)
    # bf16 MXU operands with f32 accumulation -> slightly looser tolerance.
    assert jnp.allclose(out, ref, atol=5e-2, rtol=5e-2), "mismatch vs JAX reference"

    # back to NCHW if the caller wants PyTorch layout
    _ = jnp.transpose(out, (0, 3, 1, 2))
    print("KERNEL_OK")
</pallas_src>

<mosaic_0001>
module attributes {stable_mosaic.version = 11 : i64} {
  func.func @basic_block_kernel(%arg0: i32, %arg1: memref<1x456x128xf32, #tpu.memory_space<vmem>>, %arg2: memref<9x128x128xbf16, #tpu.memory_space<vmem>>, %arg3: memref<9x128x128xbf16, #tpu.memory_space<vmem>>, %arg4: memref<1x128xf32, #tpu.memory_space<vmem>>, %arg5: memref<1x128xf32, #tpu.memory_space<vmem>>, %arg6: memref<384x1xf32, #tpu.memory_space<vmem>>, %arg7: memref<1x384x128xf32, #tpu.memory_space<vmem>>, %arg8: memref<480x128xbf16, #tpu.memory_space<vmem>>) attributes {dimension_semantics = [#tpu.dimension_semantics<parallel>], iteration_bounds = array<i64: 2>, scalar_prefetch = 0 : i64, scratch_operands = 1 : i64, tpu.core_type = #tpu.core_type<tc>, window_params = [{transform_indices = @transform_0, window_bounds = array<i64: 1, 456, 128>}, {pipeline_mode = #tpu.pipeline_mode<synchronous>, transform_indices = @transform_1, window_bounds = array<i64: 9, 128, 128>}, {pipeline_mode = #tpu.pipeline_mode<synchronous>, transform_indices = @transform_2, window_bounds = array<i64: 9, 128, 128>}, {pipeline_mode = #tpu.pipeline_mode<synchronous>, transform_indices = @transform_3, window_bounds = array<i64: 1, 128>}, {pipeline_mode = #tpu.pipeline_mode<synchronous>, transform_indices = @transform_4, window_bounds = array<i64: 1, 128>}, {pipeline_mode = #tpu.pipeline_mode<synchronous>, transform_indices = @transform_5, window_bounds = array<i64: 384, 1>}, {transform_indices = @transform_6, window_bounds = array<i64: 1, 384, 128>}]} {
    %cst = arith.constant 0.000000e+00 : f32
    %0 = vector.broadcast %cst : f32 to vector<384x128xf32>
    %c0 = arith.constant 0 : index
    %c0_0 = arith.constant 0 : index
    %c0_1 = arith.constant 0 : index
    %1 = vector.load %arg1[%c0, %c0_0, %c0_1] : memref<1x456x128xf32, #tpu.memory_space<vmem>>, vector<1x384x128xf32>
    %2 = vector.shape_cast %1 : vector<1x384x128xf32> to vector<384x128xf32>
    %3 = arith.truncf %2 : vector<384x128xf32> to vector<384x128xbf16>
    %c0_2 = arith.constant 0 : index
    %c0_3 = arith.constant 0 : index
    %c0_4 = arith.constant 0 : index
    %4 = vector.load %arg2[%c0_2, %c0_3, %c0_4] : memref<9x128x128xbf16, #tpu.memory_space<vmem>>, vector<1x128x128xbf16>
    %5 = vector.shape_cast %4 : vector<1x128x128xbf16> to vector<128x128xbf16>
    %cst_5 = arith.constant dense<0.000000e+00> : vector<384x128xf32>
    %6 = tpu.matmul %3, %5, %cst_5 {dimension_numbers = #tpu.dot_dimension_numbers<[1], [0], [0], [1], [0, 0, 1, 1], [], []>} : vector<384x128xbf16>, vector<128x128xbf16>, vector<384x128xf32> -> vector<384x128xf32>
    %7 = arith.addf %0, %6 : vector<384x128xf32>
    %c0_6 = arith.constant 0 : index
    %c1 = arith.constant 1 : index
    %c0_7 = arith.constant 0 : index
    %8 = vector.load %arg1[%c0_6, %c1, %c0_7] : memref<1x456x128xf32, #tpu.memory_space<vmem>>, vector<1x384x128xf32>
    %9 = vector.shape_cast %8 : vector<1x384x128xf32> to vector<384x128xf32>
    %10 = arith.truncf %9 : vector<384x128xf32> to vector<384x128xbf16>
    %c1_8 = arith.constant 1 : index
    %c0_9 = arith.constant 0 : index
    %c0_10 = arith.constant 0 : index
    %11 = vector.load %arg2[%c1_8, %c0_9, %c0_10] : memref<9x128x128xbf16, #tpu.memory_space<vmem>>, vector<1x128x128xbf16>
    %12 = vector.shape_cast %11 : vector<1x128x128xbf16> to vector<128x128xbf16>
    %cst_11 = arith.constant dense<0.000000e+00> : vector<384x128xf32>
    %13 = tpu.matmul %10, %12, %cst_11 {dimension_numbers = #tpu.dot_dimension_numbers<[1], [0], [0], [1], [0, 0, 1, 1], [], []>} : vector<384x128xbf16>, vector<128x128xbf16>, vector<384x128xf32> -> vector<384x128xf32>
    %14 = arith.addf %7, %13 : vector<384x128xf32>
    %c0_12 = arith.constant 0 : index
    %c2 = arith.constant 2 : index
    %c0_13 = arith.constant 0 : index
    %15 = vector.load %arg1[%c0_12, %c2, %c0_13] : memref<1x456x128xf32, #tpu.memory_space<vmem>>, vector<1x384x128xf32>
    %16 = vector.shape_cast %15 : vector<1x384x128xf32> to vector<384x128xf32>
    %17 = arith.truncf %16 : vector<384x128xf32> to vector<384x128xbf16>
    %c2_14 = arith.constant 2 : index
    %c0_15 = arith.constant 0 : index
    %c0_16 = arith.constant 0 : index
    %18 = vector.load %arg2[%c2_14, %c0_15, %c0_16] : memref<9x128x128xbf16, #tpu.memory_space<vmem>>, vector<1x128x128xbf16>
    %19 = vector.shape_cast %18 : vector<1x128x128xbf16> to vector<128x128xbf16>
    %cst_17 = arith.constant dense<0.000000e+00> : vector<384x128xf32>
    %20 = tpu.matmul %17, %19, %cst_17 {dimension_numbers = #tpu.dot_dimension_numbers<[1], [0], [0], [1], [0, 0, 1, 1], [], []>} : vector<384x128xbf16>, vector<128x128xbf16>, vector<384x128xf32> -> vector<384x128xf32>
    %21 = arith.addf %14, %20 : vector<384x128xf32>
    %c0_18 = arith.constant 0 : index
    %c24 = arith.constant 24 : index
    %c0_19 = arith.constant 0 : index
    %22 = vector.load %arg1[%c0_18, %c24, %c0_19] : memref<1x456x128xf32, #tpu.memory_space<vmem>>, vector<1x384x128xf32>
    %23 = vector.shape_cast %22 : vector<1x384x128xf32> to vector<384x128xf32>
    %24 = arith.truncf %23 : vector<384x128xf32> to vector<384x128xbf16>
    %c3 = arith.constant 3 : index
    %c0_20 = arith.constant 0 : index
    %c0_21 = arith.constant 0 : index
    %25 = vector.load %arg2[%c3, %c0_20, %c0_21] : memref<9x128x128xbf16, #tpu.memory_space<vmem>>, vector<1x128x128xbf16>
    %26 = vector.shape_cast %25 : vector<1x128x128xbf16> to vector<128x128xbf16>
    %cst_22 = arith.constant dense<0.000000e+00> : vector<384x128xf32>
    %27 = tpu.matmul %24, %26, %cst_22 {dimension_numbers = #tpu.dot_dimension_numbers<[1], [0], [0], [1], [0, 0, 1, 1], [], []>} : vector<384x128xbf16>, vector<128x128xbf16>, vector<384x128xf32> -> vector<384x128xf32>
    %28 = arith.addf %21, %27 : vector<384x128xf32>
    %c0_23 = arith.constant 0 : index
    %c25 = arith.constant 25 : index
    %c0_24 = arith.constant 0 : index
    %29 = vector.load %arg1[%c0_23, %c25, %c0_24] : memref<1x456x128xf32, #tpu.memory_space<vmem>>, vector<1x384x128xf32>
    %30 = vector.shape_cast %29 : vector<1x384x128xf32> to vector<384x128xf32>
    %31 = arith.truncf %30 : vector<384x128xf32> to vector<384x128xbf16>
    %c4 = arith.constant 4 : index
    %c0_25 = arith.constant 0 : index
    %c0_26 = arith.constant 0 : index
    %32 = vector.load %arg2[%c4, %c0_25, %c0_26] : memref<9x128x128xbf16, #tpu.memory_space<vmem>>, vector<1x128x128xbf16>
    %33 = vector.shape_cast %32 : vector<1x128x128xbf16> to vector<128x128xbf16>
    %cst_27 = arith.constant dense<0.000000e+00> : vector<384x128xf32>
    %34 = tpu.matmul %31, %33, %cst_27 {dimension_numbers = #tpu.dot_dimension_numbers<[1], [0], [0], [1], [0, 0, 1, 1], [], []>} : vector<384x128xbf16>, vector<128x128xbf16>, vector<384x128xf32> -> vector<384x128xf32>
    %35 = arith.addf %28, %34 : vector<384x128xf32>
    %c0_28 = arith.constant 0 : index
    %c26 = arith.constant 26 : index
    %c0_29 = arith.constant 0 : index
    %36 = vector.load %arg1[%c0_28, %c26, %c0_29] : memref<1x456x128xf32, #tpu.memory_space<vmem>>, vector<1x384x128xf32>
    %37 = vector.shape_cast %36 : vector<1x384x128xf32> to vector<384x128xf32>
    %38 = arith.truncf %37 : vector<384x128xf32> to vector<384x128xbf16>
    %c5 = arith.constant 5 : index
    %c0_30 = arith.constant 0 : index
    %c0_31 = arith.constant 0 : index
    %39 = vector.load %arg2[%c5, %c0_30, %c0_31] : memref<9x128x128xbf16, #tpu.memory_space<vmem>>, vector<1x128x128xbf16>
    %40 = vector.shape_cast %39 : vector<1x128x128xbf16> to vector<128x128xbf16>
    %cst_32 = arith.constant dense<0.000000e+00> : vector<384x128xf32>
    %41 = tpu.matmul %38, %40, %cst_32 {dimension_numbers = #tpu.dot_dimension_numbers<[1], [0], [0], [1], [0, 0, 1, 1], [], []>} : vector<384x128xbf16>, vector<128x128xbf16>, vector<384x128xf32> -> vector<384x128xf32>
    %42 = arith.addf %35, %41 : vector<384x128xf32>
    %c0_33 = arith.constant 0 : index
    %c48 = arith.constant 48 : index
    %c0_34 = arith.constant 0 : index
    %43 = vector.load %arg1[%c0_33, %c48, %c0_34] : memref<1x456x128xf32, #tpu.memory_space<vmem>>, vector<1x384x128xf32>
    %44 = vector.shape_cast %43 : vector<1x384x128xf32> to vector<384x128xf32>
    %45 = arith.truncf %44 : vector<384x128xf32> to vector<384x128xbf16>
    %c6 = arith.constant 6 : index
    %c0_35 = arith.constant 0 : index
    %c0_36 = arith.constant 0 : index
    %46 = vector.load %arg2[%c6, %c0_35, %c0_36] : memref<9x128x128xbf16, #tpu.memory_space<vmem>>, vector<1x128x128xbf16>
    %47 = vector.shape_cast %46 : vector<1x128x128xbf16> to vector<128x128xbf16>
    %cst_37 = arith.constant dense<0.000000e+00> : vector<384x128xf32>
    %48 = tpu.matmul %45, %47, %cst_37 {dimension_numbers = #tpu.dot_dimension_numbers<[1], [0], [0], [1], [0, 0, 1, 1], [], []>} : vector<384x128xbf16>, vector<128x128xbf16>, vector<384x128xf32> -> vector<384x128xf32>
    %49 = arith.addf %42, %48 : vector<384x128xf32>
    %c0_38 = arith.constant 0 : index
    %c49 = arith.constant 49 : index
    %c0_39 = arith.constant 0 : index
    %50 = vector.load %arg1[%c0_38, %c49, %c0_39] : memref<1x456x128xf32, #tpu.memory_space<vmem>>, vector<1x384x128xf32>
    %51 = vector.shape_cast %50 : vector<1x384x128xf32> to vector<384x128xf32>
    %52 = arith.truncf %51 : vector<384x128xf32> to vector<384x128xbf16>
    %c7 = arith.constant 7 : index
    %c0_40 = arith.constant 0 : index
    %c0_41 = arith.constant 0 : index
    %53 = vector.load %arg2[%c7, %c0_40, %c0_41] : memref<9x128x128xbf16, #tpu.memory_space<vmem>>, vector<1x128x128xbf16>
    %54 = vector.shape_cast %53 : vector<1x128x128xbf16> to vector<128x128xbf16>
    %cst_42 = arith.constant dense<0.000000e+00> : vector<384x128xf32>
    %55 = tpu.matmul %52, %54, %cst_42 {dimension_numbers = #tpu.dot_dimension_numbers<[1], [0], [0], [1], [0, 0, 1, 1], [], []>} : vector<384x128xbf16>, vector<128x128xbf16>, vector<384x128xf32> -> vector<384x128xf32>
    %56 = arith.addf %49, %55 : vector<384x128xf32>
    %c0_43 = arith.constant 0 : index
    %c50 = arith.constant 50 : index
    %c0_44 = arith.constant 0 : index
    %57 = vector.load %arg1[%c0_43, %c50, %c0_44] : memref<1x456x128xf32, #tpu.memory_space<vmem>>, vector<1x384x128xf32>
    %58 = vector.shape_cast %57 : vector<1x384x128xf32> to vector<384x128xf32>
    %59 = arith.truncf %58 : vector<384x128xf32> to vector<384x128xbf16>
    %c8 = arith.constant 8 : index
    %c0_45 = arith.constant 0 : index
    %c0_46 = arith.constant 0 : index
    %60 = vector.load %arg2[%c8, %c0_45, %c0_46] : memref<9x128x128xbf16, #tpu.memory_space<vmem>>, vector<1x128x128xbf16>
    %61 = vector.shape_cast %60 : vector<1x128x128xbf16> to vector<128x128xbf16>
    %cst_47 = arith.constant dense<0.000000e+00> : vector<384x128xf32>
    %62 = tpu.matmul %59, %61, %cst_47 {dimension_numbers = #tpu.dot_dimension_numbers<[1], [0], [0], [1], [0, 0, 1, 1], [], []>} : vector<384x128xbf16>, vector<128x128xbf16>, vector<384x128xf32> -> vector<384x128xf32>
    %63 = arith.addf %56, %62 : vector<384x128xf32>
    %c0_48 = arith.constant 0 : index
    %c0_49 = arith.constant 0 : index
    %64 = vector.load %arg4[%c0_48, %c0_49] : memref<1x128xf32, #tpu.memory_space<vmem>>, vector<1x128xf32>
    %65 = vector.broadcast %64 : vector<1x128xf32> to vector<384x128xf32>
    %66 = arith.addf %63, %65 : vector<384x128xf32>
    %cst_50 = arith.constant 0.000000e+00 : f32
    %67 = vector.broadcast %cst_50 : f32 to vector<384x128xf32>
    %68 = arith.maximumf %66, %67 : vector<384x128xf32>
    %c0_51 = arith.constant 0 : index
    %c0_52 = arith.constant 0 : index
    %69 = vector.load %arg6[%c0_51, %c0_52] : memref<384x1xf32, #tpu.memory_space<vmem>>, vector<384x1xf32>
    %70 = vector.broadcast %69 : vector<384x1xf32> to vector<384x128xf32>
    %71 = arith.mulf %68, %70 : vector<384x128xf32>
    %cst_53 = arith.constant 0.000000e+00 : bf16
    %72 = vector.broadcast %cst_53 : bf16 to vector<48x128xbf16>
    %c0_54 = arith.constant 0 : index
    %c0_55 = arith.constant 0 : index
    %73 = vector.load %arg8[%c0_54, %c0_55] : memref<480x128xbf16, #tpu.memory_space<vmem>>, vector<48x128xbf16>
    tpu.vector_store %arg8[%c0_54, %c0_55], %72 {strides = array<i32>} : memref<480x128xbf16, #tpu.memory_space<vmem>>, vector<48x128xbf16>,
    %74 = arith.truncf %71 : vector<384x128xf32> to vector<384x128xbf16>
    %c48_56 = arith.constant 48 : index
    %c0_57 = arith.constant 0 : index
    %75 = vector.load %arg8[%c48_56, %c0_57] : memref<480x128xbf16, #tpu.memory_space<vmem>>, vector<384x128xbf16>
    tpu.vector_store %arg8[%c48_56, %c0_57], %74 {strides = array<i32>} : memref<480x128xbf16, #tpu.memory_space<vmem>>, vector<384x128xbf16>,
    %c432 = arith.constant 432 : index
    %c0_58 = arith.constant 0 : index
    %76 = vector.load %arg8[%c432, %c0_58] : memref<480x128xbf16, #tpu.memory_space<vmem>>, vector<48x128xbf16>
    tpu.vector_store %arg8[%c432, %c0_58], %72 {strides = array<i32>} : memref<480x128xbf16, #tpu.memory_space<vmem>>, vector<48x128xbf16>,
    %cst_59 = arith.constant 0.000000e+00 : f32
    %77 = vector.broadcast %cst_59 : f32 to vector<384x128xf32>
    %c23 = arith.constant 23 : index
    %c0_60 = arith.constant 0 : index
    %78 = vector.load %arg8[%c23, %c0_60] : memref<480x128xbf16, #tpu.memory_space<vmem>>, vector<384x128xbf16>
    %c0_61 = arith.constant 0 : index
    %c0_62 = arith.constant 0 : index
    %c0_63 = arith.constant 0 : index
    %79 = vector.load %arg3[%c0_61, %c0_62, %c0_63] : memref<9x128x128xbf16, #tpu.memory_space<vmem>>, vector<1x128x128xbf16>
    %80 = vector.shape_cast %79 : vector<1x128x128xbf16> to vector<128x128xbf16>
    %cst_64 = arith.constant dense<0.000000e+00> : vector<384x128xf32>
    %81 = tpu.matmul %78, %80, %cst_64 {dimension_numbers = #tpu.dot_dimension_numbers<[1], [0], [0], [1], [0, 0, 1, 1], [], []>} : vector<384x128xbf16>, vector<128x128xbf16>, vector<384x128xf32> -> vector<384x128xf32>
    %82 = arith.addf %77, %81 : vector<384x128xf32>
    %c24_65 = arith.constant 24 : index
    %c0_66 = arith.constant 0 : index
    %83 = vector.load %arg8[%c24_65, %c0_66] : memref<480x128xbf16, #tpu.memory_space<vmem>>, vector<384x128xbf16>
    %c1_67 = arith.constant 1 : index
    %c0_68 = arith.constant 0 : index
    %c0_69 = arith.constant 0 : index
    %84 = vector.load %arg3[%c1_67, %c0_68, %c0_69] : memref<9x128x128xbf16, #tpu.memory_space<vmem>>, vector<1x128x128xbf16>
    %85 = vector.shape_cast %84 : vector<1x128x128xbf16> to vector<128x128xbf16>
    %cst_70 = arith.constant dense<0.000000e+00> : vector<384x128xf32>
    %86 = tpu.matmul %83, %85, %cst_70 {dimension_numbers = #tpu.dot_dimension_numbers<[1], [0], [0], [1], [0, 0, 1, 1], [], []>} : vector<384x128xbf16>, vector<128x128xbf16>, vector<384x128xf32> -> vector<384x128xf32>
    %87 = arith.addf %82, %86 : vector<384x128xf32>
    %c25_71 = arith.constant 25 : index
    %c0_72 = arith.constant 0 : index
    %88 = vector.load %arg8[%c25_71, %c0_72] : memref<480x128xbf16, #tpu.memory_space<vmem>>, vector<384x128xbf16>
    %c2_73 = arith.constant 2 : index
    %c0_74 = arith.constant 0 : index
    %c0_75 = arith.constant 0 : index
    %89 = vector.load %arg3[%c2_73, %c0_74, %c0_75] : memref<9x128x128xbf16, #tpu.memory_space<vmem>>, vector<1x128x128xbf16>
    %90 = vector.shape_cast %89 : vector<1x128x128xbf16> to vector<128x128xbf16>
    %cst_76 = arith.constant dense<0.000000e+00> : vector<384x128xf32>
    %91 = tpu.matmul %88, %90, %cst_76 {dimension_numbers = #tpu.dot_dimension_numbers<[1], [0], [0], [1], [0, 0, 1, 1], [], []>} : vector<384x128xbf16>, vector<128x128xbf16>, vector<384x128xf32> -> vector<384x128xf32>
    %92 = arith.addf %87, %91 : vector<384x128xf32>
    %c47 = arith.constant 47 : index
    %c0_77 = arith.constant 0 : index
    %93 = vector.load %arg8[%c47, %c0_77] : memref<480x128xbf16, #tpu.memory_space<vmem>>, vector<384x128xbf16>
    %c3_78 = arith.constant 3 : index
    %c0_79 = arith.constant 0 : index
    %c0_80 = arith.constant 0 : index
    %94 = vector.load %arg3[%c3_78, %c0_79, %c0_80] : memref<9x128x128xbf16, #tpu.memory_space<vmem>>, vector<1x128x128xbf16>
    %95 = vector.shape_cast %94 : vector<1x128x128xbf16> to vector<128x128xbf16>
    %cst_81 = arith.constant dense<0.000000e+00> : vector<384x128xf32>
    %96 = tpu.matmul %93, %95, %cst_81 {dimension_numbers = #tpu.dot_dimension_numbers<[1], [0], [0], [1], [0, 0, 1, 1], [], []>} : vector<384x128xbf16>, vector<128x128xbf16>, vector<384x128xf32> -> vector<384x128xf32>
    %97 = arith.addf %92, %96 : vector<384x128xf32>
    %c48_82 = arith.constant 48 : index
    %c0_83 = arith.constant 0 : index
    %98 = vector.load %arg8[%c48_82, %c0_83] : memref<480x128xbf16, #tpu.memory_space<vmem>>, vector<384x128xbf16>
    %c4_84 = arith.constant 4 : index
    %c0_85 = arith.constant 0 : index
    %c0_86 = arith.constant 0 : index
    %99 = vector.load %arg3[%c4_84, %c0_85, %c0_86] : memref<9x128x128xbf16, #tpu.memory_space<vmem>>, vector<1x128x128xbf16>
    %100 = vector.shape_cast %99 : vector<1x128x128xbf16> to vector<128x128xbf16>
    %cst_87 = arith.constant dense<0.000000e+00> : vector<384x128xf32>
    %101 = tpu.matmul %98, %100, %cst_87 {dimension_numbers = #tpu.dot_dimension_numbers<[1], [0], [0], [1], [0, 0, 1, 1], [], []>} : vector<384x128xbf16>, vector<128x128xbf16>, vector<384x128xf32> -> vector<384x128xf32>
    %102 = arith.addf %97, %101 : vector<384x128xf32>
    %c49_88 = arith.constant 49 : index
    %c0_89 = arith.constant 0 : index
    %103 = vector.load %arg8[%c49_88, %c0_89] : memref<480x128xbf16, #tpu.memory_space<vmem>>, vector<384x128xbf16>
    %c5_90 = arith.constant 5 : index
    %c0_91 = arith.constant 0 : index
    %c0_92 = arith.constant 0 : index
    %104 = vector.load %arg3[%c5_90, %c0_91, %c0_92] : memref<9x128x128xbf16, #tpu.memory_space<vmem>>, vector<1x128x128xbf16>
    %105 = vector.shape_cast %104 : vector<1x128x128xbf16> to vector<128x128xbf16>
    %cst_93 = arith.constant dense<0.000000e+00> : vector<384x128xf32>
    %106 = tpu.matmul %103, %105, %cst_93 {dimension_numbers = #tpu.dot_dimension_numbers<[1], [0], [0], [1], [0, 0, 1, 1], [], []>} : vector<384x128xbf16>, vector<128x128xbf16>, vector<384x128xf32> -> vector<384x128xf32>
    %107 = arith.addf %102, %106 : vector<384x128xf32>
    %c71 = arith.constant 71 : index
    %c0_94 = arith.constant 0 : index
    %108 = vector.load %arg8[%c71, %c0_94] : memref<480x128xbf16, #tpu.memory_space<vmem>>, vector<384x128xbf16>
    %c6_95 = arith.constant 6 : index
    %c0_96 = arith.constant 0 : index
    %c0_97 = arith.constant 0 : index
    %109 = vector.load %arg3[%c6_95, %c0_96, %c0_97] : memref<9x128x128xbf16, #tpu.memory_space<vmem>>, vector<1x128x128xbf16>
    %110 = vector.shape_cast %109 : vector<1x128x128xbf16> to vector<128x128xbf16>
    %cst_98 = arith.constant dense<0.000000e+00> : vector<384x128xf32>
    %111 = tpu.matmul %108, %110, %cst_98 {dimension_numbers = #tpu.dot_dimension_numbers<[1], [0], [0], [1], [0, 0, 1, 1], [], []>} : vector<384x128xbf16>, vector<128x128xbf16>, vector<384x128xf32> -> vector<384x128xf32>
    %112 = arith.addf %107, %111 : vector<384x128xf32>
    %c72 = arith.constant 72 : index
    %c0_99 = arith.constant 0 : index
    %113 = vector.load %arg8[%c72, %c0_99] : memref<480x128xbf16, #tpu.memory_space<vmem>>, vector<384x128xbf16>
    %c7_100 = arith.constant 7 : index
    %c0_101 = arith.constant 0 : index
    %c0_102 = arith.constant 0 : index
    %114 = vector.load %arg3[%c7_100, %c0_101, %c0_102] : memref<9x128x128xbf16, #tpu.memory_space<vmem>>, vector<1x128x128xbf16>
    %115 = vector.shape_cast %114 : vector<1x128x128xbf16> to vector<128x128xbf16>
    %cst_103 = arith.constant dense<0.000000e+00> : vector<384x128xf32>
    %116 = tpu.matmul %113, %115, %cst_103 {dimension_numbers = #tpu.dot_dimension_numbers<[1], [0], [0], [1], [0, 0, 1, 1], [], []>} : vector<384x128xbf16>, vector<128x128xbf16>, vector<384x128xf32> -> vector<384x128xf32>
    %117 = arith.addf %112, %116 : vector<384x128xf32>
    %c73 = arith.constant 73 : index
    %c0_104 = arith.constant 0 : index
    %118 = vector.load %arg8[%c73, %c0_104] : memref<480x128xbf16, #tpu.memory_space<vmem>>, vector<384x128xbf16>
    %c8_105 = arith.constant 8 : index
    %c0_106 = arith.constant 0 : index
    %c0_107 = arith.constant 0 : index
    %119 = vector.load %arg3[%c8_105, %c0_106, %c0_107] : memref<9x128x128xbf16, #tpu.memory_space<vmem>>, vector<1x128x128xbf16>
    %120 = vector.shape_cast %119 : vector<1x128x128xbf16> to vector<128x128xbf16>
    %cst_108 = arith.constant dense<0.000000e+00> : vector<384x128xf32>
    %121 = tpu.matmul %118, %120, %cst_108 {dimension_numbers = #tpu.dot_dimension_numbers<[1], [0], [0], [1], [0, 0, 1, 1], [], []>} : vector<384x128xbf16>, vector<128x128xbf16>, vector<384x128xf32> -> vector<384x128xf32>
    %122 = arith.addf %117, %121 : vector<384x128xf32>
    %c0_109 = arith.constant 0 : index
    %c0_110 = arith.constant 0 : index
    %123 = vector.load %arg5[%c0_109, %c0_110] : memref<1x128xf32, #tpu.memory_space<vmem>>, vector<1x128xf32>
    %124 = vector.broadcast %123 : vector<1x128xf32> to vector<384x128xf32>
    %125 = arith.addf %122, %124 : vector<384x128xf32>
    %126 = arith.addf %125, %30 : vector<384x128xf32>
    %cst_111 = arith.constant 0.000000e+00 : f32
    %127 = vector.broadcast %cst_111 : f32 to vector<384x128xf32>
    %128 = arith.maximumf %126, %127 : vector<384x128xf32>
    %c0_112 = arith.constant 0 : index
    %c0_113 = arith.constant 0 : index
    %c0_114 = arith.constant 0 : index
    %129 = vector.load %arg7[%c0_112, %c0_113, %c0_114] : memref<1x384x128xf32, #tpu.memory_space<vmem>>, vector<1x384x128xf32>
    %130 = vector.shape_cast %129 : vector<1x384x128xf32> to vector<384x128xf32>
    %131 = vector.shape_cast %128 : vector<384x128xf32> to vector<1x384x128xf32>
    tpu.vector_store %arg7[%c0_112, %c0_113, %c0_114], %131 {strides = array<i32>} : memref<1x384x128xf32, #tpu.memory_space<vmem>>, vector<1x384x128xf32>,
    return
  }
  func.func @transform_0(%arg0: i32) -> (i32, i32, i32) {
    %c0_i32 = arith.constant 0 : i32
    %c0_i32_0 = arith.constant 0 : i32
    %c0_i32_1 = arith.constant 0 : i32
    return %arg0, %c0_i32, %c0_i32_0 : i32, i32, i32
  }
  func.func @transform_1(%arg0: i32) -> (i32, i32, i32) {
    %c0_i32 = arith.constant 0 : i32
    %c0_i32_0 = arith.constant 0 : i32
    %c0_i32_1 = arith.constant 0 : i32
    %c0_i32_2 = arith.constant 0 : i32
    return %c0_i32, %c0_i32_0, %c0_i32_1 : i32, i32, i32
  }
  func.func @transform_2(%arg0: i32) -> (i32, i32, i32) {
    %c0_i32 = arith.constant 0 : i32
    %c0_i32_0 = arith.constant 0 : i32
    %c0_i32_1 = arith.constant 0 : i32
    %c0_i32_2 = arith.constant 0 : i32
    return %c0_i32, %c0_i32_0, %c0_i32_1 : i32, i32, i32
  }
  func.func @transform_3(%arg0: i32) -> (i32, i32) {
    %c0_i32 = arith.constant 0 : i32
    %c0_i32_0 = arith.constant 0 : i32
    %c0_i32_1 = arith.constant 0 : i32
    return %c0_i32, %c0_i32_0 : i32, i32
  }
  func.func @transform_4(%arg0: i32) -> (i32, i32) {
    %c0_i32 = arith.constant 0 : i32
    %c0_i32_0 = arith.constant 0 : i32
    %c0_i32_1 = arith.constant 0 : i32
    return %c0_i32, %c0_i32_0 : i32, i32
  }
  func.func @transform_5(%arg0: i32) -> (i32, i32) {
    %c0_i32 = arith.constant 0 : i32
    %c0_i32_0 = arith.constant 0 : i32
    %c0_i32_1 = arith.constant 0 : i32
    return %c0_i32, %c0_i32_0 : i32, i32
  }
  func.func @transform_6(%arg0: i32) -> (i32, i32, i32) {
    %c0_i32 = arith.constant 0 : i32
    %c0_i32_0 = arith.constant 0 : i32
    %c0_i32_1 = arith.constant 0 : i32
    return %arg0, %c0_i32, %c0_i32_0 : i32, i32, i32
  }
}

</mosaic_0001>

<bundles_post_ra>
// kernel: tpu_custom_call.1
= control target key start
LH: loop header
LB: loop body
LE: loop exit
PB: predicated region body
PF: predicated region fallthrough
CT: control target
= control target key end

     0   :  { %11 = vsyncpa [#allocation4], 0  ;;  %s15011_s0 = inlined_call_operand.hbm [shape: f32[2,456,128], index: 0, kind: input, shape index: {}]   ;;  %s15012_s1 = inlined_call_operand.hbm [shape: bf16[9,128,128], index: 1, kind: input, shape index: {}]   ;;  %s15013_s2 = inlined_call_operand.hbm [shape: bf16[9,128,128], index: 2, kind: input, shape index: {}]   ;;  %s15014_s3 = inlined_call_operand.vmem [shape: f32[1,128], index: 3, kind: input, shape index: {}]   ;;  %s15015_s4 = inlined_call_operand.vmem [shape: f32[1,128], index: 4, kind: input, shape index: {}]   ;;  %s15016_s5 = inlined_call_operand.vmem [shape: f32[384,1], index: 5, kind: input, shape index: {}]   ;;  %s15017_s6 = inlined_call_operand.hbm [shape: f32[2,384,128], index: 6, kind: output, shape index: {}]  }
   0x1   :  { %13 = vsyncpa [#allocation4 + $0x1], 0 }
   0x2   :  { %14 = vsyncpa [#allocation7], 0 }
   0x3   :  { %15 = vsyncpa [#allocation5], 0 }
   0x4   :  { %17 = vsyncpa [#allocation5 + $0x1], 0  ;;  %s12277_s21 = smov 0   ;;  %s12279_s22 = smov 0  }
   0x5   :  { %s12281_s23 = smov 0   ;;  %s12283_s24 = smov 0  }
   0x6 LB: > { %s12298_s25 = sadd.s32 4294967295, %s12229_s24   ;;  %s9143_s26 = sadd.s32 4294967294, %s12229_s24   ;;  %s12229_s24 = sphi %s12283_s24, %s15400_s24   ;;  %s12225_s23 = sphi %s12281_s23, %s15399_s23   ;;  %s12221_s22 = sphi %s12279_s22, %s15398_s22   ;;  %s12217_s21 = sphi %s12277_s21, %s15397_s21  }
   0x7   : > { %p43_p0 = scmp.ne.s32.totalorder %s12221_s22, %s12217_s21  ;;  %p15018_p1 = scmp.eq.s32.totalorder %s12298_s25, 0 }
   0x8   : > { %p178_p3 = scmp.eq.s32.totalorder %s9143_s26, 1  ;;  %p9144_p5 = scmp.ge.s32.totalorder %s12229_s24, 1 }
   0x9   : > { %p12307_p4 = por %p15018_p1, %p43_p0  ;;  %p185_p7 = scmp.lt.s32.totalorder %s12229_s24, 3 }
   0xa   : > { %p12312_p6 = por %p178_p3, %p43_p0  ;;  %s12231_s30 = smov [#allocation6]  }
   0xb   : > { %s15160_s27 = scalar_select %p12307_p4, 1, 0 }
   0xc   : > { %s15161_s28 = scalar_select %p12312_p6, 1, 0 }
   0xd   : > { %p12317_p8 = pnand %p9144_p5, %p185_p7  ;;  %s197_s7 = sshll.u32 %s12231_s30, 4  ;;  %s12321_s7 = int_to_ptr.vmem [resolvable:$true] %s197_s7 }
   0xe   : > { %s12232_s9 = smov [#allocation8]   ;;  %s12073_s13 = scalar_lea.hbm %s15012_s1, 9216 }
   0xf   : > { %p11814_p9 = pneg %p12317_p8  ;;  %s210_s10 = sshll.u32 %s12232_s9, 4  ;;  %s12332_s10 = int_to_ptr.vmem [resolvable:$true] %s210_s10 }
  0x10   : > { %p12074_p12 = scmp.ne.s32.totalorder %s15012_s1, %s12073_s13  ;;  %p12080_p5 = scmp.lt.u32.totalorder %s12073_s13, %s15012_s1 }
  0x11   : > { %p12328_p11 = pnand %p11814_p9, %p15018_p1 }
  0x13   : > { %p12075_p13 = pneg %p12328_p11 }
  0x15   : > { %p12076_p0 = pnand %p12075_p13, %p12074_p12 }
  0x17   : > { %p12077_p3 = pneg %p12076_p0 }
  0x19   : > { %p12082_p7 = pnand %p12080_p5, %p12077_p3 }
  0x1b   : > { %12085 = shalt.err (!%p12082_p7)
}
  0x1c   : > { %s12086_s18 = scalar_lea.vmem %s12321_s7, 9216  ;;  %p12094_p2 = scmp.lt.s32.totalorder %s12321_s7, %s12321_s7 }
  0x1d   : > { %p12087_p9 = scmp.ne.s32.totalorder %s12321_s7, %s12086_s18  ;;  %p12095_p12 = scmp.lt.s32.totalorder %s12086_s18, %s12086_s18 }
  0x1f   : > { %p12089_p10 = pnand %p12087_p9, %p12075_p13  ;;  %p12096_p0 = por %p12095_p12, %p12094_p2 }
  0x21   : > { %p12090_p1 = pneg %p12089_p10 }
  0x23   : > { %p12097_p6 = pnand %p12096_p0, %p12090_p1 }
  0x25   : > { %12100 = shalt.err (!%p12097_p6)
}
  0x26   : > { %s12233_s19 = smov 64   ;;  %s12234_s20 = smov 4  }
  0x27   : > { %11817 = dma.hbm_to_vmem [thread:$0]  (!%p12328_p11), %s15012_s1, 9216, %s12321_s7, [#allocation7], %s12233_s19, %s12233_s19, %s12234_s20  }
  0x28   : > { %s12101_s12 = scalar_lea.hbm %s15013_s2, 9216 }
  0x29   : > { %p12102_p2 = scmp.ne.s32.totalorder %s15013_s2, %s12101_s12  ;;  %p12108_p10 = scmp.lt.u32.totalorder %s12101_s12, %s15013_s2 }
  0x2b   : > { %p12104_p1 = pnand %p12102_p2, %p12075_p13 }
  0x2d   : > { %p12105_p6 = pneg %p12104_p1 }
  0x2f   : > { %p12110_p3 = pnand %p12108_p10, %p12105_p6 }
  0x31   : > { %12113 = shalt.err (!%p12110_p3)
}
  0x32   : > { %s12114_s7 = scalar_lea.vmem %s12332_s10, 9216  ;;  %p12122_p12 = scmp.lt.s32.totalorder %s12332_s10, %s12332_s10 }
  0x33   : > { %p12115_p5 = scmp.ne.s32.totalorder %s12332_s10, %s12114_s7  ;;  %p12123_p0 = scmp.lt.s32.totalorder %s12114_s7, %s12114_s7 }
  0x35   : > { %p12117_p7 = pnand %p12115_p5, %p12075_p13  ;;  %p12124_p2 = por %p12123_p0, %p12122_p12 }
  0x37   : > { %p12118_p9 = pneg %p12117_p7 }
  0x39   : > { %p12125_p1 = pnand %p12124_p2, %p12118_p9 }
  0x3b   : > { %12128 = shalt.err (!%p12125_p1)
}
  0x3c   : > { %11820 = dma.hbm_to_vmem [thread:$0]  (!%p12328_p11), %s15013_s2, 9216, %s12332_s10, [#allocation7], %s12233_s19, %s12233_s19, %s12234_s20  }
  0x3d   : > { %s12387_s26 = sadd.s32 1, %s12229_s24   ;;  %s30_s8 = sadd.s32 1, %s12225_s23 }
  0x3e   : > { %s27_s30 = ssub.s32 %s12229_s24, %s12387_s26  ;;  %p37_p13 = scmp.ne.s32.totalorder %s12225_s23, %s12221_s22 }
  0x3f   : > { %p28_p6 = scmp.eq.s32.totalorder %s27_s30, 0  ;;  %p38_p10 = scmp.eq.s32.totalorder %s12229_s24, 0 }
  0x40   : > { %p15164_p3 = scmp.eq.s32.totalorder %s12298_s25, 1  ;;  %p11831_p7 = scmp.lt.s32.totalorder %s12229_s24, 2 }
  0x41   : > { %s12403_s11 = scalar_select %p28_p6, %s12225_s23, %s30_s8  }
  0x42   : > { %p12397_p5 = por %p15164_p3, %p37_p13  ;;  %p39_p9 = por %p38_p10, %p37_p13 }
  0x43   : > { %s233_s12 = sand.u32 1, %s12225_s23   ;;  %s11798_s10 = smul.u32 7296, %s12229_s24 }
  0x44   : > { %s15165_s9 = scalar_select %p12397_p5, 1, 0 }
  0x45   : > { %s11797_s13 = smul.u32 456, %s233_s12  ;;  %p12407_p11 = pnand %p11831_p7, %p39_p9 }
  0x46   : > { %s12414_s15 = scalar_lea.hbm %s15011_s0, %s11798_s10  ;;  %s12418_s17 = scalar_lea.sflag [#allocation4], %s233_s12 }
  0x47   : > { %s237_s16 = scalar_lea.vmem [#allocation3], %s11797_s13  ;;  %s12129_s18 = scalar_lea.hbm %s12414_s15, 7296 }
  0x48   : > { %s244_s7 = sshll.u32 %s237_s16, 4  ;;  %p12130_p12 = scmp.ne.s32.totalorder %s12414_s15, %s12129_s18  ;;  %s12416_s7 = int_to_ptr.vmem [resolvable:$true] %s244_s7 }
  0x49   : > { %p12131_p0 = pneg %p12407_p11  ;;  %s12134_s10 = scalar_lea.hbm %s15011_s0, 14592 }
  0x4a   : > { %p12135_p13 = scmp.lt.u32.totalorder %s12414_s15, %s15011_s0  ;;  %p12136_p6 = scmp.lt.u32.totalorder %s12134_s10, %s12129_s18 }
  0x4b   : > { %p12132_p2 = pnand %p12131_p0, %p12130_p12  ;;  %p12138_p3 = scmp.lt.u32.totalorder %s12129_s18, %s12414_s15 }
  0x4c   : > { %p12137_p10 = por %p12136_p6, %p12135_p13 }
  0x4d   : > { %p12133_p1 = pneg %p12132_p2 }
  0x4e   : > { %p12139_p7 = por %p12138_p3, %p12137_p10 }
  0x50   : > { %p12140_p9 = pnand %p12139_p7, %p12133_p1 }
  0x52   : > { %12143 = shalt.err (!%p12140_p9)
}
  0x53   : > { %s12144_s12 = scalar_lea.vmem %s12416_s7, 7296  ;;  %s12235_s13 = smov [#allocation3]  }
  0x54   : > { %p12145_p12 = scmp.ne.s32.totalorder %s12416_s7, %s12144_s12  ;;  %s12149_s16 = sshll.u32 %s12235_s13, 4  ;;  %s12150_s16 = int_to_ptr.vmem [resolvable:$false] %s12149_s16 }
  0x55   : > { %s12151_s8 = scalar_lea.vmem %s12150_s16, 14592  ;;  %p12152_p4 = scmp.lt.s32.totalorder %s12416_s7, %s12150_s16 }
  0x56   : > { %p12147_p2 = pnand %p12145_p12, %p12131_p0  ;;  %p12153_p13 = scmp.lt.s32.totalorder %s12151_s8, %s12144_s12 }
  0x58   : > { %p12148_p5 = pneg %p12147_p2  ;;  %p12154_p6 = por %p12153_p13, %p12152_p4 }
  0x5a   : > { %p12155_p10 = pnand %p12154_p6, %p12148_p5 }
  0x5c   : > { %12158 = shalt.err (!%p12155_p10)
}
  0x5d   : > { %s12236_s18 = smov 128   ;;  %s12237_s30 = smov 8  }
  0x5e   : > { %11824 = dma.hbm_to_vmem [thread:$0]  (!%p12407_p11), %s12414_s15, 7296, %s12416_s7, %s12418_s17, %s12236_s18, %s12236_s18, %s12237_s30  }
  0x5f   : > { %256 = sbr.rel (%p12317_p8) target bundleno = 2244 (0x8c4), region = 44 }
  0x66   : > { %s12449_s10 = sand.u32 1, %s12221_s22   ;;  %p15167_p4 = scmp.ne.s32.totalorder %s15160_s27, 0 }
  0x67   : > { %s11799_s20 = smul.u32 456, %s12449_s10  ;;  %s259_s14 = scalar_lea.sflag [#allocation4], %s12449_s10 }
  0x69   : > { %s12453_s12 = scalar_lea.vmem [#allocation3], %s11799_s20 }
  0x6a   : > { %12204 = dma.done.wait (%p15167_p4), %s259_s14, 7296  }
  0x6b   : > { %12206 = vsyncadd (%p15167_p4), %s259_s14, 4294960000  ;;  %p15168_p5 = scmp.eq.s32.totalorder %s12298_s25, 0 }
  0x6d   : > { %12208 = dma.done.wait (%p15168_p5), [#allocation7], 18432   ;;  %p15169_p8 = pmov %p15168_p5 }
  0x6e   : > { %v11878_v0 = vld [vmem:[#allocation6 + $0x40] sm:$0xff]   ;;  %v11879_v1 = vld [vmem:[#allocation6 + $0x48] sm:$0xff]   ;;  %v11880_v2 = vld [vmem:[#allocation6 + $0x50] sm:$0xff]   ;;  %vm4470_vm0 = vcmask 1043456   ;;  %vm4817_vm1 = vsmask.f32 4352 }
  0x6f   : > { %12210 = vsyncadd (%p15169_p8), [#allocation7], 4294948864  ;;  %9877 = vmatprep.subr.bf16.mxu0 %v11878_v0  ;;  %v11881_v3 = vld [vmem:[#allocation6 + $0x58] sm:$0xff]   ;;  %v11882_v7 = vld [vmem:[#allocation6 + $0x60] sm:$0xff]   ;;  %vm5357_vm2 = vsmask.f32 3328 }
  0x70   : > { %9878 = vmatpush3.bf16.msra.mxu0 %v11878_v0  ;;  %v388_v4 = vld [vmem:[%s12453_s12 + $0x1] sm:$0xff]  ;;  %v389_v5 = vld [vmem:[%s12453_s12 + $0x9] sm:$0xff]  ;;  %v390_v11 = vld [vmem:[%s12453_s12 + $0x11] sm:$0xff]  ;;  %vm6776_vm3 = vsmask.f32 7424  ;;  %s11800_s18 = smul.u32 384, %s12449_s10 }
  0x71   : > { %9879 = vmatprep.subr.bf16.mxu0 %v11879_v1  ;;  %v436_v6 = vpack.c.bf16 %v389_v5, %v388_v4  ;;  %v11883_v8 = vld [vmem:[#allocation6 + $0x68] sm:$0xff]   ;;  %v11884_v9 = vld [vmem:[#allocation6 + $0x70] sm:$0xff]   ;;  %v11885_v10 = vld [vmem:[#allocation6 + $0x78] sm:$0xff]   ;;  %vm5854_vm4 = vsmask.f32 256  ;;  %s11801_s20 = smul.u32 6144, %s12298_s25 }
  0x72   : > { %v391_v12 = vld [vmem:[%s12453_s12 + $0x19] sm:$0xff]  ;;  %v11886_v13 = vld [vmem:[#allocation6] sm:$0xff]   ;;  %s14822_s30 = scalar_lea.vmem [#allocation9], %s11800_s18  ;;  %s9038_s19 = scalar_lea.sflag [#allocation5], %s12449_s10 }
  0x73   : > { %9893 = vmatprep.mubr.bf16.mxu0 %v436_v6  ;;  %v392_v14 = vld [vmem:[%s12453_s12 + $0x21] sm:$0xff]  ;;  %v393_v15 = vld [vmem:[%s12453_s12 + $0x29] sm:$0xff]  ;;  %v437_v16 = vpack.c.bf16 %v391_v12, %v390_v11  ;;  %v394_v19 = vld [vmem:[%s12453_s12 + $0x31] sm:$0xff]  ;;  %s9051_s14 = sshll.u32 %s14822_s30, 4  ;;  %s14962_s25 = scalar_lea.hbm %s15017_s6, %s11801_s20  ;;  %s14965_s14 = int_to_ptr.vmem [resolvable:$true] %s9051_s14 }
  0x74   : > { %9880 = vmatpush3.bf16.msra.mxu0 %v11879_v1  ;;  %v438_v17 = vpack.c.bf16 %v393_v15, %v392_v14  ;;  %v11887_v18 = vld [vmem:[#allocation6 + $0x8] sm:$0xff]   ;;  %v396_v21 = vld [vmem:[%s12453_s12 + $0x41] sm:$0xff]  ;;  %s12159_s15 = scalar_lea.vmem %s14965_s14, 6144  ;;  %p15394_p0 = scmp.ne.s32.totalorder %s15165_s9, 0 }
  0x75   : > { %9881 = vmatprep.subr.bf16.mxu0 %v11880_v2  ;;  %v395_v20 = vld [vmem:[%s12453_s12 + $0x39] sm:$0xff]  ;;  %v397_v22 = vld [vmem:[%s12453_s12 + $0x49] sm:$0xff]  ;;  %v398_v27 = vld [vmem:[%s12453_s12 + $0x51] sm:$0xff]  ;;  %p12160_p11 = scmp.ne.s32.totalorder %s14965_s14, %s12159_s15 }
  0x76   : > { %v11888_v23 = vld [vmem:[#allocation6 + $0x10] sm:$0xff]   ;;  %v439_v24 = vpack.c.bf16 %v395_v20, %v394_v19  ;;  %v440_v25 = vpack.c.bf16 %v397_v22, %v396_v21  ;;  %v11889_v26 = vld [vmem:[#allocation6 + $0x18] sm:$0xff]   ;;  %v11890_v31 = vld [vmem:[#allocation6 + $0x20] sm:$0xff]  }
  0x77   : > { %v399_v28 = vld [vmem:[%s12453_s12 + $0x59] sm:$0xff]  ;;  %v400_v29 = vld [vmem:[%s12453_s12 + $0x61] sm:$0xff]  ;;  %v401_v30 = vld [vmem:[%s12453_s12 + $0x69] sm:$0xff]  ;;  %p12161_p1 = pnand %p12160_p11, %p15394_p0 }
  0x78   : > { %9882 = vmatpush3.bf16.msra.mxu0 %v11880_v2  ;;  %v441_v32 = vpack.c.bf16 %v399_v28, %v398_v27  ;;  %v11891_v33 = vld [vmem:[#allocation6 + $0x28] sm:$0xff]   ;;  %v442_v34 = vpack.c.bf16 %v401_v30, %v400_v29  ;;  %v404_v37 = vld [vmem:[%s12453_s12 + $0x81] sm:$0xff] }
  0x79   : > { %9883 = vmatprep.subr.bf16.mxu0 %v11881_v3  ;;  %v402_v35 = vld [vmem:[%s12453_s12 + $0x71] sm:$0xff]  ;;  %v403_v36 = vld [vmem:[%s12453_s12 + $0x79] sm:$0xff]  ;;  %v405_v38 = vld [vmem:[%s12453_s12 + $0x89] sm:$0xff]  ;;  %p12162_p3 = pneg %p12161_p1 }
  0x7a   : > { %v11892_v39 = vld [vmem:[#allocation6 + $0x30] sm:$0xff]   ;;  %v443_v40 = vpack.c.bf16 %v403_v36, %v402_v35  ;;  %v11893_v41 = vld [vmem:[#allocation6 + $0x38] sm:$0xff]   ;;  %v444_v42 = vpack.c.bf16 %v405_v38, %v404_v37  ;;  %v12485_v47 = vld [vmem:[#allocation6 + $0x80] sm:$0xff]  }
  0x7b   : > { %v406_v43 = vld [vmem:[%s12453_s12 + $0x91] sm:$0xff]  ;;  %v407_v44 = vld [vmem:[%s12453_s12 + $0x99] sm:$0xff]  ;;  %v408_v45 = vld [vmem:[%s12453_s12 + $0xa1] sm:$0xff] }
  0x7c   : > { %9884 = vmatpush3.bf16.msra.mxu0 %v11881_v3  ;;  %v409_v46 = vld [vmem:[%s12453_s12 + $0xa9] sm:$0xff]  ;;  %v445_v48 = vpack.c.bf16 %v407_v44, %v406_v43  ;;  %v410_v50 = vld [vmem:[%s12453_s12 + $0xb1] sm:$0xff]  ;;  %v411_v51 = vld [vmem:[%s12453_s12 + $0xb9] sm:$0xff] }
  0x7d   : > { %9885 = vmatprep.subr.bf16.mxu0 %v11882_v7  ;;  %v446_v49 = vpack.c.bf16 %v409_v46, %v408_v45  ;;  %v412_v52 = vld [vmem:[%s12453_s12 + $0xc1] sm:$0xff]  ;;  %v413_v53 = vld [vmem:[%s12453_s12 + $0xc9] sm:$0xff]  ;;  %v447_v54 = vpack.c.bf16 %v411_v51, %v410_v50  ;;  %v414_v56 = vld [vmem:[%s12453_s12 + $0xd1] sm:$0xff] }
  0x7e   : > { %v448_v55 = vpack.c.bf16 %v413_v53, %v412_v52  ;;  %v415_v57 = vld [vmem:[%s12453_s12 + $0xd9] sm:$0xff]  ;;  %v416_v58 = vld [vmem:[%s12453_s12 + $0xe1] sm:$0xff]  ;;  %v417_v59 = vld [vmem:[%s12453_s12 + $0xe9] sm:$0xff] }
  0x7f   : > { %v449_v60 = vpack.c.bf16 %v415_v57, %v414_v56  ;;  %v450_v61 = vpack.c.bf16 %v417_v59, %v416_v58  ;;  %v418_v62 = vld [vmem:[%s12453_s12 + $0xf1] sm:$0xff]  ;;  %v419_v63 = vld [vmem:[%s12453_s12 + $0xf9] sm:$0xff]  ;;  %v420_v0 = vld [vmem:[%s12453_s12 + $0x101] sm:$0xff] }
  0x80   : > { %9886 = vmatpush3.bf16.msra.mxu0 %v11882_v7  ;;  %v421_v1 = vld [vmem:[%s12453_s12 + $0x109] sm:$0xff]  ;;  %v451_v2 = vpack.c.bf16 %v419_v63, %v418_v62  ;;  %v422_v4 = vld [vmem:[%s12453_s12 + $0x111] sm:$0xff]  ;;  %v423_v5 = vld [vmem:[%s12453_s12 + $0x119] sm:$0xff] }
  0x81   : > { %9887 = vmatprep.subr.bf16.mxu0 %v11883_v8  ;;  %v452_v3 = vpack.c.bf16 %v421_v1, %v420_v0  ;;  %v424_v6 = vld [vmem:[%s12453_s12 + $0x121] sm:$0xff]  ;;  %v425_v7 = vld [vmem:[%s12453_s12 + $0x129] sm:$0xff]  ;;  %v427_v11 = vld [vmem:[%s12453_s12 + $0x139] sm:$0xff] }
  0x82   : > { %v428_v12 = vld [vmem:[%s12453_s12 + $0x141] sm:$0xff]  ;;  %v433_v19 = vld [vmem:[%s12453_s12 + $0x169] sm:$0xff]  ;;  %v434_v22 = vld [vmem:[%s12453_s12 + $0x171] sm:$0xff] }
  0x83   : > { %v302_v28 = vld [vmem:[%s12453_s12 + $0x10] sm:$0xff]  ;;  %v12518_v29 = vld [vmem:[%s12453_s12 + $0x18] sm:$0xff]  ;;  %v12521_v30 = vld [vmem:[%s12453_s12 + $0x20] sm:$0xff] }
  0x84   : > { %9888 = vmatpush3.bf16.msra.mxu0 %v11883_v8  ;;  %v453_v8 = vpack.c.bf16 %v423_v5, %v422_v4  ;;  %v12530_v35 = vld [vmem:[%s12453_s12 + $0x30] sm:$0xff]  ;;  %v12533_v36 = vld [vmem:[%s12453_s12 + $0x38] sm:$0xff]  ;;  %v12536_v37 = vld [vmem:[%s12453_s12 + $0x40] sm:$0xff] }
  0x85   : > { %9889 = vmatprep.subr.bf16.mxu0 %v11884_v9  ;;  %v12540_v38 = vld [vmem:[%s12453_s12 + $0x48] sm:$0xff]  ;;  %v12547_v43 = vld [vmem:[%s12453_s12 + $0x50] sm:$0xff]  ;;  %v12550_v44 = vld [vmem:[%s12453_s12 + $0x58] sm:$0xff] }
  0x86   : > { %v12553_v45 = vld [vmem:[%s12453_s12 + $0x60] sm:$0xff]  ;;  %v12556_v46 = vld [vmem:[%s12453_s12 + $0x68] sm:$0xff]  ;;  %v12563_v51 = vld [vmem:[%s12453_s12 + $0x70] sm:$0xff] }
  0x87   : > { %v354_v50 = vpack.c.bf16 %v12556_v46, %v12553_v45  ;;  %v12566_v52 = vld [vmem:[%s12453_s12 + $0x78] sm:$0xff]  ;;  %v12569_v53 = vld [vmem:[%s12453_s12 + $0x80] sm:$0xff]  ;;  %v12579_v59 = vld [vmem:[%s12453_s12 + $0x90] sm:$0xff] }
  0x88   : > { %9890 = vmatpush3.bf16.msra.mxu0 %v11884_v9  ;;  %v454_v9 = vpack.c.bf16 %v425_v7, %v424_v6  ;;  %v355_v56 = vpack.c.bf16 %v12566_v52, %v12563_v51  ;;  %v11901_v58 = vld [vmem:[#allocation6 + $0xb8] sm:$0xff]   ;;  %v12590_v63 = vld [vmem:[#allocation6 + $0xc0] sm:$0xff]  }
  0x89   : > { %9891 = vmatprep.subr.bf16.mxu0 %v11885_v10  ;;  %v12588_v62 = vld [vmem:[%s12453_s12 + $0xa8] sm:$0xff]  ;;  %v12604_v4 = vld [vmem:[%s12453_s12 + $0xc0] sm:$0xff] }
  0x8a   : > { %v12607_v5 = vld [vmem:[%s12453_s12 + $0xc8] sm:$0xff] }
  0x8b   : > { %v360_v7 = vpack.c.bf16 %v12607_v5, %v12604_v4 }
  0x8c   : > { %9892 = vmatpush3.bf16.msra.mxu0 %v11885_v10  ;;  %v426_v10 = vld [vmem:[%s12453_s12 + $0x131] sm:$0xff] }
  0x8d   : > { %9941 = vmatprep.subr.bf16.mxu0 %v11886_v13  ;;  %v455_v14 = vpack.c.bf16 %v427_v11, %v426_v10  ;;  %v12620_v10 = vld [vmem:[%s12453_s12 + $0xe0] sm:$0xff]  ;;  %v12623_v11 = vld [vmem:[%s12453_s12 + $0xe8] sm:$0xff] }
  0x8f   : > { %9894 = vmatmul.mubr.bf16.vlgmr.msra.gmra.mrb[0].mxu0 %v437_v16  ;;  %v430_v16 = vld [vmem:[%s12453_s12 + $0x151] sm:$0xff] }
  0x90   : > { %9942 = vmatpush3.bf16.msra.mxu0 %v11886_v13  ;;  %9897 = vmatprep.mubr.bf16.mxu0 %v438_v17  ;;  %v429_v13 = vld [vmem:[%s12453_s12 + $0x149] sm:$0xff]  ;;  %v431_v17 = vld [vmem:[%s12453_s12 + $0x159] sm:$0xff] }
  0x91   : > { %9943 = vmatprep.subr.bf16.mxu0 %v11887_v18  ;;  %v456_v15 = vpack.c.bf16 %v429_v13, %v428_v12  ;;  %v457_v20 = vpack.c.bf16 %v431_v17, %v430_v16  ;;  %v362_v13 = vpack.c.bf16 %v12623_v11, %v12620_v10  ;;  %v12636_v16 = vld [vmem:[%s12453_s12 + $0x100] sm:$0xff]  ;;  %v12639_v17 = vld [vmem:[%s12453_s12 + $0x108] sm:$0xff] }
  0x94   : > { %9944 = vmatpush3.bf16.msra.mxu0 %v11887_v18  ;;  %v432_v18 = vld [vmem:[%s12453_s12 + $0x161] sm:$0xff] }
  0x95   : > { %9945 = vmatprep.subr.bf16.mxu0 %v11888_v23  ;;  %v458_v21 = vpack.c.bf16 %v433_v19, %v432_v18  ;;  %v364_v19 = vpack.c.bf16 %v12639_v17, %v12636_v16 }
  0x97   : > { %9898 = vmatmul.mubr.bf16.gmra.mrb[4].mxu0 %v439_v24  ;;  %v300_v24 = vld [vmem:[%s12453_s12] sm:$0xff] }
  0x98   : > { %9901 = vmatprep.mubr.bf16.mxu0 %v440_v25  ;;  %9946 = vmatpush3.bf16.msra.mxu0 %v11888_v23  ;;  %v435_v23 = vld [vmem:[%s12453_s12 + $0x179] sm:$0xff]  ;;  %v301_v25 = vld [vmem:[%s12453_s12 + $0x8] sm:$0xff] }
  0x99   : > { %9947 = vmatprep.subr.bf16.mxu0 %v11889_v26  ;;  %v348_v27 = vpack.c.bf16 %v301_v25, %v300_v24 }
  0x9c   : > { %9948 = vmatpush3.bf16.msra.mxu0 %v11889_v26  ;;  %v459_v26 = vpack.c.bf16 %v435_v23, %v434_v22  ;;  %v12652_v22 = vld [vmem:[%s12453_s12 + $0x120] sm:$0xff]  ;;  %v12655_v23 = vld [vmem:[%s12453_s12 + $0x128] sm:$0xff] }
  0x9d   : > { %9949 = vmatprep.subr.bf16.mxu0 %v11890_v31  ;;  %v366_v25 = vpack.c.bf16 %v12655_v23, %v12652_v22 }
  0x9f   : > { %9902 = vmatmul.mubr.bf16.gmra.mrb[8].mxu0 %v441_v32  ;;  %v349_v32 = vpack.c.bf16 %v12518_v29, %v302_v28  ;;  %v12668_v28 = vld [vmem:[%s12453_s12 + $0x140] sm:$0xff] }
  0xa0   : > { %9905 = vmatprep.mubr.bf16.mxu0 %v442_v34  ;;  %9950 = vmatpush3.bf16.msra.mxu0 %v11890_v31  ;;  %v12524_v31 = vld [vmem:[%s12453_s12 + $0x28] sm:$0xff] }
  0xa1   : > { %9951 = vmatprep.subr.bf16.mxu0 %v11891_v33  ;;  %v350_v34 = vpack.c.bf16 %v12524_v31, %v12521_v30 }
  0xa4   : > { %9952 = vmatpush3.bf16.msra.mxu0 %v11891_v33  ;;  %v11895_v33 = vld [vmem:[#allocation6 + $0x88] sm:$0xff]  }
  0xa5   : > { %9953 = vmatprep.subr.bf16.mxu0 %v11892_v39 }
  0xa7   : > { %9906 = vmatmul.mubr.bf16.gmra.mrb[12].mxu0 %v443_v40  ;;  %v351_v40 = vpack.c.bf16 %v12533_v36, %v12530_v35 }
  0xa8   : > { %9909 = vmatprep.mubr.bf16.mxu0 %v444_v42  ;;  %9954 = vmatpush3.bf16.msra.mxu0 %v11892_v39  ;;  %v11896_v39 = vld [vmem:[#allocation6 + $0x90] sm:$0xff]   ;;  %v352_v42 = vpack.c.bf16 %v12540_v38, %v12536_v37 }
  0xa9   : > { %9955 = vmatprep.subr.bf16.mxu0 %v11893_v41 }
  0xac   : > { %9956 = vmatpush3.bf16.msra.mxu0 %v11893_v41  ;;  %v11897_v41 = vld [vmem:[#allocation6 + $0x98] sm:$0xff]  }
  0xad   : > { %10005 = vmatprep.subr.bf16.mxu0 %v12485_v47 }
  0xaf   : > { %9910 = vmatmul.mubr.bf16.gmra.mrb[16].mxu0 %v445_v48  ;;  %v353_v48 = vpack.c.bf16 %v12550_v44, %v12547_v43 }
  0xb0   : > { %9913 = vmatprep.mubr.bf16.mxu0 %v446_v49  ;;  %v11899_v49 = vld [vmem:[#allocation6 + $0xa8] sm:$0xff]  }
  0xb7   : > { %9914 = vmatmul.mubr.bf16.gmra.mrb[20].mxu0 %v447_v54  ;;  %v12572_v54 = vld [vmem:[%s12453_s12 + $0x88] sm:$0xff] }
  0xb8   : > { %9917 = vmatprep.mubr.bf16.mxu0 %v448_v55  ;;  %v11900_v55 = vld [vmem:[#allocation6 + $0xb0] sm:$0xff]   ;;  %v356_v57 = vpack.c.bf16 %v12572_v54, %v12569_v53 }
  0xbf   : > { %9918 = vmatmul.mubr.bf16.gmra.mrb[24].mxu0 %v449_v60  ;;  %v12582_v60 = vld [vmem:[%s12453_s12 + $0x98] sm:$0xff] }
  0xc0   : > { %9921 = vmatprep.mubr.bf16.mxu0 %v450_v61  ;;  %v12585_v61 = vld [vmem:[%s12453_s12 + $0xa0] sm:$0xff]  ;;  %v357_v0 = vpack.c.bf16 %v12582_v60, %v12579_v59 }
  0xc1   : > { %v358_v1 = vpack.c.bf16 %v12588_v62, %v12585_v61 }
  0xc7   : > { %9922 = vmatmul.mubr.bf16.gmra.mrb[28].mxu0 %v451_v2  ;;  %v12598_v2 = vld [vmem:[%s12453_s12 + $0xb0] sm:$0xff] }
  0xc8   : > { %9925 = vmatprep.mubr.bf16.mxu0 %v452_v3  ;;  %v12601_v3 = vld [vmem:[%s12453_s12 + $0xb8] sm:$0xff] }
  0xc9   : > { %v359_v6 = vpack.c.bf16 %v12601_v3, %v12598_v2 }
  0xcf   : > { %9926 = vmatmul.mubr.bf16.gmra.mrb[32].mxu0 %v453_v8  ;;  %v12614_v8 = vld [vmem:[%s12453_s12 + $0xd0] sm:$0xff] }
  0xd0   : > { %9929 = vmatprep.mubr.bf16.mxu0 %v454_v9  ;;  %v12617_v9 = vld [vmem:[%s12453_s12 + $0xd8] sm:$0xff] }
  0xd1   : > { %v361_v12 = vpack.c.bf16 %v12617_v9, %v12614_v8 }
  0xd7   : > { %9930 = vmatmul.mubr.bf16.gmra.mrb[36].mxu0 %v455_v14  ;;  %v12630_v14 = vld [vmem:[%s12453_s12 + $0xf0] sm:$0xff] }
  0xd8   : > { %9933 = vmatprep.mubr.bf16.mxu0 %v456_v15  ;;  %v12633_v15 = vld [vmem:[%s12453_s12 + $0xf8] sm:$0xff] }
  0xd9   : > { %v363_v18 = vpack.c.bf16 %v12633_v15, %v12630_v14 }
  0xdf   : > { %9934 = vmatmul.mubr.bf16.gmra.mrb[40].mxu0 %v457_v20  ;;  %v12646_v20 = vld [vmem:[%s12453_s12 + $0x110] sm:$0xff] }
  0xe0   : > { %9937 = vmatprep.mubr.bf16.mxu0 %v458_v21  ;;  %v12649_v21 = vld [vmem:[%s12453_s12 + $0x118] sm:$0xff] }
  0xe1   : > { %v365_v24 = vpack.c.bf16 %v12649_v21, %v12646_v20 }
  0xe7   : > { %9938 = vmatmul.mubr.bf16.gmra.mrb[44].mxu0 %v459_v26  ;;  %v12662_v26 = vld [vmem:[%s12453_s12 + $0x130] sm:$0xff] }
  0xe8   : > { %9957 = vmatprep.mubr.bf16.mxu0 %v348_v27  ;;  %v12665_v27 = vld [vmem:[%s12453_s12 + $0x138] sm:$0xff] }
  0xef   : > { %9958 = vmatmul.mubr.bf16.vlgmr.msra.gmra.mrb[0].mxu0 %v349_v32  ;;  %v12671_v32 = vld [vmem:[%s12453_s12 + $0x148] sm:$0xff] }
  0xf0   : > { %10006 = vmatpush3.bf16.msra.mxu0 %v12485_v47  ;;  %9961 = vmatprep.mubr.bf16.mxu0 %v350_v34  ;;  %v11898_v47 = vld [vmem:[#allocation6 + $0xa0] sm:$0xff]   ;;  %v368_v34 = vpack.c.bf16 %v12671_v32, %v12668_v28 }
  0xf1   : > { %10007 = vmatprep.subr.bf16.mxu0 %v11895_v33 }
  0xf4   : > { %10008 = vmatpush3.bf16.msra.mxu0 %v11895_v33  ;;  %v367_v33 = vpack.c.bf16 %v12665_v27, %v12662_v26 }
  0xf5   : > { %10009 = vmatprep.subr.bf16.mxu0 %v11896_v39 }
  0xf7   : > { %9962 = vmatmul.mubr.bf16.gmra.mrb[4].mxu0 %v351_v40  ;;  %v12681_v40 = vld [vmem:[%s12453_s12 + $0x158] sm:$0xff] }
  0xf8   : > { %9965 = vmatprep.mubr.bf16.mxu0 %v352_v42  ;;  %10010 = vmatpush3.bf16.msra.mxu0 %v11896_v39  ;;  %v12678_v39 = vld [vmem:[%s12453_s12 + $0x150] sm:$0xff]  ;;  %v12687_v42 = vld [vmem:[%s12453_s12 + $0x168] sm:$0xff] }
  0xf9   : > { %10011 = vmatprep.subr.bf16.mxu0 %v11897_v41 }
  0xfc   : > { %10012 = vmatpush3.bf16.msra.mxu0 %v11897_v41  ;;  %v12684_v41 = vld [vmem:[%s12453_s12 + $0x160] sm:$0xff] }
  0xfd   : > { %10013 = vmatprep.subr.bf16.mxu0 %v11898_v47 }
  0xff   : > { %9966 = vmatmul.mubr.bf16.gmra.mrb[8].mxu0 %v353_v48  ;;  %v370_v48 = vpack.c.bf16 %v12687_v42, %v12684_v41 }
 0x100   : > { %9969 = vmatprep.mubr.bf16.mxu0 %v354_v50  ;;  %10014 = vmatpush3.bf16.msra.mxu0 %v11898_v47  ;;  %v369_v47 = vpack.c.bf16 %v12681_v40, %v12678_v39  ;;  %v12697_v50 = vld [vmem:[%s12453_s12 + $0x178] sm:$0xff] }
 0x101   : > { %10015 = vmatprep.subr.bf16.mxu0 %v11899_v49 }
 0x104   : > { %10016 = vmatpush3.bf16.msra.mxu0 %v11899_v49  ;;  %v12694_v49 = vld [vmem:[%s12453_s12 + $0x170] sm:$0xff] }
 0x105   : > { %10017 = vmatprep.subr.bf16.mxu0 %v11900_v55 }
 0x107   : > { %9970 = vmatmul.mubr.bf16.gmra.mrb[12].mxu0 %v355_v56  ;;  %v1024_v56 = vld [vmem:[%s12453_s12 + $0xa] sm:$0xff] }
 0x108   : > { %9973 = vmatprep.mubr.bf16.mxu0 %v356_v57  ;;  %10018 = vmatpush3.bf16.msra.mxu0 %v11900_v55  ;;  %v1023_v55 = vld [vmem:[%s12453_s12 + $0x2] sm:$0xff]  ;;  %v371_v57 = vpack.c.bf16 %v12697_v50, %v12694_v49 }
 0x109   : > { %10019 = vmatprep.subr.bf16.mxu0 %v11901_v58 }
 0x10c   : > { %10020 = vmatpush3.bf16.msra.mxu0 %v11901_v58  ;;  %v1071_v58 = vpack.c.bf16 %v1024_v56, %v1023_v55  ;;  %v12734_v55 = vld [vmem:[%s12453_s12 + $0x52] sm:$0xff]  ;;  %v12737_v56 = vld [vmem:[%s12453_s12 + $0x5a] sm:$0xff] }
 0x10d   : > { %10069 = vmatprep.subr.bf16.mxu0 %v12590_v63  ;;  %15171 = vst [vmem:[#allocation14_spill] sm:$0xff] %v12734_v55  ;;  %15172 = vst [vmem:[#allocation15_spill] sm:$0xff] %v12737_v56 }
 0x10f   : > { %9974 = vmatmul.mubr.bf16.gmra.mrb[16].mxu0 %v357_v0  ;;  %v1025_v0 = vld [vmem:[%s12453_s12 + $0x12] sm:$0xff] }
 0x110   : > { %9977 = vmatprep.mubr.bf16.mxu0 %v358_v1  ;;  %v12705_v1 = vld [vmem:[%s12453_s12 + $0x1a] sm:$0xff] }
 0x117   : > { %9978 = vmatmul.mubr.bf16.gmra.mrb[20].mxu0 %v359_v6  ;;  %v12708_v6 = vld [vmem:[%s12453_s12 + $0x22] sm:$0xff] }
 0x118   : > { %9981 = vmatprep.mubr.bf16.mxu0 %v360_v7  ;;  %v12711_v7 = vld [vmem:[%s12453_s12 + $0x2a] sm:$0xff] }
 0x11f   : > { %9982 = vmatmul.mubr.bf16.gmra.mrb[24].mxu0 %v361_v12  ;;  %v1072_v12 = vpack.c.bf16 %v12705_v1, %v1025_v0  ;;  %v11906_v0 = vld [vmem:[#allocation6 + $0xe0] sm:$0xff]  }
 0x120   : > { %9985 = vmatprep.mubr.bf16.mxu0 %v362_v13  ;;  %v1073_v13 = vpack.c.bf16 %v12711_v7, %v12708_v6 }
 0x127   : > { %9986 = vmatmul.mubr.bf16.gmra.mrb[28].mxu0 %v363_v18  ;;  %v11903_v18 = vld [vmem:[#allocation6 + $0xc8] sm:$0xff]  }
 0x128   : > { %9989 = vmatprep.mubr.bf16.mxu0 %v364_v19  ;;  %v12718_v19 = vld [vmem:[%s12453_s12 + $0x32] sm:$0xff] }
 0x12f   : > { %9990 = vmatmul.mubr.bf16.gmra.mrb[32].mxu0 %v365_v24  ;;  %v12721_v24 = vld [vmem:[%s12453_s12 + $0x3a] sm:$0xff] }
 0x130   : > { %9993 = vmatprep.mubr.bf16.mxu0 %v366_v25  ;;  %v12724_v25 = vld [vmem:[%s12453_s12 + $0x42] sm:$0xff] }
 0x137   : > { %9994 = vmatmul.mubr.bf16.gmra.mrb[36].mxu0 %v367_v33  ;;  %v12727_v33 = vld [vmem:[%s12453_s12 + $0x4a] sm:$0xff] }
 0x138   : > { %9997 = vmatprep.mubr.bf16.mxu0 %v368_v34  ;;  %15170 = vst [vmem:[#allocation13_spill] sm:$0xff] %v12727_v33  ;;  %v11904_v34 = vld [vmem:[#allocation6 + $0xd0] sm:$0xff]  }
 0x13f   : > { %9998 = vmatmul.mubr.bf16.gmra.mrb[40].mxu0 %v369_v47  ;;  %v1074_v47 = vpack.c.bf16 %v12721_v24, %v12718_v19 }
 0x140   : > { %10001 = vmatprep.mubr.bf16.mxu0 %v370_v48  ;;  %v11905_v48 = vld [vmem:[#allocation6 + $0xd8] sm:$0xff]  }
 0x147   : > { %10002 = vmatmul.mubr.bf16.gmra.mrb[44].mxu0 %v371_v57  ;;  %v12740_v57 = vld [vmem:[%s12453_s12 + $0x62] sm:$0xff] }
 0x148   : > { %10021 = vmatprep.mubr.bf16.mxu0 %v1071_v58  ;;  %15173 = vst [vmem:[#allocation16_spill] sm:$0xff] %v12740_v57  ;;  %v12743_v58 = vld [vmem:[%s12453_s12 + $0x6a] sm:$0xff] }
 0x149   : > { %15174 = vst [vmem:[#allocation17_spill] sm:$0xff] %v12743_v58 }
 0x14f   : > { %10022 = vmatmul.mubr.bf16.vlgmr.msra.gmra.mrb[0].mxu0 %v1072_v12  ;;  %v1076_v12 = vpack.c.bf16 %v12737_v56, %v12734_v55  ;;  %v12759_v56 = vld [vmem:[%s12453_s12 + $0x8a] sm:$0xff]  ;;  %v12772_v55 = vld [vmem:[%s12453_s12 + $0xa2] sm:$0xff] }
 0x150   : > { %10070 = vmatpush3.bf16.msra.mxu0 %v12590_v63  ;;  %10025 = vmatprep.mubr.bf16.mxu0 %v1073_v13  ;;  %v1075_v63 = vpack.c.bf16 %v12727_v33, %v12724_v25  ;;  %v1077_v13 = vpack.c.bf16 %v12743_v58, %v12740_v57  ;;  %15178 = vst [vmem:[#allocation21_spill] sm:$0xff] %v12759_v56  ;;  %v11908_v58 = vld [vmem:[#allocation6 + $0xf0] sm:$0xff]   ;;  %15181 = vst [vmem:[#allocation24_spill] sm:$0xff] %v12772_v55 }
 0x151   : > { %10071 = vmatprep.subr.bf16.mxu0 %v11903_v18  ;;  %v12769_v57 = vld [vmem:[%s12453_s12 + $0x9a] sm:$0xff] }
 0x152   : > { %15180 = vst [vmem:[#allocation23_spill] sm:$0xff] %v12769_v57 }
 0x154   : > { %10072 = vmatpush3.bf16.msra.mxu0 %v11903_v18  ;;  %v11907_v18 = vld [vmem:[#allocation6 + $0xe8] sm:$0xff]  }
 0x155   : > { %10073 = vmatprep.subr.bf16.mxu0 %v11904_v34 }
 0x157   : > { %10026 = vmatmul.mubr.bf16.gmra.mrb[4].mxu0 %v1074_v47  ;;  %v12753_v47 = vld [vmem:[%s12453_s12 + $0x7a] sm:$0xff] }
 0x158   : > { %10029 = vmatprep.mubr.bf16.mxu0 %v1075_v63  ;;  %10074 = vmatpush3.bf16.msra.mxu0 %v11904_v34  ;;  %v12750_v34 = vld [vmem:[%s12453_s12 + $0x72] sm:$0xff]  ;;  %15176 = vst [vmem:[#allocation19_spill] sm:$0xff] %v12753_v47  ;;  %v12756_v63 = vld [vmem:[%s12453_s12 + $0x82] sm:$0xff] }
 0x159   : > { %10075 = vmatprep.subr.bf16.mxu0 %v11905_v48  ;;  %15175 = vst [vmem:[#allocation18_spill] sm:$0xff] %v12750_v34  ;;  %15177 = vst [vmem:[#allocation20_spill] sm:$0xff] %v12756_v63 }
 0x15c   : > { %10076 = vmatpush3.bf16.msra.mxu0 %v11905_v48  ;;  %v1078_v48 = vpack.c.bf16 %v12753_v47, %v12750_v34  ;;  %v12775_v47 = vld [vmem:[%s12453_s12 + $0xaa] sm:$0xff] }
 0x15d   : > { %10077 = vmatprep.subr.bf16.mxu0 %v11906_v0  ;;  %15182 = vst [vmem:[#allocation25_spill] sm:$0xff] %v12775_v47 }
 0x15f   : > { %10030 = vmatmul.mubr.bf16.gmra.mrb[8].mxu0 %v1076_v12  ;;  %v1079_v12 = vpack.c.bf16 %v12759_v56, %v12756_v63  ;;  %v12788_v56 = vld [vmem:[%s12453_s12 + $0xba] sm:$0xff]  ;;  %v12791_v63 = vld [vmem:[%s12453_s12 + $0xc2] sm:$0xff] }
 0x160   : > { %10033 = vmatprep.mubr.bf16.mxu0 %v1077_v13  ;;  %10078 = vmatpush3.bf16.msra.mxu0 %v11906_v0  ;;  %v11909_v13 = vld [vmem:[#allocation6 + $0xf8] sm:$0xff]   ;;  %v12766_v0 = vld [vmem:[%s12453_s12 + $0x92] sm:$0xff]  ;;  %15184 = vst [vmem:[#allocation27_spill] sm:$0xff] %v12788_v56  ;;  %15185 = vst [vmem:[#allocation28_spill] sm:$0xff] %v12791_v63 }
 0x161   : > { %10079 = vmatprep.subr.bf16.mxu0 %v11907_v18  ;;  %15179 = vst [vmem:[#allocation22_spill] sm:$0xff] %v12766_v0 }
 0x164   : > { %10080 = vmatpush3.bf16.msra.mxu0 %v11907_v18  ;;  %v12777_v18 = vld [vmem:[#allocation6 + $0x100] sm:$0xff]  }
 0x165   : > { %10081 = vmatprep.subr.bf16.mxu0 %v11908_v58 }
 0x167   : > { %10034 = vmatmul.mubr.bf16.gmra.mrb[12].mxu0 %v1078_v48  ;;  %v1080_v48 = vpack.c.bf16 %v12769_v57, %v12766_v0  ;;  %v12794_v57 = vld [vmem:[%s12453_s12 + $0xca] sm:$0xff] }
 0x168   : > { %10037 = vmatprep.mubr.bf16.mxu0 %v1079_v12  ;;  %10082 = vmatpush3.bf16.msra.mxu0 %v11908_v58  ;;  %v1081_v12 = vpack.c.bf16 %v12775_v47, %v12772_v55  ;;  %v12785_v58 = vld [vmem:[%s12453_s12 + $0xb2] sm:$0xff]  ;;  %15186 = vst [vmem:[#allocation29_spill] sm:$0xff] %v12794_v57  ;;  %v12807_v55 = vld [vmem:[%s12453_s12 + $0xe2] sm:$0xff]  ;;  %v12810_v0 = vld [vmem:[%s12453_s12 + $0xea] sm:$0xff] }
 0x169   : > { %10083 = vmatprep.subr.bf16.mxu0 %v11909_v13  ;;  %15183 = vst [vmem:[#allocation26_spill] sm:$0xff] %v12785_v58  ;;  %v1082_v47 = vpack.c.bf16 %v12788_v56, %v12785_v58  ;;  %15189 = vst [vmem:[#allocation32_spill] sm:$0xff] %v12807_v55  ;;  %v12826_v58 = vld [vmem:[%s12453_s12 + $0x10a] sm:$0xff] }
 0x16a   : > { %15190 = vst [vmem:[#allocation33_spill] sm:$0xff] %v12810_v0  ;;  %15194 = vst [vmem:[#allocation37_spill] sm:$0xff] %v12826_v58 }
 0x16c   : > { %10084 = vmatpush3.bf16.msra.mxu0 %v11909_v13  ;;  %v1083_v13 = vpack.c.bf16 %v12794_v57, %v12791_v63  ;;  %v1085_v57 = vpack.c.bf16 %v12810_v0, %v12807_v55  ;;  %v12823_v63 = vld [vmem:[%s12453_s12 + $0x102] sm:$0xff] }
 0x16d   : > { %10133 = vmatprep.subr.bf16.mxu0 %v12777_v18  ;;  %15193 = vst [vmem:[#allocation36_spill] sm:$0xff] %v12823_v63  ;;  %v1087_v0 = vpack.c.bf16 %v12826_v58, %v12823_v63  ;;  %v12839_v55 = vld [vmem:[%s12453_s12 + $0x122] sm:$0xff] }
 0x16e   : > { %15197 = vst [vmem:[#allocation40_spill] sm:$0xff] %v12839_v55  ;;  %v12855_v63 = vld [vmem:[%s12453_s12 + $0x142] sm:$0xff] }
 0x16f   : > { %10038 = vmatmul.mubr.bf16.gmra.mrb[16].mxu0 %v1080_v48  ;;  %v12801_v48 = vld [vmem:[%s12453_s12 + $0xd2] sm:$0xff] }
 0x170   : > { %10041 = vmatprep.mubr.bf16.mxu0 %v1081_v12  ;;  %15187 = vst [vmem:[#allocation30_spill] sm:$0xff] %v12801_v48  ;;  %v12804_v12 = vld [vmem:[%s12453_s12 + $0xda] sm:$0xff] }
 0x171   : > { %15188 = vst [vmem:[#allocation31_spill] sm:$0xff] %v12804_v12  ;;  %v1084_v56 = vpack.c.bf16 %v12804_v12, %v12801_v48  ;;  %v12842_v48 = vld [vmem:[%s12453_s12 + $0x12a] sm:$0xff] }
 0x172   : > { %15198 = vst [vmem:[#allocation41_spill] sm:$0xff] %v12842_v48  ;;  %v1089_v58 = vpack.c.bf16 %v12842_v48, %v12839_v55  ;;  %v12871_v48 = vld [vmem:[%s12453_s12 + $0x162] sm:$0xff]  ;;  %v12874_v55 = vld [vmem:[%s12453_s12 + $0x16a] sm:$0xff] }
 0x173   : > { %15202 = vst [vmem:[#allocation45_spill] sm:$0xff] %v12874_v55  ;;  %v1093_v33 = vpack.c.bf16 %v12874_v55, %v12871_v48  ;;  %v1483_v55 = vpack.c.bf16 %v12536_v37, %v12533_v36  ;;  %v1487_v36 = vpack.c.bf16 %v12569_v53, %v12566_v52  ;;  %v11915_v37 = vld [vmem:[#allocation6 + $0x128] sm:$0xff]   ;;  %v1491_v52 = vpack.c.bf16 %v12604_v4, %v12601_v3 }
 0x174   : > { %v1492_v53 = vpack.c.bf16 %v12614_v8, %v12607_v5  ;;  %v1499_v3 = vpack.c.bf16 %v12668_v28, %v12665_v27  ;;  %v1500_v4 = vpack.c.bf16 %v12678_v39, %v12671_v32  ;;  %v1501_v5 = vpack.c.bf16 %v12684_v41, %v12681_v40  ;;  %v12932_v8 = vld [vmem:[%s12453_s12 + $0x180] sm:$0xff]  ;;  %v11919_v32 = vld [vmem:[#allocation6 + $0x148] sm:$0xff]  }
 0x175   : > { %v12962_v39 = vld [vmem:[%s12453_s12 + $0x49] sm:$0xff]  ;;  %v12965_v40 = vld [vmem:[%s12453_s12 + $0x51] sm:$0xff]  ;;  %v12968_v41 = vld [vmem:[%s12453_s12 + $0x59] sm:$0xff] }
 0x177   : > { %10042 = vmatmul.mubr.bf16.gmra.mrb[20].mxu0 %v1082_v47  ;;  %v12817_v47 = vld [vmem:[%s12453_s12 + $0xf2] sm:$0xff] }
 0x178   : > { %10045 = vmatprep.mubr.bf16.mxu0 %v1083_v13  ;;  %15191 = vst [vmem:[#allocation34_spill] sm:$0xff] %v12817_v47  ;;  %v12820_v13 = vld [vmem:[%s12453_s12 + $0xfa] sm:$0xff] }
 0x179   : > { %15192 = vst [vmem:[#allocation35_spill] sm:$0xff] %v12820_v13  ;;  %v1086_v12 = vpack.c.bf16 %v12820_v13, %v12817_v47  ;;  %v12858_v47 = vld [vmem:[%s12453_s12 + $0x14a] sm:$0xff] }
 0x17a   : > { %15200 = vst [vmem:[#allocation43_spill] sm:$0xff] %v12858_v47 }
 0x17f   : > { %10046 = vmatmul.mubr.bf16.gmra.mrb[24].mxu0 %v1084_v56  ;;  %v12833_v56 = vld [vmem:[%s12453_s12 + $0x112] sm:$0xff] }
 0x180   : > { %10049 = vmatprep.mubr.bf16.mxu0 %v1085_v57  ;;  %15195 = vst [vmem:[#allocation38_spill] sm:$0xff] %v12833_v56  ;;  %v12836_v57 = vld [vmem:[%s12453_s12 + $0x11a] sm:$0xff] }
 0x181   : > { %15196 = vst [vmem:[#allocation39_spill] sm:$0xff] %v12836_v57  ;;  %v1088_v13 = vpack.c.bf16 %v12836_v57, %v12833_v56  ;;  %v1091_v57 = vpack.c.bf16 %v12858_v47, %v12855_v63  ;;  %v1481_v47 = vpack.c.bf16 %v12521_v30, %v12518_v29  ;;  %v1485_v29 = vpack.c.bf16 %v12553_v45, %v12550_v44  ;;  %v11913_v30 = vld [vmem:[#allocation6 + $0x118] sm:$0xff]  }
 0x182   : > { %v1489_v44 = vpack.c.bf16 %v12585_v61, %v12582_v60  ;;  %v11917_v45 = vld [vmem:[#allocation6 + $0x138] sm:$0xff]   ;;  %v1495_v60 = vpack.c.bf16 %v12636_v16, %v12633_v15  ;;  %v1496_v61 = vpack.c.bf16 %v12646_v20, %v12639_v17 }
 0x183   : > { %v1843_v15 = vld [vmem:[%s12453_s12 + $0x19] sm:$0xff]  ;;  %v1844_v16 = vld [vmem:[%s12453_s12 + $0x21] sm:$0xff] }
 0x184   : > { %v1891_v20 = vpack.c.bf16 %v1844_v16, %v1843_v15  ;;  %v13051_v15 = vld [vmem:[%s12453_s12 + $0xf9] sm:$0xff]  ;;  %v13054_v16 = vld [vmem:[%s12453_s12 + $0x101] sm:$0xff] }
 0x187   : > { %10050 = vmatmul.mubr.bf16.gmra.mrb[28].mxu0 %v1086_v12  ;;  %v12852_v12 = vld [vmem:[%s12453_s12 + $0x13a] sm:$0xff] }
 0x188   : > { %10053 = vmatprep.mubr.bf16.mxu0 %v1087_v0  ;;  %v12849_v0 = vld [vmem:[%s12453_s12 + $0x132] sm:$0xff]  ;;  %15199 = vst [vmem:[#allocation42_spill] sm:$0xff] %v12852_v12 }
 0x189   : > { %v1090_v34 = vpack.c.bf16 %v12852_v12, %v12849_v0  ;;  %v12881_v12 = vld [vmem:[%s12453_s12 + $0x172] sm:$0xff] }
 0x18f   : > { %10054 = vmatmul.mubr.bf16.gmra.mrb[32].mxu0 %v1088_v13  ;;  %v12865_v13 = vld [vmem:[%s12453_s12 + $0x152] sm:$0xff] }
 0x190   : > { %10057 = vmatprep.mubr.bf16.mxu0 %v1089_v58  ;;  %v12868_v58 = vld [vmem:[%s12453_s12 + $0x15a] sm:$0xff] }
 0x191   : > { %15201 = vst [vmem:[#allocation44_spill] sm:$0xff] %v12868_v58  ;;  %v1092_v56 = vpack.c.bf16 %v12868_v58, %v12865_v13  ;;  %v1482_v58 = vpack.c.bf16 %v12530_v35, %v12524_v31  ;;  %v11914_v31 = vld [vmem:[#allocation6 + $0x120] sm:$0xff]   ;;  %v1486_v35 = vpack.c.bf16 %v12563_v51, %v12556_v46  ;;  %v1490_v51 = vpack.c.bf16 %v12598_v2, %v12588_v62 }
 0x192   : > { %v11918_v46 = vld [vmem:[#allocation6 + $0x140] sm:$0xff]   ;;  %v1497_v62 = vpack.c.bf16 %v12652_v22, %v12649_v21  ;;  %v1498_v2 = vpack.c.bf16 %v12662_v26, %v12655_v23  ;;  %v12953_v23 = vld [vmem:[%s12453_s12 + $0x39] sm:$0xff] }
 0x193   : > { %v1845_v21 = vld [vmem:[%s12453_s12 + $0x29] sm:$0xff]  ;;  %v12950_v22 = vld [vmem:[%s12453_s12 + $0x31] sm:$0xff]  ;;  %v12956_v26 = vld [vmem:[%s12453_s12 + $0x41] sm:$0xff] }
 0x194   : > { %v1892_v27 = vpack.c.bf16 %v12950_v22, %v1845_v21  ;;  %v1893_v28 = vpack.c.bf16 %v12956_v26, %v12953_v23  ;;  %v13061_v21 = vld [vmem:[%s12453_s12 + $0x109] sm:$0xff] }
 0x197   : > { %10058 = vmatmul.mubr.bf16.gmra.mrb[36].mxu0 %v1090_v34  ;;  %v12884_v34 = vld [vmem:[%s12453_s12 + $0x17a] sm:$0xff] }
 0x198   : > { %10061 = vmatprep.mubr.bf16.mxu0 %v1091_v57  ;;  %15203 = vst [vmem:[#allocation46_spill] sm:$0xff] %v12884_v34  ;;  %v1094_v57 = vpack.c.bf16 %v12884_v34, %v12881_v12  ;;  %v1484_v34 = vpack.c.bf16 %v12547_v43, %v12540_v38  ;;  %v11916_v38 = vld [vmem:[#allocation6 + $0x130] sm:$0xff]   ;;  %v1488_v43 = vpack.c.bf16 %v12579_v59, %v12572_v54 }
 0x199   : > { %v1493_v54 = vpack.c.bf16 %v12620_v10, %v12617_v9  ;;  %v1494_v59 = vpack.c.bf16 %v12630_v14, %v12623_v11  ;;  %v1502_v9 = vpack.c.bf16 %v12694_v49, %v12687_v42  ;;  %v1503_v10 = vpack.c.bf16 %v12932_v8, %v12697_v50  ;;  %v12939_v11 = vld [vmem:[%s12453_s12 + $0x188] sm:$0xff]  ;;  %v12942_v14 = vld [vmem:[%s12453_s12 + $0x190] sm:$0xff]  ;;  %v11920_v49 = vld [vmem:[#allocation6 + $0x150] sm:$0xff]  }
 0x19a   : > { %v1504_v17 = vpack.c.bf16 %v12942_v14, %v12939_v11  ;;  %v12971_v42 = vld [vmem:[%s12453_s12 + $0x61] sm:$0xff]  ;;  %v1894_v50 = vpack.c.bf16 %v12965_v40, %v12962_v39 }
 0x19f   : > { %10062 = vmatmul.mubr.bf16.gmra.mrb[40].mxu0 %v1092_v56  ;;  %v11911_v56 = vld [vmem:[#allocation6 + $0x108] sm:$0xff]  }
 0x1a0   : > { %10065 = vmatprep.mubr.bf16.mxu0 %v1093_v33  ;;  %v11912_v33 = vld [vmem:[#allocation6 + $0x110] sm:$0xff]  }
 0x1a7   : > { %10066 = vmatmul.mubr.bf16.gmra.mrb[44].mxu0 %v1094_v57  ;;  %v12987_v57 = vld [vmem:[%s12453_s12 + $0x81] sm:$0xff] }
 0x1a8   : > { %10085 = vmatprep.mubr.bf16.mxu0 %v1481_v47  ;;  %v12978_v47 = vld [vmem:[%s12453_s12 + $0x69] sm:$0xff] }
 0x1af   : > { %10086 = vmatmul.mubr.bf16.vlgmr.msra.gmra.mrb[0].mxu0 %v1482_v58  ;;  %v12981_v58 = vld [vmem:[%s12453_s12 + $0x71] sm:$0xff] }
 0x1b0   : > { %10134 = vmatpush3.bf16.msra.mxu0 %v12777_v18  ;;  %10089 = vmatprep.mubr.bf16.mxu0 %v1483_v55  ;;  %v1895_v55 = vpack.c.bf16 %v12971_v42, %v12968_v41  ;;  %v11921_v18 = vld [vmem:[#allocation6 + $0x158] sm:$0xff]  }
 0x1b1   : > { %10135 = vmatprep.subr.bf16.mxu0 %v11911_v56 }
 0x1b4   : > { %10136 = vmatpush3.bf16.msra.mxu0 %v11911_v56  ;;  %v11922_v56 = vld [vmem:[#allocation6 + $0x160] sm:$0xff]  }
 0x1b5   : > { %10137 = vmatprep.subr.bf16.mxu0 %v11912_v33 }
 0x1b7   : > { %10090 = vmatmul.mubr.bf16.gmra.mrb[4].mxu0 %v1484_v34  ;;  %v12984_v34 = vld [vmem:[%s12453_s12 + $0x79] sm:$0xff] }
 0x1b8   : > { %10093 = vmatprep.mubr.bf16.mxu0 %v1485_v29  ;;  %10138 = vmatpush3.bf16.msra.mxu0 %v11912_v33  ;;  %v1896_v33 = vpack.c.bf16 %v12981_v58, %v12978_v47  ;;  %v1897_v29 = vpack.c.bf16 %v12987_v57, %v12984_v34 }
 0x1b9   : > { %10139 = vmatprep.subr.bf16.mxu0 %v11913_v30 }
 0x1bc   : > { %10140 = vmatpush3.bf16.msra.mxu0 %v11913_v30  ;;  %v11923_v30 = vld [vmem:[#allocation6 + $0x168] sm:$0xff]  }
 0x1bd   : > { %10141 = vmatprep.subr.bf16.mxu0 %v11914_v31 }
 0x1bf   : > { %10094 = vmatmul.mubr.bf16.gmra.mrb[8].mxu0 %v1486_v35  ;;  %v12997_v35 = vld [vmem:[%s12453_s12 + $0x91] sm:$0xff] }
 0x1c0   : > { %10097 = vmatprep.mubr.bf16.mxu0 %v1487_v36  ;;  %10142 = vmatpush3.bf16.msra.mxu0 %v11914_v31  ;;  %v12994_v31 = vld [vmem:[%s12453_s12 + $0x89] sm:$0xff]  ;;  %v13000_v36 = vld [vmem:[%s12453_s12 + $0x99] sm:$0xff] }
 0x1c1   : > { %10143 = vmatprep.subr.bf16.mxu0 %v11915_v37 }
 0x1c4   : > { %10144 = vmatpush3.bf16.msra.mxu0 %v11915_v37  ;;  %v13003_v37 = vld [vmem:[%s12453_s12 + $0xa1] sm:$0xff] }
 0x1c5   : > { %10145 = vmatprep.subr.bf16.mxu0 %v11916_v38 }
 0x1c7   : > { %10098 = vmatmul.mubr.bf16.gmra.mrb[12].mxu0 %v1488_v43  ;;  %v1898_v43 = vpack.c.bf16 %v12997_v35, %v12994_v31 }
 0x1c8   : > { %10101 = vmatprep.mubr.bf16.mxu0 %v1489_v44  ;;  %10146 = vmatpush3.bf16.msra.mxu0 %v11916_v38  ;;  %v11924_v38 = vld [vmem:[#allocation6 + $0x170] sm:$0xff]   ;;  %v1899_v44 = vpack.c.bf16 %v13003_v37, %v13000_v36 }
 0x1c9   : > { %10147 = vmatprep.subr.bf16.mxu0 %v11917_v45 }
 0x1cc   : > { %10148 = vmatpush3.bf16.msra.mxu0 %v11917_v45  ;;  %v11925_v45 = vld [vmem:[#allocation6 + $0x178] sm:$0xff]  }
 0x1cd   : > { %10197 = vmatprep.subr.bf16.mxu0 %v11918_v46 }
 0x1cf   : > { %10102 = vmatmul.mubr.bf16.gmra.mrb[16].mxu0 %v1490_v51  ;;  %v13013_v51 = vld [vmem:[%s12453_s12 + $0xb1] sm:$0xff] }
 0x1d0   : > { %10105 = vmatprep.mubr.bf16.mxu0 %v1491_v52  ;;  %v13016_v52 = vld [vmem:[%s12453_s12 + $0xb9] sm:$0xff] }
 0x1d7   : > { %10106 = vmatmul.mubr.bf16.gmra.mrb[20].mxu0 %v1492_v53  ;;  %v13019_v53 = vld [vmem:[%s12453_s12 + $0xc1] sm:$0xff] }
 0x1d8   : > { %10109 = vmatprep.mubr.bf16.mxu0 %v1493_v54  ;;  %v13021_v54 = vld [vmem:[#allocation6 + $0x180] sm:$0xff]  }
 0x1df   : > { %10110 = vmatmul.mubr.bf16.gmra.mrb[24].mxu0 %v1494_v59 }
 0x1e0   : > { %10113 = vmatprep.mubr.bf16.mxu0 %v1495_v60  ;;  %v1901_v60 = vpack.c.bf16 %v13019_v53, %v13016_v52 }
 0x1e7   : > { %10114 = vmatmul.mubr.bf16.gmra.mrb[28].mxu0 %v1496_v61  ;;  %v13029_v61 = vld [vmem:[%s12453_s12 + $0xc9] sm:$0xff] }
 0x1e8   : > { %10117 = vmatprep.mubr.bf16.mxu0 %v1497_v62  ;;  %v13032_v62 = vld [vmem:[%s12453_s12 + $0xd1] sm:$0xff] }
 0x1ef   : > { %10118 = vmatmul.mubr.bf16.gmra.mrb[32].mxu0 %v1498_v2  ;;  %v13035_v2 = vld [vmem:[%s12453_s12 + $0xd9] sm:$0xff] }
 0x1f0   : > { %10121 = vmatprep.mubr.bf16.mxu0 %v1499_v3  ;;  %v13038_v3 = vld [vmem:[%s12453_s12 + $0xe1] sm:$0xff] }
 0x1f7   : > { %10122 = vmatmul.mubr.bf16.gmra.mrb[36].mxu0 %v1500_v4  ;;  %v1902_v4 = vpack.c.bf16 %v13032_v62, %v13029_v61 }
 0x1f8   : > { %10125 = vmatprep.mubr.bf16.mxu0 %v1501_v5  ;;  %v1903_v5 = vpack.c.bf16 %v13038_v3, %v13035_v2 }
 0x1ff   : > { %10126 = vmatmul.mubr.bf16.gmra.mrb[40].mxu0 %v1502_v9  ;;  %v13045_v9 = vld [vmem:[%s12453_s12 + $0xe9] sm:$0xff] }
 0x200   : > { %10129 = vmatprep.mubr.bf16.mxu0 %v1503_v10  ;;  %v13048_v10 = vld [vmem:[%s12453_s12 + $0xf1] sm:$0xff] }
 0x207   : > { %10130 = vmatmul.mubr.bf16.gmra.mrb[44].mxu0 %v1504_v17  ;;  %v1904_v17 = vpack.c.bf16 %v13048_v10, %v13045_v9 }
 0x208   : > { %10149 = vmatprep.mubr.bf16.mxu0 %v1891_v20  ;;  %v1905_v20 = vpack.c.bf16 %v13054_v16, %v13051_v15 }
 0x20f   : > { %10150 = vmatmul.mubr.bf16.vlgmr.msra.gmra.mrb[0].mxu0 %v1892_v27  ;;  %v13064_v27 = vld [vmem:[%s12453_s12 + $0x111] sm:$0xff] }
 0x210   : > { %10198 = vmatpush3.bf16.msra.mxu0 %v11918_v46  ;;  %10153 = vmatprep.mubr.bf16.mxu0 %v1893_v28  ;;  %v13010_v46 = vld [vmem:[%s12453_s12 + $0xa9] sm:$0xff]  ;;  %v13067_v28 = vld [vmem:[%s12453_s12 + $0x119] sm:$0xff] }
 0x211   : > { %10199 = vmatprep.subr.bf16.mxu0 %v11919_v32  ;;  %v1900_v59 = vpack.c.bf16 %v13013_v51, %v13010_v46 }
 0x214   : > { %10200 = vmatpush3.bf16.msra.mxu0 %v11919_v32  ;;  %v13070_v32 = vld [vmem:[%s12453_s12 + $0x121] sm:$0xff] }
 0x215   : > { %10201 = vmatprep.subr.bf16.mxu0 %v11920_v49 }
 0x217   : > { %10154 = vmatmul.mubr.bf16.gmra.mrb[4].mxu0 %v1894_v50  ;;  %v1907_v50 = vpack.c.bf16 %v13070_v32, %v13067_v28 }
 0x218   : > { %10157 = vmatprep.mubr.bf16.mxu0 %v1895_v55  ;;  %10202 = vmatpush3.bf16.msra.mxu0 %v11920_v49  ;;  %v1906_v49 = vpack.c.bf16 %v13064_v27, %v13061_v21  ;;  %v13077_v55 = vld [vmem:[%s12453_s12 + $0x129] sm:$0xff] }
 0x219   : > { %10203 = vmatprep.subr.bf16.mxu0 %v11921_v18 }
 0x21c   : > { %10204 = vmatpush3.bf16.msra.mxu0 %v11921_v18  ;;  %v13080_v18 = vld [vmem:[%s12453_s12 + $0x131] sm:$0xff] }
 0x21d   : > { %10205 = vmatprep.subr.bf16.mxu0 %v11922_v56 }
 0x21f   : > { %10158 = vmatmul.mubr.bf16.gmra.mrb[8].mxu0 %v1896_v33  ;;  %v13086_v33 = vld [vmem:[%s12453_s12 + $0x141] sm:$0xff] }
 0x220   : > { %10161 = vmatprep.mubr.bf16.mxu0 %v1897_v29  ;;  %10206 = vmatpush3.bf16.msra.mxu0 %v11922_v56  ;;  %v13083_v56 = vld [vmem:[%s12453_s12 + $0x139] sm:$0xff]  ;;  %v1908_v29 = vpack.c.bf16 %v13080_v18, %v13077_v55 }
 0x221   : > { %10207 = vmatprep.subr.bf16.mxu0 %v11923_v30 }
 0x224   : > { %10208 = vmatpush3.bf16.msra.mxu0 %v11923_v30  ;;  %v1909_v30 = vpack.c.bf16 %v13086_v33, %v13083_v56 }
 0x225   : > { %10209 = vmatprep.subr.bf16.mxu0 %v11924_v38 }
 0x227   : > { %10162 = vmatmul.mubr.bf16.gmra.mrb[12].mxu0 %v1898_v43  ;;  %v13096_v43 = vld [vmem:[%s12453_s12 + $0x151] sm:$0xff] }
 0x228   : > { %10165 = vmatprep.mubr.bf16.mxu0 %v1899_v44  ;;  %10210 = vmatpush3.bf16.msra.mxu0 %v11924_v38  ;;  %v13093_v38 = vld [vmem:[%s12453_s12 + $0x149] sm:$0xff]  ;;  %v13099_v44 = vld [vmem:[%s12453_s12 + $0x159] sm:$0xff] }
 0x229   : > { %10211 = vmatprep.subr.bf16.mxu0 %v11925_v45 }
 0x22c   : > { %10212 = vmatpush3.bf16.msra.mxu0 %v11925_v45  ;;  %v13102_v45 = vld [vmem:[%s12453_s12 + $0x161] sm:$0xff] }
 0x22d   : > { %10261 = vmatprep.subr.bf16.mxu0 %v13021_v54  ;;  %15204 = vst [vmem:[#allocation47_spill] sm:$0xff] %v13102_v45 }
 0x22f   : > { %10166 = vmatmul.mubr.bf16.gmra.mrb[16].mxu0 %v1900_v59  ;;  %v1910_v59 = vpack.c.bf16 %v13096_v43, %v13093_v38 }
 0x230   : > { %10169 = vmatprep.mubr.bf16.mxu0 %v1901_v60  ;;  %v1911_v60 = vpack.c.bf16 %v13102_v45, %v13099_v44  ;;  %v15233_v45 = vld [vmem:[#allocation35_spill] sm:$0xff] }
 0x237   : > { %10170 = vmatmul.mubr.bf16.gmra.mrb[20].mxu0 %v1902_v4  ;;  %v13109_v4 = vld [vmem:[%s12453_s12 + $0x169] sm:$0xff] }
 0x238   : > { %10173 = vmatprep.mubr.bf16.mxu0 %v1903_v5  ;;  %15205 = vst [vmem:[#allocation48_spill] sm:$0xff] %v13109_v4  ;;  %v13112_v5 = vld [vmem:[%s12453_s12 + $0x171] sm:$0xff] }
 0x239   : > { %15206 = vst [vmem:[#allocation49_spill] sm:$0xff] %v13112_v5 }
 0x23f   : > { %10174 = vmatmul.mubr.bf16.gmra.mrb[24].mxu0 %v1904_v17  ;;  %v13115_v17 = vld [vmem:[%s12453_s12 + $0x179] sm:$0xff] }
 0x240   : > { %10177 = vmatprep.mubr.bf16.mxu0 %v1905_v20  ;;  %15207 = vst [vmem:[#allocation50_spill] sm:$0xff] %v13115_v17  ;;  %v13118_v20 = vld [vmem:[%s12453_s12 + $0x181] sm:$0xff] }
 0x241   : > { %15208 = vst [vmem:[#allocation51_spill] sm:$0xff] %v13118_v20 }
 0x247   : > { %10178 = vmatmul.mubr.bf16.gmra.mrb[28].mxu0 %v1906_v49  ;;  %v1912_v49 = vpack.c.bf16 %v13112_v5, %v13109_v4  ;;  %v2302_v5 = vpack.c.bf16 %v12718_v19, %v12711_v7  ;;  %v11930_v7 = vld [vmem:[#allocation6 + $0x1a0] sm:$0xff]  }
 0x248   : > { %10181 = vmatprep.mubr.bf16.mxu0 %v1907_v50  ;;  %v1913_v50 = vpack.c.bf16 %v13118_v20, %v13115_v17  ;;  %v2303_v20 = vpack.c.bf16 %v12724_v25, %v12721_v24  ;;  %v15211_v17 = vld [vmem:[#allocation13_spill] sm:$0xff]  ;;  %v15216_v24 = vld [vmem:[#allocation18_spill] sm:$0xff] }
 0x249   : > { %v15215_v19 = vld [vmem:[#allocation17_spill] sm:$0xff] }
 0x24a   : > { %v2306_v25 = vpack.c.bf16 %v15216_v24, %v15215_v19  ;;  %v11933_v19 = vld [vmem:[#allocation6 + $0x1b8] sm:$0xff]   ;;  %v15223_v24 = vld [vmem:[#allocation25_spill] sm:$0xff] }
 0x24f   : > { %10182 = vmatmul.mubr.bf16.gmra.mrb[32].mxu0 %v1908_v29  ;;  %v13125_v29 = vld [vmem:[%s12453_s12 + $0x189] sm:$0xff] }
 0x250   : > { %10185 = vmatprep.mubr.bf16.mxu0 %v1909_v30  ;;  %15209 = vst [vmem:[#allocation52_spill] sm:$0xff] %v13125_v29  ;;  %v13128_v30 = vld [vmem:[%s12453_s12 + $0x191] sm:$0xff] }
 0x251   : > { %15210 = vst [vmem:[#allocation53_spill] sm:$0xff] %v13128_v30 }
 0x257   : > { %10186 = vmatmul.mubr.bf16.gmra.mrb[36].mxu0 %v1910_v59  ;;  %v1914_v59 = vpack.c.bf16 %v13128_v30, %v13125_v29  ;;  %v15212_v30 = vld [vmem:[#allocation14_spill] sm:$0xff] }
 0x258   : > { %10189 = vmatprep.mubr.bf16.mxu0 %v1911_v60  ;;  %v2301_v60 = vpack.c.bf16 %v12708_v6, %v12705_v1  ;;  %v2304_v29 = vpack.c.bf16 %v15212_v30, %v15211_v17  ;;  %v15213_v1 = vld [vmem:[#allocation15_spill] sm:$0xff]  ;;  %v15214_v6 = vld [vmem:[#allocation16_spill] sm:$0xff]  ;;  %v11931_v17 = vld [vmem:[#allocation6 + $0x1a8] sm:$0xff]  }
 0x259   : > { %v11932_v30 = vld [vmem:[#allocation6 + $0x1b0] sm:$0xff]  }
 0x25f   : > { %10190 = vmatmul.mubr.bf16.gmra.mrb[40].mxu0 %v1912_v49  ;;  %v11927_v49 = vld [vmem:[#allocation6 + $0x188] sm:$0xff]  }
 0x260   : > { %10193 = vmatprep.mubr.bf16.mxu0 %v1913_v50  ;;  %v11928_v50 = vld [vmem:[#allocation6 + $0x190] sm:$0xff]  }
 0x267   : > { %10194 = vmatmul.mubr.bf16.gmra.mrb[44].mxu0 %v1914_v59  ;;  %v2305_v59 = vpack.c.bf16 %v15214_v6, %v15213_v1  ;;  %v15222_v6 = vld [vmem:[#allocation24_spill] sm:$0xff] }
 0x268   : > { %10213 = vmatprep.mubr.bf16.mxu0 %v2301_v60  ;;  %v11929_v60 = vld [vmem:[#allocation6 + $0x198] sm:$0xff]  }
 0x26f   : > { %10214 = vmatmul.mubr.bf16.vlgmr.msra.gmra.mrb[0].mxu0 %v2302_v5  ;;  %v15218_v5 = vld [vmem:[#allocation20_spill] sm:$0xff] }
 0x270   : > { %10262 = vmatpush3.bf16.msra.mxu0 %v13021_v54  ;;  %10217 = vmatprep.mubr.bf16.mxu0 %v2303_v20  ;;  %v15217_v54 = vld [vmem:[#allocation19_spill] sm:$0xff] }
 0x271   : > { %10263 = vmatprep.subr.bf16.mxu0 %v11927_v49  ;;  %v2307_v20 = vpack.c.bf16 %v15218_v5, %v15217_v54  ;;  %v15226_v5 = vld [vmem:[#allocation28_spill] sm:$0xff] }
 0x274   : > { %10264 = vmatpush3.bf16.msra.mxu0 %v11927_v49  ;;  %v15219_v49 = vld [vmem:[#allocation21_spill] sm:$0xff] }
 0x275   : > { %10265 = vmatprep.subr.bf16.mxu0 %v11928_v50 }
 0x277   : > { %10218 = vmatmul.mubr.bf16.gmra.mrb[4].mxu0 %v2304_v29  ;;  %v15220_v29 = vld [vmem:[#allocation22_spill] sm:$0xff] }
 0x278   : > { %10221 = vmatprep.mubr.bf16.mxu0 %v2305_v59  ;;  %10266 = vmatpush3.bf16.msra.mxu0 %v11928_v50  ;;  %v2308_v1 = vpack.c.bf16 %v15220_v29, %v15219_v49  ;;  %v15221_v50 = vld [vmem:[#allocation23_spill] sm:$0xff]  ;;  %v15227_v49 = vld [vmem:[#allocation29_spill] sm:$0xff]  ;;  %v15228_v29 = vld [vmem:[#allocation30_spill] sm:$0xff] }
 0x279   : > { %10267 = vmatprep.subr.bf16.mxu0 %v11929_v60  ;;  %v2309_v59 = vpack.c.bf16 %v15222_v6, %v15221_v50  ;;  %v15229_v50 = vld [vmem:[#allocation31_spill] sm:$0xff]  ;;  %v15230_v6 = vld [vmem:[#allocation32_spill] sm:$0xff] }
 0x27c   : > { %10268 = vmatpush3.bf16.msra.mxu0 %v11929_v60  ;;  %v11934_v60 = vld [vmem:[#allocation6 + $0x1c0] sm:$0xff]  }
 0x27d   : > { %10269 = vmatprep.subr.bf16.mxu0 %v11930_v7 }
 0x27f   : > { %10222 = vmatmul.mubr.bf16.gmra.mrb[8].mxu0 %v2306_v25  ;;  %v15224_v25 = vld [vmem:[#allocation26_spill] sm:$0xff] }
 0x280   : > { %10225 = vmatprep.mubr.bf16.mxu0 %v2307_v20  ;;  %10270 = vmatpush3.bf16.msra.mxu0 %v11930_v7  ;;  %v2310_v54 = vpack.c.bf16 %v15224_v25, %v15223_v24  ;;  %v15225_v7 = vld [vmem:[#allocation27_spill] sm:$0xff]  ;;  %v15234_v24 = vld [vmem:[#allocation36_spill] sm:$0xff] }
 0x281   : > { %10271 = vmatprep.subr.bf16.mxu0 %v11931_v17  ;;  %v2311_v20 = vpack.c.bf16 %v15226_v5, %v15225_v7  ;;  %v2315_v25 = vpack.c.bf16 %v15234_v24, %v15233_v45  ;;  %v15237_v5 = vld [vmem:[#allocation39_spill] sm:$0xff] }
 0x284   : > { %10272 = vmatpush3.bf16.msra.mxu0 %v11931_v17  ;;  %v2312_v17 = vpack.c.bf16 %v15228_v29, %v15227_v49  ;;  %v15239_v29 = vld [vmem:[#allocation41_spill] sm:$0xff] }
 0x285   : > { %10273 = vmatprep.subr.bf16.mxu0 %v11932_v30 }
 0x287   : > { %10226 = vmatmul.mubr.bf16.gmra.mrb[12].mxu0 %v2308_v1  ;;  %v2313_v1 = vpack.c.bf16 %v15230_v6, %v15229_v50  ;;  %v15240_v50 = vld [vmem:[#allocation42_spill] sm:$0xff] }
 0x288   : > { %10229 = vmatprep.mubr.bf16.mxu0 %v2309_v59  ;;  %10274 = vmatpush3.bf16.msra.mxu0 %v11932_v30  ;;  %v15231_v30 = vld [vmem:[#allocation33_spill] sm:$0xff]  ;;  %v15232_v59 = vld [vmem:[#allocation34_spill] sm:$0xff]  ;;  %v2319_v45 = vpack.c.bf16 %v12855_v63, %v15240_v50 }
 0x289   : > { %10275 = vmatprep.subr.bf16.mxu0 %v11933_v19  ;;  %v2314_v4 = vpack.c.bf16 %v15232_v59, %v15231_v30  ;;  %v13176_v59 = vld [vmem:[%s12453_s12 + $0x182] sm:$0xff]  ;;  %v15244_v63 = vld [vmem:[#allocation46_spill] sm:$0xff] }
 0x28c   : > { %10276 = vmatpush3.bf16.msra.mxu0 %v11933_v19  ;;  %v15235_v19 = vld [vmem:[#allocation37_spill] sm:$0xff] }
 0x28d   : > { %10325 = vmatprep.subr.bf16.mxu0 %v11934_v60 }
 0x28f   : > { %10230 = vmatmul.mubr.bf16.gmra.mrb[16].mxu0 %v2310_v54  ;;  %v15236_v54 = vld [vmem:[#allocation38_spill] sm:$0xff] }
 0x290   : > { %10233 = vmatprep.mubr.bf16.mxu0 %v2311_v20  ;;  %v2316_v7 = vpack.c.bf16 %v15236_v54, %v15235_v19  ;;  %v15238_v20 = vld [vmem:[#allocation40_spill] sm:$0xff]  ;;  %v13186_v19 = vld [vmem:[%s12453_s12 + $0x192] sm:$0xff] }
 0x291   : > { %v2317_v49 = vpack.c.bf16 %v15238_v20, %v15237_v5  ;;  %v2664_v54 = vld [vmem:[%s12453_s12 + $0x38] sm:$0xff]  ;;  %v2666_v20 = vld [vmem:[%s12453_s12 + $0x48] sm:$0xff] }
 0x297   : > { %10234 = vmatmul.mubr.bf16.gmra.mrb[20].mxu0 %v2312_v17  ;;  %v2318_v17 = vpack.c.bf16 %v12849_v0, %v15239_v29  ;;  %v15243_v0 = vld [vmem:[#allocation45_spill] sm:$0xff]  ;;  %v2668_v29 = vld [vmem:[%s12453_s12 + $0x58] sm:$0xff] }
 0x298   : > { %10237 = vmatprep.mubr.bf16.mxu0 %v2313_v1  ;;  %v15242_v1 = vld [vmem:[#allocation44_spill] sm:$0xff]  ;;  %v2322_v24 = vpack.c.bf16 %v12881_v12, %v15243_v0  ;;  %v11936_v0 = vld [vmem:[#allocation6 + $0x1d0] sm:$0xff]  }
 0x299   : > { %v2321_v30 = vpack.c.bf16 %v12871_v48, %v15242_v1  ;;  %v2663_v48 = vld [vmem:[%s12453_s12 + $0x30] sm:$0xff]  ;;  %v2665_v12 = vld [vmem:[%s12453_s12 + $0x40] sm:$0xff] }
 0x29a   : > { %v2711_v5 = vpack.c.bf16 %v2664_v54, %v2663_v48  ;;  %v2671_v1 = vld [vmem:[%s12453_s12 + $0x70] sm:$0xff]  ;;  %v2674_v48 = vld [vmem:[%s12453_s12 + $0x88] sm:$0xff] }
 0x29b   : > { %v2675_v54 = vld [vmem:[%s12453_s12 + $0x90] sm:$0xff] }
 0x29f   : > { %10238 = vmatmul.mubr.bf16.gmra.mrb[24].mxu0 %v2314_v4  ;;  %v15241_v4 = vld [vmem:[#allocation43_spill] sm:$0xff] }
 0x2a0   : > { %10241 = vmatprep.mubr.bf16.mxu0 %v2315_v25  ;;  %v2320_v6 = vpack.c.bf16 %v12865_v13, %v15241_v4  ;;  %v2323_v25 = vpack.c.bf16 %v13176_v59, %v15244_v63  ;;  %v13183_v13 = vld [vmem:[%s12453_s12 + $0x18a] sm:$0xff]  ;;  %v2669_v4 = vld [vmem:[%s12453_s12 + $0x60] sm:$0xff] }
 0x2a7   : > { %10242 = vmatmul.mubr.bf16.gmra.mrb[28].mxu0 %v2316_v7  ;;  %v2324_v7 = vpack.c.bf16 %v13186_v19, %v13183_v13 }
 0x2a8   : > { %10245 = vmatprep.mubr.bf16.mxu0 %v2317_v49  ;;  %v2667_v49 = vld [vmem:[%s12453_s12 + $0x50] sm:$0xff] }
 0x2a9   : > { %v2713_v50 = vpack.c.bf16 %v2668_v29, %v2667_v49  ;;  %v11939_v49 = vld [vmem:[#allocation6 + $0x1e8] sm:$0xff]   ;;  %v2677_v29 = vld [vmem:[%s12453_s12 + $0xa0] sm:$0xff] }
 0x2af   : > { %10246 = vmatmul.mubr.bf16.gmra.mrb[32].mxu0 %v2318_v17  ;;  %v2712_v17 = vpack.c.bf16 %v2666_v20, %v2665_v12 }
 0x2b0   : > { %10249 = vmatprep.mubr.bf16.mxu0 %v2319_v45  ;;  %v11935_v45 = vld [vmem:[#allocation6 + $0x1c8] sm:$0xff]  }
 0x2b7   : > { %10250 = vmatmul.mubr.bf16.gmra.mrb[36].mxu0 %v2320_v6  ;;  %v2670_v6 = vld [vmem:[%s12453_s12 + $0x68] sm:$0xff] }
 0x2b8   : > { %10253 = vmatprep.mubr.bf16.mxu0 %v2321_v30  ;;  %v2672_v30 = vld [vmem:[%s12453_s12 + $0x78] sm:$0xff] }
 0x2b9   : > { %v2715_v63 = vpack.c.bf16 %v2672_v30, %v2671_v1  ;;  %v11941_v30 = vld [vmem:[#allocation6 + $0x1f8] sm:$0xff]  }
 0x2bf   : > { %10254 = vmatmul.mubr.bf16.gmra.mrb[40].mxu0 %v2322_v24  ;;  %v2714_v24 = vpack.c.bf16 %v2670_v6, %v2669_v4  ;;  %v11940_v4 = vld [vmem:[#allocation6 + $0x1f0] sm:$0xff]  }
 0x2c0   : > { %10257 = vmatprep.mubr.bf16.mxu0 %v2323_v25  ;;  %v11937_v25 = vld [vmem:[#allocation6 + $0x1d8] sm:$0xff]  }
 0x2c7   : > { %10258 = vmatmul.mubr.bf16.gmra.mrb[44].mxu0 %v2324_v7  ;;  %v2676_v7 = vld [vmem:[%s12453_s12 + $0x98] sm:$0xff] }
 0x2c8   : > { %10277 = vmatprep.mubr.bf16.mxu0 %v2711_v5  ;;  %v11938_v5 = vld [vmem:[#allocation6 + $0x1e0] sm:$0xff]   ;;  %v2717_v20 = vpack.c.bf16 %v2676_v7, %v2675_v54  ;;  %v2685_v7 = vld [vmem:[%s12453_s12 + $0xe0] sm:$0xff] }
 0x2cf   : > { %10278 = vmatmul.mubr.bf16.vlgmr.msra.gmra.mrb[0].mxu0 %v2712_v17  ;;  %v2678_v17 = vld [vmem:[%s12453_s12 + $0xa8] sm:$0xff] }
 0x2d0   : > { %10326 = vmatpush3.bf16.msra.mxu0 %v11934_v60  ;;  %10281 = vmatprep.mubr.bf16.mxu0 %v2713_v50  ;;  %v2673_v60 = vld [vmem:[%s12453_s12 + $0x80] sm:$0xff]  ;;  %v2679_v50 = vld [vmem:[%s12453_s12 + $0xb0] sm:$0xff]  ;;  %v2718_v6 = vpack.c.bf16 %v2678_v17, %v2677_v29 }
 0x2d1   : > { %10327 = vmatprep.subr.bf16.mxu0 %v11935_v45  ;;  %v2716_v12 = vpack.c.bf16 %v2674_v48, %v2673_v60  ;;  %v13212_v60 = vld [vmem:[#allocation6 + $0x200] sm:$0xff]   ;;  %v2689_v17 = vld [vmem:[%s12453_s12 + $0x100] sm:$0xff] }
 0x2d4   : > { %10328 = vmatpush3.bf16.msra.mxu0 %v11935_v45  ;;  %v2680_v45 = vld [vmem:[%s12453_s12 + $0xb8] sm:$0xff] }
 0x2d5   : > { %10329 = vmatprep.subr.bf16.mxu0 %v11936_v0  ;;  %v2719_v1 = vpack.c.bf16 %v2680_v45, %v2679_v50  ;;  %v2690_v50 = vld [vmem:[%s12453_s12 + $0x108] sm:$0xff]  ;;  %v2691_v45 = vld [vmem:[%s12453_s12 + $0x110] sm:$0xff] }
 0x2d7   : > { %10282 = vmatmul.mubr.bf16.gmra.mrb[4].mxu0 %v2714_v24  ;;  %v2682_v24 = vld [vmem:[%s12453_s12 + $0xc8] sm:$0xff] }
 0x2d8   : > { %10285 = vmatprep.mubr.bf16.mxu0 %v2715_v63  ;;  %10330 = vmatpush3.bf16.msra.mxu0 %v11936_v0  ;;  %v2681_v0 = vld [vmem:[%s12453_s12 + $0xc0] sm:$0xff]  ;;  %v2683_v63 = vld [vmem:[%s12453_s12 + $0xd0] sm:$0xff] }
 0x2d9   : > { %10331 = vmatprep.subr.bf16.mxu0 %v11937_v25  ;;  %v2720_v48 = vpack.c.bf16 %v2682_v24, %v2681_v0  ;;  %v2694_v0 = vld [vmem:[%s12453_s12 + $0x128] sm:$0xff]  ;;  %v2695_v24 = vld [vmem:[%s12453_s12 + $0x130] sm:$0xff] }
 0x2dc   : > { %10332 = vmatpush3.bf16.msra.mxu0 %v11937_v25  ;;  %v2684_v25 = vld [vmem:[%s12453_s12 + $0xd8] sm:$0xff] }
 0x2dd   : > { %10333 = vmatprep.subr.bf16.mxu0 %v11938_v5  ;;  %v2721_v54 = vpack.c.bf16 %v2684_v25, %v2683_v63  ;;  %v2696_v63 = vld [vmem:[%s12453_s12 + $0x138] sm:$0xff] }
 0x2df   : > { %10286 = vmatmul.mubr.bf16.gmra.mrb[8].mxu0 %v2716_v12  ;;  %v2687_v12 = vld [vmem:[%s12453_s12 + $0xf0] sm:$0xff] }
 0x2e0   : > { %10289 = vmatprep.mubr.bf16.mxu0 %v2717_v20  ;;  %10334 = vmatpush3.bf16.msra.mxu0 %v11938_v5  ;;  %v2686_v5 = vld [vmem:[%s12453_s12 + $0xe8] sm:$0xff]  ;;  %v2688_v20 = vld [vmem:[%s12453_s12 + $0xf8] sm:$0xff] }
 0x2e1   : > { %10335 = vmatprep.subr.bf16.mxu0 %v11939_v49  ;;  %v2723_v29 = vpack.c.bf16 %v2688_v20, %v2687_v12  ;;  %v12238_v12 = vmov 0   ;;  %v3998_v20 = vld [vmem:[%s15016_s5 + $0x10] sm:$0xff] }
 0x2e2   : > { %11876 = vset.pattern.permute.xlu0 %v12238_v12  ;;  %4332 = vst [vmem:[#allocation2] sm:$0xff] %v12238_v12  ;;  %4333 = vst [vmem:[#allocation2 + $0x8] sm:$0xff] %v12238_v12  ;;  %11877 = vset.pattern.permute.xlu1 %v12238_v12 }
 0x2e3   : > { %4334 = vst [vmem:[#allocation2 + $0x10] sm:$0xff] %v12238_v12  ;;  %4383 = vst [vmem:[#allocation2 + $0xd8] sm:$0xff] %v12238_v12  ;;  %4056 = vperm.xlu1 %11877, %v3998_v20   ;;  %v2708_v20 = vld [vmem:[%s12453_s12 + $0x198] sm:$0xff] }
 0x2e4   : > { %10336 = vmatpush3.bf16.msra.mxu0 %v11939_v49  ;;  %v2722_v49 = vpack.c.bf16 %v2686_v5, %v2685_v7  ;;  %v2697_v7 = vld [vmem:[%s12453_s12 + $0x140] sm:$0xff]  ;;  %v2698_v5 = vld [vmem:[%s12453_s12 + $0x148] sm:$0xff]  ;;  %4384 = vst [vmem:[#allocation2 + $0xe0] sm:$0xff] %v12238_v12 }
 0x2e5   : > { %10337 = vmatprep.subr.bf16.mxu0 %v11940_v4 }
 0x2e7   : > { %10290 = vmatmul.mubr.bf16.gmra.mrb[12].mxu0 %v2718_v6  ;;  %v2724_v6 = vpack.c.bf16 %v2690_v50, %v2689_v17  ;;  %v3997_v17 = vld [vmem:[%s15016_s5 + $0x8] sm:$0xff]  ;;  %v2728_v50 = vpack.c.bf16 %v2698_v5, %v2697_v7  ;;  %v4003_v7 = vld [vmem:[%s15016_s5 + $0x38] sm:$0xff]  ;;  %v4004_v5 = vld [vmem:[%s15016_s5 + $0x40] sm:$0xff] }
 0x2e8   : > { %10293 = vmatprep.mubr.bf16.mxu0 %v2719_v1  ;;  %10338 = vmatpush3.bf16.msra.mxu0 %v11940_v4  ;;  %v2692_v4 = vld [vmem:[%s12453_s12 + $0x118] sm:$0xff] }
 0x2e9   : > { %10339 = vmatprep.subr.bf16.mxu0 %v11941_v30  ;;  %v2725_v1 = vpack.c.bf16 %v2692_v4, %v2691_v45  ;;  %v3999_v4 = vld [vmem:[%s15016_s5 + $0x18] sm:$0xff] }
 0x2ea   : > { %4061 = vperm.xlu1 %11877, %v3999_v4   ;;  %v4008_v4 = vld [vmem:[%s15016_s5 + $0x60] sm:$0xff] }
 0x2ec   : > { %10340 = vmatpush3.bf16.msra.mxu0 %v11941_v30  ;;  %v2693_v30 = vld [vmem:[%s12453_s12 + $0x120] sm:$0xff] }
 0x2ed   : > { %10389 = vmatprep.subr.bf16.mxu0 %v13212_v60  ;;  %v2726_v25 = vpack.c.bf16 %v2694_v0, %v2693_v30  ;;  %v2702_v30 = vld [vmem:[%s12453_s12 + $0x168] sm:$0xff]  ;;  %v2703_v0 = vld [vmem:[%s12453_s12 + $0x170] sm:$0xff] }
 0x2ef   : > { %10294 = vmatmul.mubr.bf16.gmra.mrb[16].mxu0 %v2720_v48  ;;  %v2727_v48 = vpack.c.bf16 %v2696_v63, %v2695_v24  ;;  %v2704_v24 = vld [vmem:[%s12453_s12 + $0x178] sm:$0xff] }
 0x2f0   : > { %10297 = vmatprep.mubr.bf16.mxu0 %v2721_v54  ;;  %v3996_v54 = vld [vmem:[%s15016_s5] sm:$0xff]  ;;  %v4001_v63 = vld [vmem:[%s15016_s5 + $0x28] sm:$0xff] }
 0x2f1   : > { %4046 = vperm.xlu0 %11876, %v3996_v54   ;;  %v2731_v54 = vpack.c.bf16 %v2704_v24, %v2703_v0  ;;  %4071 = vperm.xlu1 %11877, %v4001_v63   ;;  %v4011_v0 = vld [vmem:[%s15016_s5 + $0x78] sm:$0xff]  ;;  %v4012_v24 = vld [vmem:[%s15016_s5 + $0x80] sm:$0xff]  ;;  %v4013_v63 = vld [vmem:[%s15016_s5 + $0x88] sm:$0xff] }
 0x2f5   : > { %4051 = vperm.xlu0 %11876, %v3997_v17   ;;  %4081 = vperm.xlu1 %11877, %v4003_v7   ;;  %v2732_v17 = vpack.c.bf16 %v12939_v11, %v12932_v8  ;;  %v4009_v8 = vld [vmem:[%s15016_s5 + $0x68] sm:$0xff]  ;;  %v4010_v11 = vld [vmem:[%s15016_s5 + $0x70] sm:$0xff]  ;;  %v4016_v7 = vld [vmem:[%s15016_s5 + $0xa0] sm:$0xff] }
 0x2f7   : > { %10298 = vmatmul.mubr.bf16.gmra.mrb[20].mxu0 %v2722_v49  ;;  %v2699_v49 = vld [vmem:[%s12453_s12 + $0x150] sm:$0xff] }
 0x2f8   : > { %10301 = vmatprep.mubr.bf16.mxu0 %v2723_v29  ;;  %v2700_v29 = vld [vmem:[%s12453_s12 + $0x158] sm:$0xff] }
 0x2f9   : > { %v2729_v45 = vpack.c.bf16 %v2700_v29, %v2699_v49  ;;  %v4005_v49 = vld [vmem:[%s15016_s5 + $0x48] sm:$0xff]  ;;  %v4006_v29 = vld [vmem:[%s15016_s5 + $0x50] sm:$0xff] }
 0x2fa   : > { %4091 = vperm.xlu1 %11877, %v4005_v49   ;;  %v4022_v49 = vld [vmem:[%s15016_s5 + $0xd0] sm:$0xff] }
 0x2ff   : > { %10302 = vmatmul.mubr.bf16.gmra.mrb[24].mxu0 %v2724_v6  ;;  %v4000_v6 = vld [vmem:[%s15016_s5 + $0x20] sm:$0xff] }
 0x300   : > { %10305 = vmatprep.mubr.bf16.mxu0 %v2725_v1  ;;  %v2701_v1 = vld [vmem:[%s12453_s12 + $0x160] sm:$0xff]  ;;  %4066 = vperm.xlu0 %11876, %v4000_v6  }
 0x301   : > { %v2709_v6 = vld [vmem:[%s12453_s12 + $0x1a0] sm:$0xff] }
 0x307   : > { %10306 = vmatmul.mubr.bf16.gmra.mrb[28].mxu0 %v2726_v25  ;;  %v4002_v25 = vld [vmem:[%s15016_s5 + $0x30] sm:$0xff] }
 0x308   : > { %10309 = vmatprep.mubr.bf16.mxu0 %v2727_v48  ;;  %v2730_v48 = vpack.c.bf16 %v2702_v30, %v2701_v1  ;;  %4076 = vperm.xlu0 %11876, %v4002_v25   ;;  %v2710_v1 = vld [vmem:[%s12453_s12 + $0x1a8] sm:$0xff]  ;;  %v3121_v30 = vpack.c.bf16 %v12953_v23, %v12950_v22  ;;  %v4014_v22 = vld [vmem:[%s15016_s5 + $0x90] sm:$0xff]  ;;  %v3122_v23 = vpack.c.bf16 %v12962_v39, %v12956_v26  ;;  %v4017_v39 = vld [vmem:[%s15016_s5 + $0xa8] sm:$0xff] }
 0x309   : > { %v3123_v25 = vpack.c.bf16 %v12968_v41, %v12965_v40  ;;  %v11944_v26 = vld [vmem:[#allocation6 + $0x210] sm:$0xff]   ;;  %v3124_v40 = vpack.c.bf16 %v12978_v47, %v12971_v42  ;;  %v4020_v42 = vld [vmem:[%s15016_s5 + $0xc0] sm:$0xff] }
 0x30a   : > { %v4018_v41 = vld [vmem:[%s15016_s5 + $0xb0] sm:$0xff]  ;;  %v11946_v47 = vld [vmem:[#allocation6 + $0x220] sm:$0xff]  }
 0x30c   : > { %4086 = vperm.xlu0 %11876, %v4004_v5   ;;  %v11945_v5 = vld [vmem:[#allocation6 + $0x218] sm:$0xff]  }
 0x30f   : > { %10310 = vmatmul.mubr.bf16.gmra.mrb[32].mxu0 %v2728_v50  ;;  %v2733_v50 = vpack.c.bf16 %v2708_v20, %v12942_v14  ;;  %v2734_v14 = vpack.c.bf16 %v2710_v1, %v2709_v6  ;;  %v4019_v20 = vld [vmem:[%s15016_s5 + $0xb8] sm:$0xff] }
 0x310   : > { %10313 = vmatprep.mubr.bf16.mxu0 %v2729_v45  ;;  %4096 = vperm.xlu0 %11876, %v4006_v29   ;;  %v4007_v45 = vld [vmem:[%s15016_s5 + $0x58] sm:$0xff]  ;;  %v3127_v29 = vpack.c.bf16 %v13000_v36, %v12997_v35  ;;  %v4025_v35 = vld [vmem:[%s15016_s5 + $0xe8] sm:$0xff]  ;;  %v3128_v36 = vpack.c.bf16 %v13010_v46, %v13003_v37  ;;  %v4028_v37 = vld [vmem:[%s15016_s5 + $0x100] sm:$0xff] }
 0x311   : > { %4101 = vperm.xlu1 %11877, %v4007_v45   ;;  %v4026_v45 = vld [vmem:[%s15016_s5 + $0xf0] sm:$0xff]  ;;  %v11949_v6 = vld [vmem:[#allocation6 + $0x238] sm:$0xff]   ;;  %v4029_v46 = vld [vmem:[%s15016_s5 + $0x108] sm:$0xff] }
 0x312   : > { %v4027_v1 = vld [vmem:[%s15016_s5 + $0xf8] sm:$0xff] }
 0x314   : > { %4106 = vperm.xlu0 %11876, %v4008_v4   ;;  %v3129_v4 = vpack.c.bf16 %v13016_v52, %v13013_v51  ;;  %v3130_v51 = vpack.c.bf16 %v13029_v61, %v13019_v53  ;;  %v4030_v52 = vld [vmem:[%s15016_s5 + $0x110] sm:$0xff]  ;;  %v4033_v53 = vld [vmem:[%s15016_s5 + $0x128] sm:$0xff]  ;;  %v3132_v61 = vpack.c.bf16 %v13045_v9, %v13038_v3  ;;  %v3134_v9 = vpack.c.bf16 %v13061_v21, %v13054_v16 }
 0x315   : > { %4111 = vperm.xlu1 %11877, %v4009_v8   ;;  %v3131_v8 = vpack.c.bf16 %v13035_v2, %v13032_v62  ;;  %v4034_v62 = vld [vmem:[%s15016_s5 + $0x130] sm:$0xff]  ;;  %v3133_v2 = vpack.c.bf16 %v13051_v15, %v13048_v10  ;;  %v4037_v3 = vld [vmem:[%s15016_s5 + $0x148] sm:$0xff]  ;;  %v3135_v15 = vpack.c.bf16 %v13067_v28, %v13064_v27  ;;  %v3136_v21 = vpack.c.bf16 %v13077_v55, %v13070_v32 }
 0x316   : > { %v4038_v10 = vld [vmem:[%s15016_s5 + $0x150] sm:$0xff]  ;;  %v4041_v16 = vld [vmem:[%s15016_s5 + $0x168] sm:$0xff]  ;;  %v3137_v28 = vpack.c.bf16 %v13083_v56, %v13080_v18  ;;  %v3138_v32 = vpack.c.bf16 %v13093_v38, %v13086_v33  ;;  %v3139_v18 = vpack.c.bf16 %v13099_v44, %v13096_v43  ;;  %v15250_v44 = vld [vmem:[#allocation52_spill] sm:$0xff] }
 0x317   : > { %10314 = vmatmul.mubr.bf16.gmra.mrb[36].mxu0 %v2730_v48  ;;  %v11943_v48 = vld [vmem:[#allocation6 + $0x208] sm:$0xff]   ;;  %v4042_v27 = vld [vmem:[%s15016_s5 + $0x170] sm:$0xff] }
 0x318   : > { %10317 = vmatprep.mubr.bf16.mxu0 %v2731_v54  ;;  %4116 = vperm.xlu0 %11876, %v4010_v11   ;;  %v4015_v54 = vld [vmem:[%s15016_s5 + $0x98] sm:$0xff]  ;;  %v11952_v55 = vld [vmem:[#allocation8 + $0x50] sm:$0xff]  }
 0x319   : > { %4121 = vperm.xlu1 %11877, %v4011_v0   ;;  %v4031_v11 = vld [vmem:[%s15016_s5 + $0x118] sm:$0xff]  ;;  %v4036_v0 = vld [vmem:[%s15016_s5 + $0x140] sm:$0xff]  ;;  %v15245_v56 = vld [vmem:[#allocation47_spill] sm:$0xff] }
 0x31a   : > { %v3118_v38 = vld [vmem:[%s12453_s12 + $0x199] sm:$0xff] }
 0x31b   : > { %v15249_v43 = vld [vmem:[#allocation51_spill] sm:$0xff] }
 0x31c   : > { %4126 = vperm.xlu0 %11876, %v4012_v24   ;;  %v4039_v24 = vld [vmem:[%s15016_s5 + $0x158] sm:$0xff] }
 0x31d   : > { %4131 = vperm.xlu1 %11877, %v4013_v63   ;;  %v4040_v63 = vld [vmem:[%s15016_s5 + $0x160] sm:$0xff] }
 0x31f   : > { %10318 = vmatmul.mubr.bf16.gmra.mrb[40].mxu0 %v2732_v17  ;;  %v11947_v17 = vld [vmem:[#allocation6 + $0x228] sm:$0xff]  }
 0x320   : > { %10321 = vmatprep.mubr.bf16.mxu0 %v2733_v50  ;;  %4136 = vperm.xlu0 %11876, %v4014_v22   ;;  %v4023_v50 = vld [vmem:[%s15016_s5 + $0xd8] sm:$0xff] }
 0x321   : > { %4141 = vperm.xlu1 %11877, %v4015_v54   ;;  %v4043_v22 = vld [vmem:[%s15016_s5 + $0x178] sm:$0xff] }
 0x324   : > { %4146 = vperm.xlu0 %11876, %v4016_v7   ;;  %v15247_v7 = vld [vmem:[#allocation49_spill] sm:$0xff] }
 0x325   : > { %4151 = vperm.xlu1 %11877, %v4017_v39   ;;  %v3142_v39 = vpack.c.bf16 %v15250_v44, %v15249_v43  ;;  %v3518_v43 = vld [vmem:[%s12453_s12 + $0x14a] sm:$0xff]  ;;  %v3519_v44 = vld [vmem:[%s12453_s12 + $0x152] sm:$0xff] }
 0x327   : > { %10322 = vmatmul.mubr.bf16.gmra.mrb[44].mxu0 %v2734_v14  ;;  %v4032_v14 = vld [vmem:[%s15016_s5 + $0x120] sm:$0xff] }
 0x328   : > { %10341 = vmatprep.mubr.bf16.mxu0 %v3121_v30  ;;  %4156 = vperm.xlu0 %11876, %v4018_v41   ;;  %v4035_v30 = vld [vmem:[%s15016_s5 + $0x138] sm:$0xff] }
 0x329   : > { %4161 = vperm.xlu1 %11877, %v4019_v20   ;;  %v3483_v20 = vld [vmem:[%s12453_s12 + $0x32] sm:$0xff] }
 0x32c   : > { %4166 = vperm.xlu0 %11876, %v4020_v42   ;;  %v3484_v42 = vld [vmem:[%s12453_s12 + $0x3a] sm:$0xff] }
 0x32f   : > { %10342 = vmatmul.mubr.bf16.vlgmr.msra.gmra.mrb[0].mxu0 %v3122_v23  ;;  %v11950_v23 = vld [vmem:[#allocation8 + $0x40] sm:$0xff]  }
 0x330   : > { %10390 = vmatpush3.bf16.msra.mxu0 %v13212_v60  ;;  %10345 = vmatprep.mubr.bf16.mxu0 %v3123_v25  ;;  %v3125_v60 = vpack.c.bf16 %v12984_v34, %v12981_v58  ;;  %v4021_v58 = vld [vmem:[%s15016_s5 + $0xc8] sm:$0xff]  ;;  %v3126_v34 = vpack.c.bf16 %v12994_v31, %v12987_v57  ;;  %v4024_v57 = vld [vmem:[%s15016_s5 + $0xe0] sm:$0xff]  ;;  %v11948_v31 = vld [vmem:[#allocation6 + $0x230] sm:$0xff]  }
 0x331   : > { %10391 = vmatprep.subr.bf16.mxu0 %v11943_v48  ;;  %4171 = vperm.xlu1 %11877, %v4021_v58   ;;  %v11951_v25 = vld [vmem:[#allocation8 + $0x48] sm:$0xff]   ;;  %v3531_v58 = vpack.c.bf16 %v3484_v42, %v3483_v20 }
 0x332   : > { %4176 = vperm.xlu0 %11876, %v4022_v49   ;;  %10453 = vmatprep.subr.bf16.mxu1 %v11950_v23  ;;  %v3486_v49 = vld [vmem:[%s12453_s12 + $0x4a] sm:$0xff]  ;;  %v3523_v20 = vld [vmem:[%s12453_s12 + $0x172] sm:$0xff]  ;;  %v3524_v42 = vld [vmem:[%s12453_s12 + $0x17a] sm:$0xff] }
 0x333   : > { %10454 = vmatpush3.bf16.msra.mxu1 %v11950_v23  ;;  %v3510_v23 = vld [vmem:[%s12453_s12 + $0x10a] sm:$0xff] }
 0x334   : > { %10392 = vmatpush3.bf16.msra.mxu0 %v11943_v48  ;;  %10455 = vmatprep.subr.bf16.mxu1 %v11951_v25  ;;  %v15246_v48 = vld [vmem:[#allocation48_spill] sm:$0xff] }
 0x335   : > { %10393 = vmatprep.subr.bf16.mxu0 %v11944_v26  ;;  %4181 = vperm.xlu1 %11877, %v4023_v50   ;;  %v3140_v54 = vpack.c.bf16 %v15246_v48, %v15245_v56  ;;  %v3513_v56 = vld [vmem:[%s12453_s12 + $0x122] sm:$0xff]  ;;  %v3514_v48 = vld [vmem:[%s12453_s12 + $0x12a] sm:$0xff] }
 0x336   : > { %4186 = vperm.xlu0 %11876, %v4024_v57  }
 0x337   : > { %10346 = vmatmul.mubr.bf16.gmra.mrb[4].mxu0 %v3124_v40  ;;  %10456 = vmatpush3.bf16.msra.mxu1 %v11951_v25  ;;  %v15251_v40 = vld [vmem:[#allocation53_spill] sm:$0xff] }
 0x338   : > { %10349 = vmatprep.mubr.bf16.mxu0 %v3125_v60  ;;  %10394 = vmatpush3.bf16.msra.mxu0 %v11944_v26  ;;  %v15248_v26 = vld [vmem:[#allocation50_spill] sm:$0xff]  ;;  %v3143_v41 = vpack.c.bf16 %v3118_v38, %v15251_v40  ;;  %v3119_v60 = vld [vmem:[%s12453_s12 + $0x1a1] sm:$0xff] }
 0x339   : > { %10395 = vmatprep.subr.bf16.mxu0 %v11945_v5  ;;  %4191 = vperm.xlu1 %11877, %v4025_v35   ;;  %v3141_v33 = vpack.c.bf16 %v15248_v26, %v15247_v7  ;;  %v3490_v35 = vld [vmem:[%s12453_s12 + $0x6a] sm:$0xff]  ;;  %v3511_v25 = vld [vmem:[%s12453_s12 + $0x112] sm:$0xff]  ;;  %v3516_v7 = vld [vmem:[%s12453_s12 + $0x13a] sm:$0xff]  ;;  %v3546_v26 = vpack.c.bf16 %v3514_v48, %v3513_v56 }
 0x33a   : > { %4196 = vperm.xlu0 %11876, %v4026_v45   ;;  %10457 = vmatprep.subr.bf16.mxu1 %v11952_v55  ;;  %v3492_v45 = vld [vmem:[%s12453_s12 + $0x7a] sm:$0xff]  ;;  %v3517_v38 = vld [vmem:[%s12453_s12 + $0x142] sm:$0xff] }
 0x33b   : > { %10458 = vmatpush3.bf16.msra.mxu1 %v11952_v55  ;;  %v3548_v40 = vpack.c.bf16 %v3518_v43, %v3517_v38 }
 0x33c   : > { %10396 = vmatpush3.bf16.msra.mxu0 %v11945_v5  ;;  %v3120_v5 = vld [vmem:[%s12453_s12 + $0x1a9] sm:$0xff] }
 0x33d   : > { %10397 = vmatprep.subr.bf16.mxu0 %v11946_v47  ;;  %4201 = vperm.xlu1 %11877, %v4027_v1   ;;  %v3493_v1 = vld [vmem:[%s12453_s12 + $0x82] sm:$0xff] }
 0x33e   : > { %4206 = vperm.xlu0 %11876, %v4028_v37   ;;  %v3494_v37 = vld [vmem:[%s12453_s12 + $0x8a] sm:$0xff] }
 0x33f   : > { %10350 = vmatmul.mubr.bf16.gmra.mrb[8].mxu0 %v3126_v34  ;;  %v3485_v34 = vld [vmem:[%s12453_s12 + $0x42] sm:$0xff] }
 0x340   : > { %10353 = vmatprep.mubr.bf16.mxu0 %v3127_v29  ;;  %10398 = vmatpush3.bf16.msra.mxu0 %v11946_v47  ;;  %v3144_v47 = vpack.c.bf16 %v3120_v5, %v3119_v60  ;;  %v3487_v29 = vld [vmem:[%s12453_s12 + $0x52] sm:$0xff]  ;;  %v3532_v50 = vpack.c.bf16 %v3486_v49, %v3485_v34  ;;  %v3521_v60 = vld [vmem:[%s12453_s12 + $0x162] sm:$0xff]  ;;  %v3522_v5 = vld [vmem:[%s12453_s12 + $0x16a] sm:$0xff]  ;;  %v3552_v49 = vpack.c.bf16 %v13183_v13, %v13176_v59 }
 0x341   : > { %10399 = vmatprep.subr.bf16.mxu0 %v11947_v17  ;;  %4211 = vperm.xlu1 %11877, %v4029_v46   ;;  %v3495_v46 = vld [vmem:[%s12453_s12 + $0x92] sm:$0xff]  ;;  %v3528_v34 = vld [vmem:[%s12453_s12 + $0x19a] sm:$0xff] }
 0x342   : > { %4216 = vperm.xlu0 %11876, %v4030_v52   ;;  %v3536_v52 = vpack.c.bf16 %v3494_v37, %v3493_v1  ;;  %v11957_v59 = vld [vmem:[#allocation8 + $0x78] sm:$0xff]   ;;  %v4427_v13 = vld [vmem:[#allocation2 + $0x8] sm:$0xf0]  ;;  %v5367_v1 = vrot.slane %v12238_v12, 5 }
 0x344   : > { %10400 = vmatpush3.bf16.msra.mxu0 %v11947_v17  ;;  %v3488_v17 = vld [vmem:[%s12453_s12 + $0x5a] sm:$0xff] }
 0x345   : > { %10401 = vmatprep.subr.bf16.mxu0 %v11948_v31  ;;  %4221 = vperm.xlu1 %11877, %v4031_v11   ;;  %v3533_v57 = vpack.c.bf16 %v3488_v17, %v3487_v29  ;;  %v3497_v11 = vld [vmem:[%s12453_s12 + $0xa2] sm:$0xff]  ;;  %v3553_v17 = vpack.c.bf16 %v3528_v34, %v13186_v19  ;;  %v4471_v19 = vrot.slane %v4427_v13, 4 }
 0x346   : > { %4226 = vperm.xlu0 %11876, %v4032_v14   ;;  %v3498_v14 = vld [vmem:[%s12453_s12 + $0xaa] sm:$0xff] }
 0x347   : > { %10354 = vmatmul.mubr.bf16.gmra.mrb[12].mxu0 %v3128_v36  ;;  %v3491_v36 = vld [vmem:[%s12453_s12 + $0x72] sm:$0xff]  ;;  %v11953_v29 = vld [vmem:[#allocation8 + $0x58] sm:$0xff]  }
 0x348   : > { %10357 = vmatprep.mubr.bf16.mxu0 %v3129_v4  ;;  %10402 = vmatpush3.bf16.msra.mxu0 %v11948_v31  ;;  %v3489_v31 = vld [vmem:[%s12453_s12 + $0x62] sm:$0xff] }
 0x349   : > { %10403 = vmatprep.subr.bf16.mxu0 %v11949_v6  ;;  %4231 = vperm.xlu1 %11877, %v4033_v53   ;;  %v3534_v4 = vpack.c.bf16 %v3490_v35, %v3489_v31  ;;  %v3499_v53 = vld [vmem:[%s12453_s12 + $0xb2] sm:$0xff]  ;;  %v3530_v31 = vld [vmem:[%s12453_s12 + $0x1aa] sm:$0xff] }
 0x34a   : > { %4236 = vperm.xlu0 %11876, %v4034_v62   ;;  %v3538_v62 = vpack.c.bf16 %v3498_v14, %v3497_v11  ;;  %10459 = vmatprep.subr.bf16.mxu1 %v11953_v29 }
 0x34b   : > { %10460 = vmatpush3.bf16.msra.mxu1 %v11953_v29 }
 0x34c   : > { %10404 = vmatpush3.bf16.msra.mxu0 %v11949_v6  ;;  %v3535_v6 = vpack.c.bf16 %v3492_v45, %v3491_v36  ;;  %v11955_v36 = vld [vmem:[#allocation8 + $0x68] sm:$0xff]   ;;  %v11956_v45 = vld [vmem:[#allocation8 + $0x70] sm:$0xff]  }
 0x34d   : > { %4241 = vperm.xlu1 %11877, %v4035_v30   ;;  %v3501_v30 = vld [vmem:[%s12453_s12 + $0xc2] sm:$0xff] }
 0x34e   : > { %4246 = vperm.xlu0 %11876, %v4036_v0   ;;  %v3502_v0 = vld [vmem:[%s12453_s12 + $0xca] sm:$0xff] }
 0x34f   : > { %10358 = vmatmul.mubr.bf16.gmra.mrb[16].mxu0 %v3130_v51  ;;  %v3496_v51 = vld [vmem:[%s12453_s12 + $0x9a] sm:$0xff] }
 0x350   : > { %10361 = vmatprep.mubr.bf16.mxu0 %v3131_v8  ;;  %v3537_v8 = vpack.c.bf16 %v3496_v51, %v3495_v46  ;;  %v13498_v46 = vld [vmem:[#allocation8] sm:$0xff]  }
 0x351   : > { %4251 = vperm.xlu1 %11877, %v4037_v3   ;;  %v3503_v3 = vld [vmem:[%s12453_s12 + $0xd2] sm:$0xff] }
 0x352   : > { %4256 = vperm.xlu0 %11876, %v4038_v10   ;;  %v3540_v10 = vpack.c.bf16 %v3502_v0, %v3501_v30 }
 0x355   : > { %4261 = vperm.xlu1 %11877, %v4039_v24   ;;  %v3505_v24 = vld [vmem:[%s12453_s12 + $0xe2] sm:$0xff] }
 0x356   : > { %4266 = vperm.xlu0 %11876, %v4040_v63   ;;  %v3506_v63 = vld [vmem:[%s12453_s12 + $0xea] sm:$0xff] }
 0x357   : > { %10362 = vmatmul.mubr.bf16.gmra.mrb[20].mxu0 %v3132_v61  ;;  %v3500_v61 = vld [vmem:[%s12453_s12 + $0xba] sm:$0xff] }
 0x358   : > { %10365 = vmatprep.mubr.bf16.mxu0 %v3133_v2  ;;  %v3539_v2 = vpack.c.bf16 %v3500_v61, %v3499_v53 }
 0x359   : > { %4271 = vperm.xlu1 %11877, %v4041_v16   ;;  %v3507_v16 = vld [vmem:[%s12453_s12 + $0xf2] sm:$0xff] }
 0x35a   : > { %4276 = vperm.xlu0 %11876, %v4042_v27   ;;  %v3542_v27 = vpack.c.bf16 %v3506_v63, %v3505_v24  ;;  %v13524_v63 = vld [vmem:[%s15014_s3] ss:$0 sm:$0xff] }
 0x35d   : > { %4281 = vperm.xlu1 %11877, %v4043_v22   ;;  %v3509_v22 = vld [vmem:[%s12453_s12 + $0x102] sm:$0xff] }
 0x35e   : > { %v3544_v55 = vpack.c.bf16 %v3510_v23, %v3509_v22 }
 0x35f   : > { %10366 = vmatmul.mubr.bf16.gmra.mrb[24].mxu0 %v3134_v9  ;;  %v3504_v9 = vld [vmem:[%s12453_s12 + $0xda] sm:$0xff] }
 0x360   : > { %10369 = vmatprep.mubr.bf16.mxu0 %v3135_v15  ;;  %v3541_v15 = vpack.c.bf16 %v3504_v9, %v3503_v3 }
 0x367   : > { %10370 = vmatmul.mubr.bf16.gmra.mrb[28].mxu0 %v3136_v21  ;;  %v3508_v21 = vld [vmem:[%s12453_s12 + $0xfa] sm:$0xff] }
 0x368   : > { %10373 = vmatprep.mubr.bf16.mxu0 %v3137_v28  ;;  %v3543_v28 = vpack.c.bf16 %v3508_v21, %v3507_v16 }
 0x36f   : > { %10374 = vmatmul.mubr.bf16.gmra.mrb[32].mxu0 %v3138_v32  ;;  %v3512_v32 = vld [vmem:[%s12453_s12 + $0x11a] sm:$0xff] }
 0x370   : > { %10377 = vmatprep.mubr.bf16.mxu0 %v3139_v18  ;;  %v3545_v18 = vpack.c.bf16 %v3512_v32, %v3511_v25  ;;  %v4047_v51 = vpop.permute.xlu0 %4046 }
 0x377   : > { %10378 = vmatmul.mubr.bf16.gmra.mrb[36].mxu0 %v3140_v54  ;;  %v3515_v54 = vld [vmem:[%s12453_s12 + $0x132] sm:$0xff] }
 0x378   : > { %10381 = vmatprep.mubr.bf16.mxu0 %v3141_v33  ;;  %v3547_v33 = vpack.c.bf16 %v3516_v7, %v3515_v54 }
 0x37f   : > { %10382 = vmatmul.mubr.bf16.gmra.mrb[40].mxu0 %v3142_v39  ;;  %v3520_v39 = vld [vmem:[%s12453_s12 + $0x15a] sm:$0xff] }
 0x380   : > { %10385 = vmatprep.mubr.bf16.mxu0 %v3143_v41  ;;  %v3549_v41 = vpack.c.bf16 %v3520_v39, %v3519_v44 }
 0x387   : > { %10386 = vmatmul.mubr.bf16.gmra.mrb[44].mxu0 %v3144_v47  ;;  %v3550_v47 = vpack.c.bf16 %v3522_v5, %v3521_v60 }
 0x388   : > { %10405 = vmatprep.mubr.bf16.mxu0 %v3531_v58  ;;  %v3551_v58 = vpack.c.bf16 %v3524_v42, %v3523_v20 }
 0x38f   : > { %10406 = vmatmul.mubr.bf16.vlgmr.msra.gmra.mrb[0].mxu0 %v3532_v50  ;;  %v11954_v50 = vld [vmem:[#allocation8 + $0x60] sm:$0xff]  }
 0x390   : > { %10409 = vmatprep.mubr.bf16.mxu0 %v3533_v57  ;;  %v3529_v57 = vld [vmem:[%s12453_s12 + $0x1a2] sm:$0xff]  ;;  %10461 = vmatprep.subr.bf16.mxu1 %v11954_v50 }
 0x391   : > { %10462 = vmatpush3.bf16.msra.mxu1 %v11954_v50  ;;  %v3554_v35 = vpack.c.bf16 %v3530_v31, %v3529_v57 }
 0x392   : > { %10463 = vmatprep.subr.bf16.mxu1 %v11955_v36 }
 0x395   : > { %10464 = vmatpush3.bf16.msra.mxu1 %v11955_v36 }
 0x396   : > { %10465 = vmatprep.subr.bf16.mxu1 %v11956_v45 }
 0x397   : > { %10410 = vmatmul.mubr.bf16.gmra.mrb[4].mxu0 %v3534_v4  ;;  %v13490_v4 = vrot.slane %v12238_v12, 4 }
 0x398   : > { %10413 = vmatprep.mubr.bf16.mxu0 %v3535_v6 }
 0x399   : > { %10466 = vmatpush3.bf16.msra.mxu1 %v11956_v45  ;;  %v4473_v6 = vsel %vm4470_vm0, %v4471_v19, %v13490_v4  ;;  %v13496_v37 = vor.u32 %v5367_v1, %v13490_v4  ;;  %v11959_v19 = vld [vmem:[#allocation8 + $0x8] sm:$0xff]  }
 0x39a   : > { %10467 = vmatprep.subr.bf16.mxu1 %v11957_v59  ;;  %10469 = vmatprep.mubr.bf16.mxu1 %v4473_v6 }
 0x39b   : > { %15252 = vst [vmem:[#allocation13_spill] sm:$0xff] %v13496_v37 }
 0x39d   : > { %10468 = vmatpush3.bf16.msra.mxu1 %v11957_v59 }
 0x39e   : > { %10517 = vmatprep.subr.bf16.mxu1 %v13498_v46 }
 0x39f   : > { %10414 = vmatmul.mubr.bf16.gmra.mrb[8].mxu0 %v3536_v52  ;;  %v4057_v52 = vpop.permute.xlu1 %4056 }
 0x3a0   : > { %10417 = vmatprep.mubr.bf16.mxu0 %v3537_v8  ;;  %v4052_v8 = vpop.permute.xlu0 %4051 }
 0x3a3   : > { %v4062_v11 = vpop.permute.xlu1 %4061 }
 0x3a4   : > { %v13501_v14 = vpop.permute.xlu0 %4066 }
 0x3a7   : > { %10418 = vmatmul.mubr.bf16.gmra.mrb[12].mxu0 %v3538_v62  ;;  %v13503_v53 = vpop.permute.xlu1 %4071 }
 0x3a8   : > { %10421 = vmatprep.mubr.bf16.mxu0 %v3539_v2  ;;  %v4077_v61 = vpop.permute.xlu0 %4076 }
 0x3ab   : > { %v4082_v62 = vpop.permute.xlu1 %4081 }
 0x3ac   : > { %v13505_v2 = vpop.permute.xlu0 %4086 }
 0x3af   : > { %10422 = vmatmul.mubr.bf16.gmra.mrb[16].mxu0 %v3540_v10  ;;  %v13507_v30 = vpop.permute.xlu1 %4091 }
 0x3b0   : > { %10425 = vmatprep.mubr.bf16.mxu0 %v3541_v15  ;;  %v13509_v0 = vpop.permute.xlu0 %4096 }
 0x3b3   : > { %v13511_v3 = vpop.permute.xlu1 %4101 }
 0x3b4   : > { %v13513_v9 = vpop.permute.xlu0 %4106 }
 0x3b7   : > { %10426 = vmatmul.mubr.bf16.gmra.mrb[20].mxu0 %v3542_v27  ;;  %v13515_v10 = vpop.permute.xlu1 %4111 }
 0x3b8   : > { %10429 = vmatprep.mubr.bf16.mxu0 %v3543_v28  ;;  %v13517_v15 = vpop.permute.xlu0 %4116 }
 0x3bb   : > { %v13519_v24 = vpop.permute.xlu1 %4121 }
 0x3bc   : > { %v13528_v23 = vpop.permute.xlu0 %4126 }
 0x3bf   : > { %10430 = vmatmul.mubr.bf16.gmra.mrb[24].mxu0 %v3544_v55 }
 0x3c0   : > { %10433 = vmatprep.mubr.bf16.mxu0 %v3545_v18  ;;  %v13531_v18 = vpop.permute.xlu1 %4131 }
 0x3c4   : > { %v13540_v20 = vpop.permute.xlu1 %4141 }
 0x3c7   : > { %10434 = vmatmul.mubr.bf16.gmra.mrb[28].mxu0 %v3546_v26  ;;  %v4829_v26 = vrot.slane %v12238_v12, 3 }
 0x3c8   : > { %10437 = vmatprep.mubr.bf16.mxu0 %v3547_v33 }
 0x3c9   : > { %v13544_v12 = vor.u32 %v4829_v26, %v13490_v4 }
 0x3cf   : > { %10438 = vmatmul.mubr.bf16.gmra.mrb[32].mxu0 %v3548_v40  ;;  %v13535_v40 = vpop.permute.xlu0 %4136 }
 0x3d0   : > { %10441 = vmatprep.mubr.bf16.mxu0 %v3549_v41 }
 0x3d7   : > { %10442 = vmatmul.mubr.bf16.gmra.mrb[36].mxu0 %v3550_v47 }
 0x3d8   : > { %10445 = vmatprep.mubr.bf16.mxu0 %v3551_v58 }
 0x3df   : > { %10446 = vmatmul.mubr.bf16.gmra.mrb[40].mxu0 %v3552_v49 }
 0x3e0   : > { %10449 = vmatprep.mubr.bf16.mxu0 %v3553_v17 }
 0x3e7   : > { %10450 = vmatmul.mubr.bf16.gmra.mrb[44].mxu0 %v3554_v35 }
 0x462   : > { %v10407_v16 = vpop.f32.mrb[0].mxu0 }
 0x463   : > { %v3902_v21 = vadd.f32 %v10407_v16, %v13524_v63  ;;  %v3654_v27 = vpop.f32.mrb[1].mxu0 }
 0x464   : > { %v3900_v28 = vadd.f32 %v13524_v63, %v3654_v27  ;;  %v10408_v22 = vpop.f32.mrb[2].mxu0  ;;  %v13559_v27 = vpop.permute.xlu1 %4151 }
 0x465   : > { %v3950_v25 = vmax.f32 %v3902_v21, 0.0  ;;  %v3903_v32 = vadd.f32 %v10408_v22, %v13524_v63  ;;  %v3657_v55 = vpop.f32.mrb[3].mxu0 }
 0x466   : > { %v3948_v56 = vmax.f32 %v3900_v28, 0.0  ;;  %v3901_v48 = vadd.f32 %v13524_v63, %v3657_v55 }
 0x467   : > { %v3951_v54 = vmax.f32 %v3903_v32, 0.0  ;;  %v4286_v33 = vmul.f32 %v4057_v52, %v3950_v25 }
 0x468   : > { %v3949_v7 = vmax.f32 %v3901_v48, 0.0  ;;  %v4284_v43 = vmul.f32 %v4047_v51, %v3948_v56  ;;  %v11960_v48 = vld [vmem:[#allocation8 + $0x10] sm:$0xff]  }
 0x469   : > { %v4287_v38 = vmul.f32 %v4062_v11, %v3951_v54 }
 0x46a   : > { %v4285_v44 = vmul.f32 %v4052_v8, %v3949_v7  ;;  %v10411_v39 = vpop.f32.mrb[4].mxu0  ;;  %v13556_v8 = vpop.permute.xlu0 %4146 }
 0x46b   : > { %v13537_v41 = vpack.c.bf16 %v4287_v38, %v4286_v33  ;;  %v3906_v60 = vadd.f32 %v10411_v39, %v13524_v63  ;;  %v3670_v5 = vpop.f32.mrb[5].mxu0 }
 0x46c   : > { %v4335_v42 = vpack.c.bf16 %v4285_v44, %v4284_v43  ;;  %v3904_v47 = vadd.f32 %v13524_v63, %v3670_v5  ;;  %v10412_v58 = vpop.f32.mrb[6].mxu0 }
 0x46d   : > { %4360 = vst [vmem:[#allocation2 + $0x20] sm:$0xff] %v13537_v41  ;;  %v3954_v34 = vmax.f32 %v3906_v60, 0.0  ;;  %v3907_v49 = vadd.f32 %v10412_v58, %v13524_v63  ;;  %v3673_v29 = vpop.f32.mrb[7].mxu0  ;;  %v4476_v17 = vrot.slane %v13537_v41, 4  ;;  %v4845_v50 = vshrl.u32 %v13537_v41, 16 }
 0x46e   : > { %4359 = vst [vmem:[#allocation2 + $0x18] sm:$0xff] %v4335_v42  ;;  %v3952_v57 = vmax.f32 %v3904_v47, 0.0  ;;  %v3905_v31 = vadd.f32 %v13524_v63, %v3673_v29  ;;  %v4474_v35 = vrot.slane %v4335_v42, 4  ;;  %v4836_v36 = vshrl.u32 %v4335_v42, 16 }
 0x46f   : > { %v4290_v45 = vmul.f32 %v4077_v61, %v3954_v34  ;;  %v3955_v59 = vmax.f32 %v3907_v49, 0.0  ;;  %v4839_v13 = vshll.u32 %v4335_v42, 16  ;;  %v4847_v52 = vrot.slane %v4845_v50, 3  ;;  %v13580_v34 = vpop.permute.xlu0 %4156 }
 0x470   : > { %v3953_v6 = vmax.f32 %v3905_v31, 0.0  ;;  %v4475_v1 = vsel %vm4470_vm0, %v13490_v4, %v4474_v35  ;;  %v4477_v51 = vsel %vm4470_vm0, %v4474_v35, %v4476_v17  ;;  %v4838_v16 = vrot.slane %v4836_v36, 3  ;;  %v13585_v35 = vpop.permute.xlu1 %4161 }
 0x471   : > { %v4291_v11 = vmul.f32 %v4082_v62, %v3955_v59  ;;  %10470 = vmatmul.mubr.bf16.vlgmr.msra.gmra.mrb[0].mxu1 %v4475_v1  ;;  %v4841_v21 = vrot.slane %v4839_v13, 4  ;;  %v4848_v61 = vshll.u32 %v13537_v41, 16  ;;  %v4288_v28 = vmul.f32 %v13501_v14, %v3952_v57 }
 0x472   : > { %v4289_v22 = vmul.f32 %v13503_v53, %v3953_v6  ;;  %v10415_v4 = vpop.f32.mrb[8].mxu0  ;;  %10473 = vmatprep.mubr.bf16.mxu1 %v4477_v51  ;;  %10518 = vmatpush3.bf16.msra.mxu1 %v13498_v46  ;;  %v5370_v25 = vrot.slane %v4836_v36, 4  ;;  %v5371_v32 = vrot.slane %v4839_v13, 5  ;;  %v5374_v7 = vrot.slane %v4845_v50, 4  ;;  %v11961_v50 = vld [vmem:[#allocation8 + $0x18] sm:$0xff]  }
 0x473   : > { %v13564_v55 = vpack.c.bf16 %v4291_v11, %v4290_v45  ;;  %v3910_v62 = vadd.f32 %v10415_v4, %v13524_v63  ;;  %v3686_v56 = vpop.f32.mrb[9].mxu0  ;;  %10519 = vmatprep.subr.bf16.mxu1 %v11959_v19  ;;  %v4850_v54 = vrot.slane %v4848_v61, 4  ;;  %v13570_v33 = vor.u32 %v4841_v21, %v4838_v16  ;;  %v11962_v21 = vld [vmem:[#allocation8 + $0x20] sm:$0xff]  }
 0x474   : > { %v13567_v26 = vpack.c.bf16 %v4289_v22, %v4288_v28  ;;  %v3908_v14 = vadd.f32 %v13524_v63, %v3686_v56  ;;  %v10416_v53 = vpop.f32.mrb[10].mxu0  ;;  %v13572_v38 = vor.u32 %v5371_v32, %v5370_v25  ;;  %v5375_v60 = vrot.slane %v4848_v61, 5 }
 0x475   : > { %4362 = vst [vmem:[#allocation2 + $0x30] sm:$0xff] %v13564_v55  ;;  %v3958_v46 = vmax.f32 %v3910_v62, 0.0  ;;  %v3911_v43 = vadd.f32 %v10416_v53, %v13524_v63  ;;  %v3689_v44 = vpop.f32.mrb[11].mxu0  ;;  %v4480_v39 = vrot.slane %v13564_v55, 4  ;;  %v4851_v58 = vor.u32 %v4850_v54, %v4847_v52  ;;  %v13623_v62 = vpop.permute.xlu0 %4166 }
 0x476   : > { %4361 = vst [vmem:[#allocation2 + $0x28] sm:$0xff] %v13567_v26  ;;  %v3956_v5 = vmax.f32 %v3908_v14, 0.0  ;;  %v3909_v42 = vadd.f32 %v13524_v63, %v3689_v44  ;;  %v4478_v47 = vrot.slane %v13567_v26, 4  ;;  %10520 = vmatpush3.bf16.msra.mxu1 %v11959_v19  ;;  %v4854_v57 = vshrl.u32 %v13567_v26, 16  ;;  %v13631_v53 = vpop.permute.xlu1 %4171 }
 0x477   : > { %v4294_v49 = vmul.f32 %v13509_v0, %v3958_v46  ;;  %v3959_v29 = vmax.f32 %v3911_v43, 0.0  ;;  %10521 = vmatprep.subr.bf16.mxu1 %v11960_v48  ;;  %v4857_v31 = vshll.u32 %v13567_v26, 16  ;;  %v13597_v19 = vsel %vm4817_vm1, %v13570_v33, %v4851_v58 }
 0x478   : > { %v4292_v36 = vmul.f32 %v13505_v2, %v3956_v5  ;;  %v3957_v45 = vmax.f32 %v3909_v42, 0.0  ;;  %v4479_v59 = vsel %vm4470_vm0, %v4476_v17, %v4478_v47  ;;  %v4481_v0 = vsel %vm4470_vm0, %v4478_v47, %v4480_v39  ;;  %v11963_v47 = vld [vmem:[#allocation8 + $0x28] sm:$0xff]  }
 0x479   : > { %v4295_v13 = vmul.f32 %v13511_v3, %v3959_v29  ;;  %10474 = vmatmul.mubr.bf16.gmra.mrb[4].mxu1 %v4479_v59  ;;  %v4856_v6 = vrot.slane %v4854_v57, 3  ;;  %v4859_v2 = vrot.slane %v4857_v31, 4  ;;  %v4863_v1 = vshrl.u32 %v13564_v55, 16 }
 0x47a   : > { %v4293_v41 = vmul.f32 %v13507_v30, %v3957_v45  ;;  %v10419_v17 = vpop.f32.mrb[12].mxu0  ;;  %10477 = vmatprep.mubr.bf16.mxu1 %v4481_v0  ;;  %10522 = vmatpush3.bf16.msra.mxu1 %v11960_v48  ;;  %v4866_v3 = vshll.u32 %v13564_v55, 16  ;;  %v13609_v51 = vsel %vm5357_vm2, %v13496_v37, %v13572_v38  ;;  %v13614_v61 = vor.u32 %v5375_v60, %v5374_v7 }
 0x47b   : > { %15253 = vst [vmem:[#allocation14_spill] sm:$0xff] %v13609_v51  ;;  %v13611_v52 = vpack.c.bf16 %v4295_v13, %v4294_v49  ;;  %v3914_v11 = vadd.f32 %v10419_v17, %v13524_v63  ;;  %v3702_v16 = vpop.f32.mrb[13].mxu0  ;;  %10523 = vmatprep.subr.bf16.mxu1 %v11961_v50  ;;  %v4860_v30 = vor.u32 %v4859_v2, %v4856_v6  ;;  %v4865_v25 = vrot.slane %v4863_v1, 3 }
 0x47c   : > { %v13616_v28 = vpack.c.bf16 %v4293_v41, %v4292_v36  ;;  %v3912_v22 = vadd.f32 %v13524_v63, %v3702_v16  ;;  %v10420_v4 = vpop.f32.mrb[14].mxu0  ;;  %v4868_v32 = vrot.slane %v4866_v3, 4  ;;  %v13662_v41 = vpop.permute.xlu0 %4176 }
 0x47d   : > { %4364 = vst [vmem:[#allocation2 + $0x40] sm:$0xff] %v13611_v52  ;;  %v3962_v56 = vmax.f32 %v3914_v11, 0.0  ;;  %v3915_v48 = vadd.f32 %v10420_v4, %v13524_v63  ;;  %v3705_v54 = vpop.f32.mrb[15].mxu0  ;;  %v4484_v7 = vrot.slane %v13611_v52, 4  ;;  %v13629_v14 = vsel %vm4817_vm1, %v4851_v58, %v4860_v30 }
 0x47e   : > { %4363 = vst [vmem:[#allocation2 + $0x38] sm:$0xff] %v13616_v28  ;;  %v3960_v46 = vmax.f32 %v3912_v22, 0.0  ;;  %v3913_v43 = vadd.f32 %v13524_v63, %v3705_v54  ;;  %v4482_v44 = vrot.slane %v13616_v28, 4  ;;  %10524 = vmatpush3.bf16.msra.mxu1 %v11961_v50  ;;  %v4869_v60 = vor.u32 %v4868_v32, %v4865_v25  ;;  %v13671_v22 = vpop.permute.xlu1 %4181 }
 0x47f   : > { %v4298_v5 = vmul.f32 %v13517_v15, %v3962_v56  ;;  %v3963_v42 = vmax.f32 %v3915_v48, 0.0  ;;  %10525 = vmatprep.subr.bf16.mxu1 %v11962_v21  ;;  %v15081_v49 = vshrl.u32 %v13616_v28, 16  ;;  %v15080_v58 = vshll.u32 %v13616_v28, 16 }
 0x480   : > { %v4296_v29 = vmul.f32 %v13513_v9, %v3960_v46  ;;  %v3961_v36 = vmax.f32 %v3913_v43, 0.0  ;;  %v4483_v45 = vsel %vm4470_vm0, %v4480_v39, %v4482_v44  ;;  %v4485_v50 = vsel %vm4470_vm0, %v4482_v44, %v4484_v7 }
 0x481   : > { %v4299_v15 = vmul.f32 %v13519_v24, %v3963_v42  ;;  %10478 = vmatmul.mubr.bf16.gmra.mrb[8].mxu1 %v4483_v45  ;;  %v13648_v59 = vsel %vm4817_vm1, %v4860_v30, %v4869_v60  ;;  %v4874_v0 = vrot.slane %v15081_v49, 3  ;;  %v4877_v9 = vrot.slane %v15080_v58, 4 }
 0x482   : > { %v4297_v13 = vmul.f32 %v13515_v10, %v3961_v36  ;;  %v10423_v6 = vpop.f32.mrb[16].mxu0  ;;  %10481 = vmatprep.mubr.bf16.mxu1 %v4485_v50  ;;  %10526 = vmatpush3.bf16.msra.mxu1 %v11962_v21  ;;  %v15079_v39 = vshrl.u32 %v13611_v52, 16  ;;  %v15078_v2 = vshll.u32 %v13611_v52, 16  ;;  %v13660_v24 = vsel %vm5357_vm2, %v13572_v38, %v13614_v61  ;;  %v11964_v10 = vld [vmem:[#allocation8 + $0x30] sm:$0xff]   ;;  %v11965_v50 = vld [vmem:[#allocation8 + $0x38] sm:$0xff]  }
 0x483   : > { %15254 = vst [vmem:[#allocation15_spill] sm:$0xff] %v13660_v24  ;;  %v13664_v17 = vpack.c.bf16 %v4299_v15, %v4298_v5  ;;  %v3918_v11 = vadd.f32 %v10423_v6, %v13524_v63  ;;  %v3718_v16 = vpop.f32.mrb[17].mxu0  ;;  %10527 = vmatprep.subr.bf16.mxu1 %v11963_v47  ;;  %v4878_v30 = vor.u32 %v4877_v9, %v4874_v0  ;;  %v13669_v21 = vrot.slane %v4854_v57, 4  ;;  %v13699_v6 = vpop.permute.xlu0 %4186 }
 0x484   : > { %v13673_v4 = vpack.c.bf16 %v4297_v13, %v4296_v29  ;;  %v3916_v38 = vadd.f32 %v13524_v63, %v3718_v16  ;;  %v10424_v25 = vpop.f32.mrb[18].mxu0  ;;  %v4883_v32 = vrot.slane %v15079_v39, 3  ;;  %v4886_v56 = vrot.slane %v15078_v2, 4 }
 0x485   : > { %4366 = vst [vmem:[#allocation2 + $0x50] sm:$0xff] %v13664_v17  ;;  %v3966_v48 = vmax.f32 %v3918_v11, 0.0  ;;  %v3919_v54 = vadd.f32 %v10424_v25, %v13524_v63  ;;  %v3721_v57 = vpop.f32.mrb[19].mxu0  ;;  %v4488_v46 = vrot.slane %v13664_v17, 4  ;;  %v13684_v43 = vsel %vm4817_vm1, %v4869_v60, %v4878_v30 }
 0x486   : > { %4365 = vst [vmem:[#allocation2 + $0x48] sm:$0xff] %v13673_v4  ;;  %v3964_v44 = vmax.f32 %v3916_v38, 0.0  ;;  %v3917_v5 = vadd.f32 %v13524_v63, %v3721_v57  ;;  %v4486_v42 = vrot.slane %v13673_v4, 4  ;;  %10528 = vmatpush3.bf16.msra.mxu1 %v11963_v47  ;;  %v4887_v29 = vor.u32 %v4886_v56, %v4883_v32  ;;  %v13709_v38 = vpop.permute.xlu1 %4191  ;;  %v13719_v57 = vld [vmem:[#allocation8 + $0x80] sm:$0xff]  }
 0x487   : > { %v4302_v36 = vmul.f32 %v13535_v40, %v3966_v48  ;;  %v3967_v45 = vmax.f32 %v3919_v54, 0.0  ;;  %10529 = vmatprep.subr.bf16.mxu1 %v11964_v10  ;;  %v15075_v15 = vshrl.u32 %v13673_v4, 16  ;;  %v15072_v0 = vshll.u32 %v13673_v4, 16 }
 0x488   : > { %v4300_v60 = vmul.f32 %v13528_v23, %v3964_v44  ;;  %v3965_v9 = vmax.f32 %v3917_v5, 0.0  ;;  %v4487_v13 = vsel %vm4470_vm0, %v4484_v7, %v4486_v42  ;;  %v4489_v47 = vsel %vm4470_vm0, %v4486_v42, %v4488_v46 }
 0x489   : > { %v4303_v40 = vmul.f32 %v13540_v20, %v3967_v45  ;;  %10482 = vmatmul.mubr.bf16.gmra.mrb[12].mxu1 %v4487_v13  ;;  %v13703_v11 = vsel %vm4817_vm1, %v4878_v30, %v4887_v29  ;;  %v4892_v23 = vrot.slane %v15075_v15, 3  ;;  %v4895_v16 = vrot.slane %v15072_v0, 4 }
 0x48a   : > { %v4301_v7 = vmul.f32 %v13531_v18, %v3965_v9  ;;  %v10427_v25 = vpop.f32.mrb[20].mxu0  ;;  %10485 = vmatprep.mubr.bf16.mxu1 %v4489_v47  ;;  %10530 = vmatpush3.bf16.msra.mxu1 %v11964_v10  ;;  %v15067_v32 = vshrl.u32 %v13664_v17, 16  ;;  %v15066_v20 = vshll.u32 %v13664_v17, 16  ;;  %v5379_v30 = vrot.slane %v4857_v31, 5 }
 0x48b   : > { %v13716_v56 = vpack.c.bf16 %v4303_v40, %v4302_v36  ;;  %v3922_v48 = vadd.f32 %v10427_v25, %v13524_v63  ;;  %v3734_v54 = vpop.f32.mrb[21].mxu0  ;;  %10531 = vmatprep.subr.bf16.mxu1 %v11965_v50  ;;  %v4896_v44 = vor.u32 %v4895_v16, %v4892_v23  ;;  %v13723_v18 = vrot.slane %v4863_v1, 4  ;;  %v13741_v16 = vpop.permute.xlu0 %4196 }
 0x48c   : > { %v13725_v10 = vpack.c.bf16 %v4301_v7, %v4300_v60  ;;  %v3920_v5 = vadd.f32 %v13524_v63, %v3734_v54  ;;  %v10428_v42 = vpop.f32.mrb[22].mxu0  ;;  %v4901_v26 = vrot.slane %v15067_v32, 3  ;;  %v4904_v31 = vrot.slane %v15066_v20, 4  ;;  %v13747_v54 = vpop.permute.xlu1 %4201 }
 0x48d   : > { %4368 = vst [vmem:[#allocation2 + $0x60] sm:$0xff] %v13716_v56  ;;  %v3970_v36 = vmax.f32 %v3922_v48, 0.0  ;;  %v3923_v45 = vadd.f32 %v10428_v42, %v13524_v63  ;;  %v3737_v9 = vpop.f32.mrb[23].mxu0  ;;  %v4492_v1 = vrot.slane %v13716_v56, 4  ;;  %v13736_v60 = vsel %vm4817_vm1, %v4887_v29, %v4896_v44 }
 0x48e   : > { %4367 = vst [vmem:[#allocation2 + $0x58] sm:$0xff] %v13725_v10  ;;  %v3968_v13 = vmax.f32 %v3920_v5, 0.0  ;;  %v3921_v47 = vadd.f32 %v13524_v63, %v3737_v9  ;;  %v4490_v40 = vrot.slane %v13725_v10, 4  ;;  %10532 = vmatpush3.bf16.msra.mxu1 %v11965_v50  ;;  %v4905_v23 = vor.u32 %v4904_v31, %v4901_v26 }
 0x48f   : > { %v4306_v7 = vmul.f32 %v13580_v34, %v3970_v36  ;;  %v3971_v25 = vmax.f32 %v3923_v45, 0.0  ;;  %10581 = vmatprep.subr.bf16.mxu1 %v13719_v57  ;;  %v15065_v48 = vshrl.u32 %v13725_v10, 16  ;;  %v15062_v29 = vshll.u32 %v13725_v10, 16 }
 0x490   : > { %v4304_v5 = vmul.f32 %v13556_v8, %v3968_v13  ;;  %v3969_v42 = vmax.f32 %v3921_v47, 0.0  ;;  %v4491_v50 = vsel %vm4470_vm0, %v4488_v46, %v4490_v40  ;;  %v4493_v26 = vsel %vm4470_vm0, %v4490_v40, %v4492_v1 }
 0x491   : > { %v4307_v34 = vmul.f32 %v13585_v35, %v3971_v25  ;;  %10486 = vmatmul.mubr.bf16.gmra.mrb[16].mxu1 %v4491_v50  ;;  %v13756_v31 = vsel %vm4817_vm1, %v4896_v44, %v4905_v23  ;;  %v4910_v36 = vrot.slane %v15065_v48, 3  ;;  %v4913_v45 = vrot.slane %v15062_v29, 4 }
 0x492   : > { %v4305_v8 = vmul.f32 %v13559_v27, %v3969_v42  ;;  %v10431_v9 = vpop.f32.mrb[24].mxu0  ;;  %10489 = vmatprep.mubr.bf16.mxu1 %v4493_v26  ;;  %v15064_v46 = vshrl.u32 %v13716_v56, 16  ;;  %v15063_v13 = vshll.u32 %v13716_v56, 16  ;;  %v13766_v35 = vor.u32 %v5379_v30, %v13669_v21  ;;  %v13780_v30 = vpop.permute.xlu0 %4206 }
 0x493   : > { %v13768_v47 = vpack.c.bf16 %v4307_v34, %v4306_v7  ;;  %v3926_v44 = vadd.f32 %v10431_v9, %v13524_v63  ;;  %v3750_v40 = vpop.f32.mrb[25].mxu0  ;;  %v4914_v25 = vor.u32 %v4913_v45, %v4910_v36  ;;  %v5383_v50 = vrot.slane %v4866_v3, 5  ;;  %v13788_v36 = vpop.permute.xlu1 %4211 }
 0x494   : > { %v13773_v29 = vpack.c.bf16 %v4305_v8, %v4304_v5  ;;  %v3924_v27 = vadd.f32 %v13524_v63, %v3750_v40  ;;  %v10432_v42 = vpop.f32.mrb[26].mxu0  ;;  %v4919_v26 = vrot.slane %v15064_v46, 3  ;;  %v4922_v21 = vrot.slane %v15063_v13, 4 }
 0x495   : > { %4370 = vst [vmem:[#allocation2 + $0x70] sm:$0xff] %v13768_v47  ;;  %v3974_v7 = vmax.f32 %v3926_v44, 0.0  ;;  %v3927_v34 = vadd.f32 %v10432_v42, %v13524_v63  ;;  %v3753_v55 = vpop.f32.mrb[27].mxu0  ;;  %v4496_v3 = vrot.slane %v13768_v47, 4  ;;  %v13786_v5 = vsel %vm4817_vm1, %v4905_v23, %v4914_v25 }
 0x496   : > { %4369 = vst [vmem:[#allocation2 + $0x68] sm:$0xff] %v13773_v29  ;;  %v3972_v45 = vmax.f32 %v3924_v27, 0.0  ;;  %v3925_v8 = vadd.f32 %v13524_v63, %v3753_v55  ;;  %v4494_v9 = vrot.slane %v13773_v29, 4  ;;  %v4923_v40 = vor.u32 %v4922_v21, %v4919_v26 }
 0x497   : > { %v4310_v44 = vmul.f32 %v13662_v41, %v3974_v7  ;;  %v3975_v13 = vmax.f32 %v3927_v34, 0.0  ;;  %v15071_v42 = vshrl.u32 %v13773_v29, 16  ;;  %v15070_v46 = vshll.u32 %v13773_v29, 16 }
 0x498   : > { %v4308_v23 = vmul.f32 %v13623_v62, %v3972_v45  ;;  %v3973_v48 = vmax.f32 %v3925_v8, 0.0  ;;  %v4495_v20 = vsel %vm4470_vm0, %v4492_v1, %v4494_v9  ;;  %v4497_v32 = vsel %vm4470_vm0, %v4494_v9, %v4496_v3 }
 0x499   : > { %v4311_v27 = vmul.f32 %v13671_v22, %v3975_v13  ;;  %10490 = vmatmul.mubr.bf16.gmra.mrb[20].mxu1 %v4495_v20  ;;  %v13801_v55 = vsel %vm4817_vm1, %v4914_v25, %v4923_v40  ;;  %v4928_v41 = vrot.slane %v15071_v42, 3  ;;  %v4931_v26 = vrot.slane %v15070_v46, 4  ;;  %v13815_v20 = vpop.permute.xlu0 %4216 }
 0x49a   : > { %v4309_v21 = vmul.f32 %v13631_v53, %v3973_v48  ;;  %v10435_v62 = vpop.f32.mrb[28].mxu0  ;;  %10493 = vmatprep.mubr.bf16.mxu1 %v4497_v32  ;;  %v15069_v1 = vshrl.u32 %v13768_v47, 16  ;;  %v15068_v7 = vshll.u32 %v13768_v47, 16  ;;  %v13813_v22 = vsel %vm5357_vm2, %v13614_v61, %v13766_v35  ;;  %v13823_v32 = vpop.permute.xlu1 %4221 }
 0x49b   : > { %15255 = vst [vmem:[#allocation16_spill] sm:$0xff] %v13813_v22  ;;  %v13817_v13 = vpack.c.bf16 %v4311_v27, %v4310_v44  ;;  %v3930_v25 = vadd.f32 %v10435_v62, %v13524_v63  ;;  %v3766_v34 = vpop.f32.mrb[29].mxu0  ;;  %v4932_v45 = vor.u32 %v4931_v26, %v4928_v41  ;;  %v13821_v53 = vor.u32 %v5383_v50, %v13723_v18 }
 0x49c   : > { %v13825_v48 = vpack.c.bf16 %v4309_v21, %v4308_v23  ;;  %v3928_v8 = vadd.f32 %v13524_v63, %v3766_v34  ;;  %v10436_v9 = vpop.f32.mrb[30].mxu0  ;;  %v4937_v61 = vrot.slane %v15069_v1, 3  ;;  %v4940_v44 = vrot.slane %v15068_v7, 4 }
 0x49d   : > { %4372 = vst [vmem:[#allocation2 + $0x80] sm:$0xff] %v13817_v13  ;;  %v3978_v27 = vmax.f32 %v3930_v25, 0.0  ;;  %v3931_v41 = vadd.f32 %v10436_v9, %v13524_v63  ;;  %v3769_v18 = vpop.f32.mrb[31].mxu0  ;;  %v4500_v50 = vrot.slane %v13817_v13, 4  ;;  %v13836_v23 = vsel %vm4817_vm1, %v4923_v40, %v4932_v45 }
 0x49e   : > { %4371 = vst [vmem:[#allocation2 + $0x78] sm:$0xff] %v13825_v48  ;;  %v3976_v26 = vmax.f32 %v3928_v8, 0.0  ;;  %v3929_v21 = vadd.f32 %v13524_v63, %v3769_v18  ;;  %v4498_v62 = vrot.slane %v13825_v48, 4  ;;  %v4941_v34 = vor.u32 %v4940_v44, %v4937_v61  ;;  %v13847_v8 = vld [vmem:[#allocation2 + $0x8] sm:$0xf8]  ;;  %v13849_v18 = vpop.permute.xlu0 %4226 }
 0x49f   : > { %v4314_v7 = vmul.f32 %v13741_v16, %v3978_v27  ;;  %v3979_v1 = vmax.f32 %v3931_v41, 0.0  ;;  %v15074_v25 = vshrl.u32 %v13825_v48, 16  ;;  %v15073_v9 = vshll.u32 %v13825_v48, 16  ;;  %v13859_v27 = vpop.permute.xlu1 %4231 }
 0x4a0   : > { %v4312_v46 = vmul.f32 %v13699_v6, %v3976_v26  ;;  %v3977_v42 = vmax.f32 %v3929_v21, 0.0  ;;  %v4499_v40 = vsel %vm4470_vm0, %v4496_v3, %v4498_v62  ;;  %v4501_v0 = vsel %vm4470_vm0, %v4498_v62, %v4500_v50 }
 0x4a1   : > { %v4315_v61 = vmul.f32 %v13747_v54, %v3979_v1  ;;  %10494 = vmatmul.mubr.bf16.gmra.mrb[24].mxu1 %v4499_v40  ;;  %v13853_v16 = vsel %vm4817_vm1, %v4932_v45, %v4941_v34  ;;  %v4946_v44 = vrot.slane %v15074_v25, 3  ;;  %v4949_v6 = vrot.slane %v15073_v9, 4 }
 0x4a2   : > { %v4313_v3 = vmul.f32 %v13709_v38, %v3977_v42  ;;  %v10439_v41 = vpop.f32.mrb[32].mxu0  ;;  %10497 = vmatprep.mubr.bf16.mxu1 %v4501_v0  ;;  %v15077_v26 = vshrl.u32 %v13817_v13, 16  ;;  %v15076_v54 = vshll.u32 %v13817_v13, 16  ;;  %v13867_v1 = vsel %vm5357_vm2, %v13766_v35, %v13821_v53 }
 0x4a3   : > { %15256 = vst [vmem:[#allocation17_spill] sm:$0xff] %v13867_v1  ;;  %v13869_v45 = vpack.c.bf16 %v4315_v61, %v4314_v7  ;;  %v3934_v21 = vadd.f32 %v10439_v41, %v13524_v63  ;;  %v3782_v62 = vpop.f32.mrb[33].mxu0  ;;  %v4819_v40 = vshrl.u32 %v13847_v8, 16  ;;  %v4950_v9 = vor.u32 %v4949_v6, %v4946_v44  ;;  %v4242_v39 = vpop.permute.xlu1 %4241 }
 0x4a4   : > { %v13873_v38 = vpack.c.bf16 %v4313_v3, %v4312_v46  ;;  %v3932_v0 = vadd.f32 %v13524_v63, %v3782_v62  ;;  %v10440_v42 = vpop.f32.mrb[34].mxu0  ;;  %v4955_v25 = vrot.slane %v15077_v26, 3  ;;  %v4958_v35 = vrot.slane %v15076_v54, 4  ;;  %v4237_v54 = vpop.permute.xlu0 %4236 }
 0x4a5   : > { %4374 = vst [vmem:[#allocation2 + $0x90] sm:$0xff] %v13869_v45  ;;  %v3982_v7 = vmax.f32 %v3934_v21, 0.0  ;;  %v3935_v61 = vadd.f32 %v10440_v42, %v13524_v63  ;;  %v3785_v41 = vpop.f32.mrb[35].mxu0  ;;  %v4504_v15 = vrot.slane %v13869_v45, 4  ;;  %v13884_v46 = vsel %vm4817_vm1, %v4941_v34, %v4950_v9 }
 0x4a6   : > { %4373 = vst [vmem:[#allocation2 + $0x88] sm:$0xff] %v13873_v38  ;;  %v3980_v44 = vmax.f32 %v3932_v0, 0.0  ;;  %v3933_v6 = vadd.f32 %v13524_v63, %v3785_v41  ;;  %v4502_v3 = vrot.slane %v13873_v38, 4  ;;  %v4959_v62 = vor.u32 %v4958_v35, %v4955_v25 }
 0x4a7   : > { %v3983_v26 = vmax.f32 %v3935_v61, 0.0  ;;  %v4822_v21 = vshll.u32 %v13847_v8, 16  ;;  %v15082_v42 = vshrl.u32 %v13873_v38, 16  ;;  %v15085_v2 = vshll.u32 %v13873_v38, 16 }
 0x4a8   : > { %v4318_v34 = vmul.f32 %v13815_v20, %v3982_v7  ;;  %v3981_v58 = vmax.f32 %v3933_v6, 0.0  ;;  %v4503_v49 = vsel %vm4470_vm0, %v4500_v50, %v4502_v3  ;;  %v4505_v0 = vsel %vm4470_vm0, %v4502_v3, %v4504_v15 }
 0x4a9   : > { %v4319_v41 = vmul.f32 %v13823_v32, %v3983_v26  ;;  %10498 = vmatmul.mubr.bf16.gmra.mrb[28].mxu1 %v4503_v49  ;;  %v13897_v25 = vsel %vm4817_vm1, %v4950_v9, %v4959_v62  ;;  %v4964_v8 = vrot.slane %v15082_v42, 3  ;;  %v4967_v35 = vrot.slane %v15085_v2, 4 }
 0x4aa   : > { %v4316_v61 = vmul.f32 %v13780_v30, %v3980_v44  ;;  %v4317_v20 = vmul.f32 %v13788_v36, %v3981_v58  ;;  %v10443_v7 = vpop.f32.mrb[36].mxu0  ;;  %10501 = vmatprep.mubr.bf16.mxu1 %v4505_v0  ;;  %v15084_v50 = vshrl.u32 %v13869_v45, 16  ;;  %v15083_v32 = vshll.u32 %v13869_v45, 16  ;;  %v13919_v0 = vpop.permute.xlu0 %4246 }
 0x4ab   : > { %v13907_v49 = vpack.c.bf16 %v4319_v41, %v4318_v34  ;;  %v3938_v9 = vadd.f32 %v10443_v7, %v13524_v63  ;;  %v3798_v26 = vpop.f32.mrb[37].mxu0  ;;  %v13910_v6 = vrot.slane %v4819_v40, 3  ;;  %v4968_v3 = vor.u32 %v4967_v35, %v4964_v8 }
 0x4ac   : > { %v13912_v42 = vpack.c.bf16 %v4317_v20, %v4316_v61  ;;  %v3936_v30 = vadd.f32 %v13524_v63, %v3798_v26  ;;  %v10444_v44 = vpop.f32.mrb[38].mxu0  ;;  %v4973_v58 = vrot.slane %v15084_v50, 3  ;;  %v4976_v36 = vrot.slane %v15083_v32, 4  ;;  %v13927_v61 = vpop.permute.xlu1 %4251 }
 0x4ad   : > { %4376 = vst [vmem:[#allocation2 + $0xa0] sm:$0xff] %v13907_v49  ;;  %v3986_v34 = vmax.f32 %v3938_v9, 0.0  ;;  %v3939_v40 = vadd.f32 %v10444_v44, %v13524_v63  ;;  %v3801_v41 = vpop.f32.mrb[39].mxu0  ;;  %v4508_v8 = vrot.slane %v13907_v49, 4  ;;  %v13925_v35 = vsel %vm4817_vm1, %v4959_v62, %v4968_v3 }
 0x4ae   : > { %4375 = vst [vmem:[#allocation2 + $0x98] sm:$0xff] %v13912_v42  ;;  %v3984_v20 = vmax.f32 %v3936_v30, 0.0  ;;  %v3937_v7 = vadd.f32 %v13524_v63, %v3801_v41  ;;  %v4506_v26 = vrot.slane %v13912_v42, 4  ;;  %v4977_v32 = vor.u32 %v4976_v36, %v4973_v58 }
 0x4af   : > { %v3987_v50 = vmax.f32 %v3939_v40, 0.0  ;;  %v13932_v9 = vrot.slane %v4822_v21, 4  ;;  %v15089_v44 = vshrl.u32 %v13912_v42, 16  ;;  %v15088_v2 = vshll.u32 %v13912_v42, 16 }
 0x4b0   : > { %v4322_v1 = vmul.f32 %v4237_v54, %v3986_v34  ;;  %v3985_v62 = vmax.f32 %v3937_v7, 0.0  ;;  %v4507_v22 = vsel %vm4470_vm0, %v4504_v15, %v4506_v26  ;;  %v4509_v24 = vsel %vm4470_vm0, %v4506_v26, %v4508_v8  ;;  %v4262_v26 = vpop.permute.xlu1 %4261 }
 0x4b1   : > { %v4323_v51 = vmul.f32 %v4242_v39, %v3987_v50  ;;  %10502 = vmatmul.mubr.bf16.gmra.mrb[32].mxu1 %v4507_v22  ;;  %v13939_v30 = vsel %vm4817_vm1, %v4968_v3, %v4977_v32  ;;  %v4982_v58 = vrot.slane %v15089_v44, 3  ;;  %v4985_v21 = vrot.slane %v15088_v2, 4  ;;  %v4257_v22 = vpop.permute.xlu0 %4256 }
 0x4b2   : > { %15257 = vst [vmem:[#allocation18_spill] sm:$0xff] %v13939_v30  ;;  %v4320_v36 = vmul.f32 %v13849_v18, %v3984_v20  ;;  %v4321_v54 = vmul.f32 %v13859_v27, %v3985_v62  ;;  %v10447_v34 = vpop.f32.mrb[40].mxu0  ;;  %10505 = vmatprep.mubr.bf16.mxu1 %v4509_v24  ;;  %v15086_v15 = vshrl.u32 %v13907_v49, 16  ;;  %v15087_v39 = vshll.u32 %v13907_v49, 16 }
 0x4b3   : > { %v13949_v50 = vpack.c.bf16 %v4323_v51, %v4322_v1  ;;  %v3942_v3 = vadd.f32 %v10447_v34, %v13524_v63  ;;  %v3814_v40 = vpop.f32.mrb[41].mxu0  ;;  %v4986_v7 = vor.u32 %v4985_v21, %v4982_v58 }
 0x4b4   : > { %v13954_v18 = vpack.c.bf16 %v4321_v54, %v4320_v36  ;;  %v3940_v27 = vadd.f32 %v13524_v63, %v3814_v40  ;;  %v10448_v24 = vpop.f32.mrb[42].mxu0  ;;  %v4991_v20 = vrot.slane %v15086_v15, 3  ;;  %v4994_v51 = vrot.slane %v15087_v39, 4 }
 0x4b5   : > { %4378 = vst [vmem:[#allocation2 + $0xb0] sm:$0xff] %v13949_v50  ;;  %v3990_v1 = vmax.f32 %v3942_v3, 0.0  ;;  %v3943_v62 = vadd.f32 %v10448_v24, %v13524_v63  ;;  %v3817_v34 = vpop.f32.mrb[43].mxu0  ;;  %v4512_v58 = vrot.slane %v13949_v50, 4  ;;  %v13965_v21 = vsel %vm4817_vm1, %v4977_v32, %v4986_v7 }
 0x4b6   : > { %15258 = vst [vmem:[#allocation19_spill] sm:$0xff] %v13965_v21  ;;  %4377 = vst [vmem:[#allocation2 + $0xa8] sm:$0xff] %v13954_v18  ;;  %v3988_v36 = vmax.f32 %v3940_v27, 0.0  ;;  %v3941_v54 = vadd.f32 %v13524_v63, %v3817_v34  ;;  %v4510_v40 = vrot.slane %v13954_v18, 4  ;;  %v4995_v15 = vor.u32 %v4994_v51, %v4991_v20  ;;  %v4267_v27 = vpop.permute.xlu0 %4266 }
 0x4b7   : > { %v3991_v39 = vmax.f32 %v3943_v62, 0.0  ;;  %v15092_v2 = vshrl.u32 %v13954_v18, 16  ;;  %v15091_v3 = vshll.u32 %v13954_v18, 16  ;;  %v15259_v24 = vshrl.u32 %v13616_v28, 16  ;;  %v4272_v62 = vpop.permute.xlu1 %4271 }
 0x4b8   : > { %v4326_v41 = vmul.f32 %v4257_v22, %v3990_v1  ;;  %v3989_v37 = vmax.f32 %v3941_v54, 0.0  ;;  %v4511_v32 = vsel %vm4470_vm0, %v4508_v8, %v4510_v40  ;;  %v4513_v21 = vsel %vm4470_vm0, %v4510_v40, %v4512_v58 }
 0x4b9   : > { %v5386_v44 = vrot.slane %v15259_v24, 4  ;;  %v4327_v30 = vmul.f32 %v4262_v26, %v3991_v39  ;;  %10506 = vmatmul.mubr.bf16.gmra.mrb[36].mxu1 %v4511_v32  ;;  %v13977_v34 = vsel %vm4817_vm1, %v4986_v7, %v4995_v15  ;;  %v5000_v20 = vrot.slane %v15092_v2, 3 }
 0x4ba   : > { %15260 = vst [vmem:[#allocation20_spill] sm:$0xff] %v13977_v34  ;;  %v5003_v51 = vrot.slane %v15091_v3, 4  ;;  %v4324_v22 = vmul.f32 %v13919_v0, %v3988_v36  ;;  %v4325_v1 = vmul.f32 %v13927_v61, %v3989_v37  ;;  %v10451_v8 = vpop.f32.mrb[44].mxu0  ;;  %10509 = vmatprep.mubr.bf16.mxu1 %v4513_v21  ;;  %v15094_v54 = vshrl.u32 %v13949_v50, 16 }
 0x4bb   : > { %v15093_v39 = vshll.u32 %v13949_v50, 16  ;;  %v13987_v26 = vpack.c.bf16 %v4327_v30, %v4326_v41  ;;  %v3946_v7 = vadd.f32 %v10451_v8, %v13524_v63  ;;  %v3830_v40 = vpop.f32.mrb[45].mxu0  ;;  %v15261_v32 = vshll.u32 %v13616_v28, 16  ;;  %v4282_v28 = vpop.permute.xlu1 %4281 }
 0x4bc   : > { %v5004_v24 = vor.u32 %v5003_v51, %v5000_v20  ;;  %v13992_v2 = vpack.c.bf16 %v4325_v1, %v4324_v22  ;;  %v3944_v0 = vadd.f32 %v13524_v63, %v3830_v40  ;;  %v10452_v37 = vpop.f32.mrb[46].mxu0  ;;  %v5009_v61 = vrot.slane %v15094_v54, 3  ;;  %v4277_v40 = vpop.permute.xlu0 %4276 }
 0x4bd   : > { %v5387_v3 = vrot.slane %v15261_v32, 5  ;;  %v5012_v21 = vrot.slane %v15093_v39, 4  ;;  %4380 = vst [vmem:[#allocation2 + $0xc0] sm:$0xff] %v13987_v26  ;;  %v3994_v30 = vmax.f32 %v3946_v7, 0.0  ;;  %v3947_v41 = vadd.f32 %v10452_v37, %v13524_v63  ;;  %v3833_v36 = vpop.f32.mrb[47].mxu0 }
 0x4be   : > { %v14003_v20 = vsel %vm4817_vm1, %v4995_v15, %v5004_v24  ;;  %4379 = vst [vmem:[#allocation2 + $0xb8] sm:$0xff] %v13992_v2  ;;  %v3992_v51 = vmax.f32 %v3944_v0, 0.0  ;;  %v3945_v22 = vadd.f32 %v13524_v63, %v3833_v36  ;;  %v4514_v1 = vrot.slane %v13992_v2, 4 }
 0x4bf   : > { %15262 = vst [vmem:[#allocation21_spill] sm:$0xff] %v14003_v20  ;;  %v5013_v8 = vor.u32 %v5012_v21, %v5009_v61  ;;  %v3995_v32 = vmax.f32 %v3947_v41, 0.0  ;;  %v5016_v7 = vshrl.u32 %v13992_v2, 16  ;;  %v15095_v37 = vshll.u32 %v13992_v2, 16 }
 0x4c0   : > { %v15263_v39 = vshrl.u32 %v13611_v52, 16  ;;  %v4330_v15 = vmul.f32 %v4277_v40, %v3994_v30  ;;  %v3993_v20 = vmax.f32 %v3945_v22, 0.0  ;;  %v4515_v34 = vsel %vm4470_vm0, %v4512_v58, %v4514_v1 }
 0x4c1   : > { %v15264_v0 = vrot.slane %v13987_v26, 4  ;;  %v4331_v36 = vmul.f32 %v4282_v28, %v3995_v32  ;;  %10510 = vmatmul.mubr.bf16.gmra.mrb[40].mxu1 %v4515_v34  ;;  %v14017_v61 = vsel %vm4817_vm1, %v5004_v24, %v5013_v8  ;;  %v5018_v21 = vrot.slane %v5016_v7, 3 }
 0x4c2   : > { %v5390_v54 = vrot.slane %v15263_v39, 4  ;;  %v5021_v39 = vrot.slane %v15095_v37, 4  ;;  %v4328_v41 = vmul.f32 %v4267_v27, %v3992_v51  ;;  %v4329_v30 = vmul.f32 %v4272_v62, %v3993_v20 }
 0x4c3   : > { %v4517_v63 = vsel %vm4470_vm0, %v4514_v1, %v15264_v0  ;;  %v5025_v58 = vshrl.u32 %v13987_v26, 16  ;;  %v5028_v22 = vshll.u32 %v13987_v26, 16  ;;  %v4358_v40 = vpack.c.bf16 %v4331_v36, %v4330_v15 }
 0x4c4   : > { %10513 = vmatprep.mubr.bf16.mxu1 %v4517_v63  ;;  %v5022_v1 = vor.u32 %v5021_v39, %v5018_v21  ;;  %v5388_v28 = vor.u32 %v5387_v3, %v5386_v44  ;;  %v15265_v34 = vshll.u32 %v13611_v52, 16  ;;  %v4357_v32 = vpack.c.bf16 %v4329_v30, %v4328_v41 }
 0x4c5   : > { %v15266_v0 = vor.u32 %v13932_v9, %v13910_v6  ;;  %v5027_v27 = vrot.slane %v5025_v58, 3  ;;  %v5030_v62 = vrot.slane %v5028_v22, 4  ;;  %4382 = vst [vmem:[#allocation2 + $0xd0] sm:$0xff] %v4358_v40  ;;  %v15267_v3 = vshrl.u32 %v13673_v4, 16 }
 0x4c6   : > { %v5391_v24 = vrot.slane %v15265_v34, 5  ;;  %v14037_v20 = vsel %vm4817_vm1, %v5013_v8, %v5022_v1  ;;  %v14041_v52 = vsel %vm5357_vm2, %v13821_v53, %v5388_v28  ;;  %4381 = vst [vmem:[#allocation2 + $0xc8] sm:$0xff] %v4357_v32  ;;  %v15268_v51 = vshll.u32 %v13673_v4, 16 }
 0x4c7   : > { %v4834_v37 = vsel %vm4817_vm1, %v15266_v0, %v13544_v12  ;;  %v5394_v6 = vrot.slane %v15267_v3, 4  ;;  %v5031_v9 = vor.u32 %v5030_v62, %v5027_v27  ;;  %v15269_v63 = vshrl.u32 %v13664_v17, 16 }
 0x4c8   : > { %v5392_v44 = vor.u32 %v5391_v24, %v5390_v54  ;;  %v5395_v15 = vrot.slane %v15268_v51, 5  ;;  %v15270_v21 = vshll.u32 %v13664_v17, 16  ;;  %v15271_v53 = vshrl.u32 %v13725_v10, 16 }
 0x4c9   : > { %v5398_v36 = vrot.slane %v15269_v63, 4  ;;  %v15272_v41 = vshll.u32 %v13725_v10, 16  ;;  %v15273_v40 = vshrl.u32 %v13716_v56, 16  ;;  %v14061_v4 = vsel %vm4817_vm1, %v5022_v1, %v5031_v9 }
 0x4ca   : > { %v5399_v8 = vrot.slane %v15270_v21, 5  ;;  %v14052_v39 = vsel %vm5357_vm2, %v5388_v28, %v5392_v44  ;;  %v5402_v54 = vrot.slane %v15271_v53, 4  ;;  %v5396_v24 = vor.u32 %v5395_v15, %v5394_v6 }
 0x4cb   : > { %v5403_v30 = vrot.slane %v15272_v41, 5  ;;  %v5406_v34 = vrot.slane %v15273_v40, 4  ;;  %v15274_v17 = vshll.u32 %v13716_v56, 16  ;;  %v15275_v28 = vshrl.u32 %v13773_v29, 16 }
 0x4cc   : > { %v5400_v32 = vor.u32 %v5399_v8, %v5398_v36  ;;  %v15276_v3 = vshll.u32 %v13773_v29, 16  ;;  %v15277_v10 = vshrl.u32 %v13768_v47, 16  ;;  %v14072_v21 = vsel %vm5357_vm2, %v5392_v44, %v5396_v24 }
 0x4cd   : > { %v5407_v0 = vrot.slane %v15274_v17, 5  ;;  %v5404_v27 = vor.u32 %v5403_v30, %v5402_v54  ;;  %v5410_v62 = vrot.slane %v15275_v28, 4  ;;  %v15278_v56 = vshll.u32 %v13768_v47, 16  ;;  %v4410_v17 = vld [vmem:[#allocation2 + $0xc8] sm:$0xf] }
 0x4ce   : > { %v5411_v51 = vrot.slane %v15276_v3, 5  ;;  %v5414_v63 = vrot.slane %v15277_v10, 4  ;;  %v14075_v1 = vsel %vm5357_vm2, %v5396_v24, %v5400_v32  ;;  %v15279_v29 = vshrl.u32 %v13825_v48, 16 }
 0x4cf   : > { %v5408_v6 = vor.u32 %v5407_v0, %v5406_v34  ;;  %v5415_v15 = vrot.slane %v15278_v56, 5  ;;  %v14080_v36 = vsel %vm5357_vm2, %v5400_v32, %v5404_v27  ;;  %v15280_v54 = vshll.u32 %v13825_v48, 16 }
 0x4d0   : > { %v5412_v8 = vor.u32 %v5411_v51, %v5410_v62  ;;  %v5418_v53 = vrot.slane %v15279_v29, 4  ;;  %v15281_v40 = vshrl.u32 %v13817_v13, 16  ;;  %v15282_v47 = vshll.u32 %v13817_v13, 16 }
 0x4d1   : > { %v5419_v41 = vrot.slane %v15280_v54, 5  ;;  %v14087_v44 = vsel %vm5357_vm2, %v5404_v27, %v5408_v6  ;;  %v5416_v30 = vor.u32 %v5415_v15, %v5414_v63  ;;  %v15283_v28 = vshrl.u32 %v13873_v38, 16 }
 0x4d2   : > { %v5422_v34 = vrot.slane %v15281_v40, 4  ;;  %v5423_v24 = vrot.slane %v15282_v47, 5  ;;  %v14094_v32 = vsel %vm5357_vm2, %v5408_v6, %v5412_v8  ;;  %v15284_v48 = vshll.u32 %v13873_v38, 16 }
 0x4d3   : > { %v5420_v0 = vor.u32 %v5419_v41, %v5418_v53  ;;  %v5426_v62 = vrot.slane %v15283_v28, 4  ;;  %v4518_v27 = vrot.slane %v4410_v17, 4  ;;  %v5034_v51 = vshrl.u32 %v4410_v17, 16 }
 0x4d4   : > { %v5427_v3 = vrot.slane %v15284_v48, 5  ;;  %v5037_v10 = vshll.u32 %v4410_v17, 16  ;;  %v14101_v63 = vsel %vm5357_vm2, %v5412_v8, %v5416_v30  ;;  %v5424_v56 = vor.u32 %v5423_v24, %v5422_v34 }
 0x4d5   : > { %v14104_v13 = vsel %vm5357_vm2, %v5416_v30, %v5420_v0  ;;  %v15285_v6 = vshrl.u32 %v13869_v45, 16  ;;  %v15286_v53 = vrot.slane %v13987_v26, 4  ;;  %v5036_v38 = vrot.slane %v5034_v51, 3 }
 0x4d6   : > { %v5428_v15 = vor.u32 %v5427_v3, %v5426_v62  ;;  %v5039_v41 = vrot.slane %v5037_v10, 4  ;;  %v15287_v40 = vshll.u32 %v13869_v45, 16  ;;  %v14114_v8 = vsel %vm5357_vm2, %v5420_v0, %v5424_v56 }
 0x4d7   : > { %v5430_v29 = vrot.slane %v15285_v6, 4  ;;  %v4519_v54 = vsel %vm4470_vm0, %v15286_v53, %v4518_v27  ;;  %v15288_v34 = vshrl.u32 %v13912_v42, 16  ;;  %v15289_v17 = vshll.u32 %v13912_v42, 16 }
 0x4d8   : > { %v5431_v47 = vrot.slane %v15287_v40, 5  ;;  %10514 = vmatmul.mubr.bf16.gmra.mrb[44].mxu1 %v4519_v54  ;;  %v14117_v30 = vsel %vm5357_vm2, %v5424_v56, %v5428_v15  ;;  %v5040_v62 = vor.u32 %v5039_v41, %v5036_v38  ;;  %v15290_v3 = vshrl.u32 %v13907_v49, 16 }
 0x4d9   : > { %v5434_v24 = vrot.slane %v15288_v34, 4  ;;  %v5435_v28 = vrot.slane %v15289_v17, 5  ;;  %10533 = vmatprep.mubr.bf16.mxu1 %v4834_v37  ;;  %v15291_v27 = vshll.u32 %v13907_v49, 16  ;;  %v15292_v10 = vshrl.u32 %v13954_v18, 16 }
 0x4da   : > { %v5432_v48 = vor.u32 %v5431_v47, %v5430_v29  ;;  %v5438_v45 = vrot.slane %v15290_v3, 4  ;;  %v15293_v6 = vshll.u32 %v13954_v18, 16  ;;  %v15294_v54 = vshrl.u32 %v13949_v50, 16 }
 0x4db   : > { %v5439_v51 = vrot.slane %v15291_v27, 5  ;;  %v5436_v0 = vor.u32 %v5435_v28, %v5434_v24  ;;  %v5442_v56 = vrot.slane %v15292_v10, 4  ;;  %v14134_v37 = vsel %vm4817_vm1, %v5031_v9, %v5040_v62  ;;  %v11967_v28 = vld [vmem:[#allocation8 + $0x88] sm:$0xff]   ;;  %v14179_v27 = vld [vmem:[#allocation2 + $0x18] sm:$0xff] }
 0x4dc   : > { %v5443_v53 = vrot.slane %v15293_v6, 5  ;;  %v5446_v42 = vrot.slane %v15294_v54, 4  ;;  %v14137_v29 = vsel %vm5357_vm2, %v5428_v15, %v5432_v48  ;;  %v15295_v49 = vshll.u32 %v13949_v50, 16  ;;  %v15298_v54 = vld [vmem:[#allocation19_spill] sm:$0xff] }
 0x4dd   : > { %v5440_v38 = vor.u32 %v5439_v51, %v5438_v45  ;;  %v14142_v40 = vsel %vm5357_vm2, %v5432_v48, %v5436_v0  ;;  %v5450_v18 = vrot.slane %v5016_v7, 4  ;;  %v15296_v34 = vshll.u32 %v13992_v2, 16  ;;  %v11973_v45 = vld [vmem:[#allocation8 + $0xb8] sm:$0xff]  }
 0x4de   : > { %v5447_v41 = vrot.slane %v15295_v49, 5  ;;  %v5444_v47 = vor.u32 %v5443_v53, %v5442_v56  ;;  %v5454_v15 = vrot.slane %v5025_v58, 4  ;;  %v5455_v50 = vrot.slane %v5028_v22, 5  ;;  %v11968_v22 = vld [vmem:[#allocation8 + $0x90] sm:$0xff]   ;;  %v15297_v53 = vld [vmem:[#allocation18_spill] sm:$0xff] }
 0x4df   : > { %v5451_v24 = vrot.slane %v15296_v34, 5  ;;  %v14149_v9 = vsel %vm5357_vm2, %v5436_v0, %v5440_v38  ;;  %v4843_v2 = vsel %vm4817_vm1, %v13544_v12, %v13570_v33  ;;  %v11969_v12 = vld [vmem:[#allocation8 + $0x98] sm:$0xff]   ;;  %v11970_v33 = vld [vmem:[#allocation8 + $0xa0] sm:$0xff]   ;;  %v5860_v51 = vshrl.u32 %v14179_v27, 16 }
 0x4e0   : > { %v5448_v17 = vor.u32 %v5447_v41, %v5446_v42  ;;  %v14156_v62 = vsel %vm5357_vm2, %v5440_v38, %v5444_v47  ;;  %v14164_v3 = vor.u32 %v5455_v50, %v5454_v15  ;;  %10534 = vmatmul.mubr.bf16.vlgmr.msra.gmra.mrb[0].mxu1 %v4843_v2  ;;  %v12022_v42 = vld [vmem:[#allocation2 + $0x8] sm:$0xf0]  ;;  %v14221_v34 = vld [vmem:[#allocation2] sm:$0xff] }
 0x4e1   : > { %v5452_v48 = vor.u32 %v5451_v24, %v5450_v18  ;;  %10537 = vmatprep.mubr.bf16.mxu1 %v13597_v19  ;;  %10582 = vmatpush3.bf16.msra.mxu1 %v13719_v57  ;;  %v11971_v19 = vld [vmem:[#allocation8 + $0xa8] sm:$0xff]   ;;  %v11972_v57 = vld [vmem:[#allocation8 + $0xb0] sm:$0xff]   ;;  %v5362_v38 = vshll.u32 %v12022_v42, 16  ;;  %15304 = vst [vmem:[#allocation22_spill] sm:$0xff] %v14221_v34  ;;  %v15305_v24 = vld [vmem:[#allocation16_spill] sm:$0xff] }
 0x4e2   : > { %v14162_v7 = vsel %vm5357_vm2, %v5444_v47, %v5448_v17  ;;  %10583 = vmatprep.subr.bf16.mxu1 %v11967_v28  ;;  %v11975_v41 = vld [vmem:[#allocation8 + $0xc8] sm:$0xff]   ;;  %v11976_v18 = vld [vmem:[#allocation8 + $0xd0] sm:$0xff]   ;;  %v11978_v15 = vld [vmem:[#allocation8 + $0xe0] sm:$0xff]  }
 0x4e3   : > { %v14167_v58 = vsel %vm5357_vm2, %v5448_v17, %v5452_v48  ;;  %v14173_v26 = vsel %vm5357_vm2, %v5452_v48, %v14164_v3  ;;  %v5364_v49 = vrot.slane %v5362_v38, 5  ;;  %v15302_v47 = vld [vmem:[#allocation14_spill] sm:$0xff]  ;;  %v15306_v17 = vld [vmem:[#allocation17_spill] sm:$0xff] }
 0x4e4   : > { %v11979_v48 = vld [vmem:[#allocation8 + $0xe8] sm:$0xff]  }
 0x4e5   : > { %10584 = vmatpush3.bf16.msra.mxu1 %v11967_v28 }
 0x4e6   : > { %10585 = vmatprep.subr.bf16.mxu1 %v11968_v22 }
 0x4e8   : > { %10538 = vmatmul.mubr.bf16.gmra.mrb[4].mxu1 %v13629_v14  ;;  %v14181_v14 = vld [vmem:[#allocation2 + $0x20] sm:$0xff] }
 0x4e9   : > { %10541 = vmatprep.mubr.bf16.mxu1 %v13648_v59  ;;  %10586 = vmatpush3.bf16.msra.mxu1 %v11968_v22  ;;  %v5863_v59 = vshll.u32 %v14179_v27, 16  ;;  %v5868_v0 = vshrl.u32 %v14181_v14, 16  ;;  %v11980_v22 = vld [vmem:[#allocation8 + $0xf0] sm:$0xff]  }
 0x4ea   : > { %10587 = vmatprep.subr.bf16.mxu1 %v11969_v12 }
 0x4eb   : > { %v6782_v10 = vrot.slane %v5863_v59, 1 }
 0x4ed   : > { %10588 = vmatpush3.bf16.msra.mxu1 %v11969_v12  ;;  %v11981_v12 = vld [vmem:[#allocation8 + $0xf8] sm:$0xff]  }
 0x4ee   : > { %10589 = vmatprep.subr.bf16.mxu1 %v11970_v33 }
 0x4f0   : > { %10542 = vmatmul.mubr.bf16.gmra.mrb[8].mxu1 %v13684_v43  ;;  %v5871_v43 = vshll.u32 %v14181_v14, 16 }
 0x4f1   : > { %10545 = vmatprep.mubr.bf16.mxu1 %v13703_v11  ;;  %10590 = vmatpush3.bf16.msra.mxu1 %v11970_v33  ;;  %v11974_v11 = vld [vmem:[#allocation8 + $0xc0] sm:$0xff]  }
 0x4f2   : > { %10591 = vmatprep.subr.bf16.mxu1 %v11971_v19  ;;  %v11982_v33 = vld [vmem:[#allocation8 + $0x100] sm:$0xff]  }
 0x4f5   : > { %10592 = vmatpush3.bf16.msra.mxu1 %v11971_v19  ;;  %v14268_v19 = vld [vmem:[#allocation2 + $0x38] sm:$0xff] }
 0x4f6   : > { %10593 = vmatprep.subr.bf16.mxu1 %v11972_v57  ;;  %15310 = vst [vmem:[#allocation26_spill] sm:$0xff] %v14268_v19 }
 0x4f8   : > { %10546 = vmatmul.mubr.bf16.gmra.mrb[12].mxu1 %v13736_v60  ;;  %v6787_v60 = vrot.slane %v5871_v43, 1 }
 0x4f9   : > { %10549 = vmatprep.mubr.bf16.mxu1 %v13756_v31  ;;  %10594 = vmatpush3.bf16.msra.mxu1 %v11972_v57  ;;  %v6783_v31 = vor.u32 %v6782_v10, %v5860_v51 }
 0x4fa   : > { %10595 = vmatprep.subr.bf16.mxu1 %v11973_v45  ;;  %v14197_v56 = vor.u32 %v6787_v60, %v5868_v0 }
 0x4fb   : > { %v14202_v6 = vsel %vm6776_vm3, %v6783_v31, %v6787_v60 }
 0x4fd   : > { %10596 = vmatpush3.bf16.msra.mxu1 %v11973_v45 }
 0x4fe   : > { %10645 = vmatprep.subr.bf16.mxu1 %v11974_v11 }
 0x500   : > { %10550 = vmatmul.mubr.bf16.gmra.mrb[16].mxu1 %v13786_v5  ;;  %v15299_v5 = vld [vmem:[#allocation20_spill] sm:$0xff] }
 0x501   : > { %10553 = vmatprep.mubr.bf16.mxu1 %v13801_v55  ;;  %v15300_v55 = vld [vmem:[#allocation21_spill] sm:$0xff] }
 0x508   : > { %10554 = vmatmul.mubr.bf16.gmra.mrb[20].mxu1 %v13836_v23  ;;  %v5359_v23 = vshrl.u32 %v12022_v42, 16 }
 0x509   : > { %10557 = vmatprep.mubr.bf16.mxu1 %v13853_v16 }
 0x50a   : > { %v5361_v16 = vrot.slane %v5359_v23, 4 }
 0x510   : > { %10558 = vmatmul.mubr.bf16.gmra.mrb[24].mxu1 %v13884_v46  ;;  %v5365_v46 = vor.u32 %v5364_v49, %v5361_v16  ;;  %v11985_v49 = vld [vmem:[#allocation8 + $0x118] sm:$0xff]  }
 0x511   : > { %10561 = vmatprep.mubr.bf16.mxu1 %v13897_v25  ;;  %v15301_v25 = vld [vmem:[#allocation13_spill] sm:$0xff] }
 0x518   : > { %10562 = vmatmul.mubr.bf16.gmra.mrb[28].mxu1 %v13925_v35  ;;  %v5369_v35 = vsel %vm5357_vm2, %v5365_v46, %v15301_v25 }
 0x519   : > { %10565 = vmatprep.mubr.bf16.mxu1 %v15297_v53  ;;  %v14286_v53 = vld [vmem:[#allocation2 + $0x40] sm:$0xff] }
 0x51a   : > { %15311 = vst [vmem:[#allocation27_spill] sm:$0xff] %v14286_v53  ;;  %v14298_v23 = vshrl.u32 %v14286_v53, 16 }
 0x51c   : > { %v5902_v25 = vrot.slane %v14298_v23, 7 }
 0x520   : > { %10566 = vmatmul.mubr.bf16.gmra.mrb[32].mxu1 %v15298_v54  ;;  %v14291_v54 = vld [vmem:[#allocation2 + $0x48] sm:$0xff] }
 0x521   : > { %10569 = vmatprep.mubr.bf16.mxu1 %v15299_v5  ;;  %15312 = vst [vmem:[#allocation28_spill] sm:$0xff] %v14291_v54  ;;  %v14294_v5 = vshll.u32 %v14268_v19, 16  ;;  %v14302_v16 = vshrl.u32 %v14291_v54, 16 }
 0x528   : > { %10570 = vmatmul.mubr.bf16.gmra.mrb[36].mxu1 %v15300_v55  ;;  %v11984_v55 = vld [vmem:[#allocation8 + $0x110] sm:$0xff]  }
 0x529   : > { %10573 = vmatprep.mubr.bf16.mxu1 %v14017_v61  ;;  %v15303_v61 = vld [vmem:[#allocation15_spill] sm:$0xff] }
 0x530   : > { %10574 = vmatmul.mubr.bf16.gmra.mrb[40].mxu1 %v14037_v20  ;;  %v11977_v20 = vld [vmem:[#allocation8 + $0xd8] sm:$0xff]  }
 0x531   : > { %10577 = vmatprep.mubr.bf16.mxu1 %v14061_v4  ;;  %v15097_v4 = vshrl.u32 %v14221_v34, 16 }
 0x533   : > { %v8480_v50 = vrot.slane %v15097_v4, 4 }
 0x538   : > { %10578 = vmatmul.mubr.bf16.gmra.mrb[44].mxu1 %v14134_v37  ;;  %v15096_v37 = vshll.u32 %v14221_v34, 16  ;;  %v14443_v34 = vld [vmem:[#allocation2 + $0xb0] sm:$0xff] }
 0x539   : > { %10597 = vmatprep.mubr.bf16.mxu1 %v5369_v35  ;;  %15334 = vst [vmem:[#allocation50_spill] sm:$0xff] %v14443_v34 }
 0x53a   : > { %v8481_v28 = vrot.slane %v15096_v37, 5 }
 0x53c   : > { %v14231_v2 = vor.u32 %v8481_v28, %v8480_v50 }
 0x53e   : > { %15307 = vst [vmem:[#allocation23_spill] sm:$0xff] %v14231_v2 }
 0x540   : > { %10598 = vmatmul.mubr.bf16.vlgmr.msra.gmra.mrb[0].mxu1 %v15302_v47  ;;  %v14308_v47 = vld [vmem:[#allocation2 + $0x50] sm:$0xff] }
 0x541   : > { %10601 = vmatprep.mubr.bf16.mxu1 %v15303_v61  ;;  %10646 = vmatpush3.bf16.msra.mxu1 %v11974_v11  ;;  %v14280_v11 = vshrl.u32 %v14268_v19, 16  ;;  %15313 = vst [vmem:[#allocation29_spill] sm:$0xff] %v14308_v47  ;;  %v14311_v61 = vshll.u32 %v14286_v53, 16 }
 0x542   : > { %10647 = vmatprep.subr.bf16.mxu1 %v11975_v41 }
 0x543   : > { %v5894_v31 = vrot.slane %v14280_v11, 7 }
 0x545   : > { %10648 = vmatpush3.bf16.msra.mxu1 %v11975_v41  ;;  %v5897_v38 = vor.u32 %v14294_v5, %v5894_v31  ;;  %v5910_v41 = vrot.slane %v14302_v16, 7 }
 0x546   : > { %10649 = vmatprep.subr.bf16.mxu1 %v11976_v18 }
 0x548   : > { %10602 = vmatmul.mubr.bf16.gmra.mrb[4].mxu1 %v15305_v24  ;;  %v11986_v24 = vld [vmem:[#allocation8 + $0x120] sm:$0xff]  }
 0x549   : > { %10605 = vmatprep.mubr.bf16.mxu1 %v15306_v17  ;;  %10650 = vmatpush3.bf16.msra.mxu1 %v11976_v18  ;;  %v14313_v18 = vld [vmem:[#allocation2 + $0x58] sm:$0xff]  ;;  %v5905_v17 = vor.u32 %v14311_v61, %v5902_v25 }
 0x54a   : > { %10651 = vmatprep.subr.bf16.mxu1 %v11977_v20  ;;  %15314 = vst [vmem:[#allocation30_spill] sm:$0xff] %v14313_v18  ;;  %v14324_v28 = vshrl.u32 %v14313_v18, 16 }
 0x54d   : > { %10652 = vmatpush3.bf16.msra.mxu1 %v11977_v20  ;;  %v14316_v20 = vshll.u32 %v14291_v54, 16 }
 0x54e   : > { %10653 = vmatprep.subr.bf16.mxu1 %v11978_v15 }
 0x54f   : > { %v5913_v50 = vor.u32 %v14316_v20, %v5910_v41 }
 0x550   : > { %10606 = vmatmul.mubr.bf16.gmra.mrb[8].mxu1 %v14041_v52  ;;  %v5339_v52 = vld [vmem:[#allocation2 + $0xc8] sm:$0x1f] }
 0x551   : > { %10609 = vmatprep.mubr.bf16.mxu1 %v14052_v39  ;;  %10654 = vmatpush3.bf16.msra.mxu1 %v11978_v15  ;;  %v5459_v39 = vshrl.u32 %v5339_v52, 16  ;;  %v14320_v15 = vshrl.u32 %v14308_v47, 16 }
 0x552   : > { %10655 = vmatprep.subr.bf16.mxu1 %v11979_v48 }
 0x555   : > { %10656 = vmatpush3.bf16.msra.mxu1 %v11979_v48  ;;  %v11987_v48 = vld [vmem:[#allocation8 + $0x128] sm:$0xff]  }
 0x556   : > { %10657 = vmatprep.subr.bf16.mxu1 %v11980_v22 }
 0x558   : > { %10610 = vmatmul.mubr.bf16.gmra.mrb[12].mxu1 %v14072_v21  ;;  %v5462_v21 = vshll.u32 %v5339_v52, 16  ;;  %v5926_v52 = vrot.slane %v14324_v28, 7 }
 0x559   : > { %10613 = vmatprep.mubr.bf16.mxu1 %v14075_v1  ;;  %10658 = vmatpush3.bf16.msra.mxu1 %v11980_v22  ;;  %v5812_v1 = vld [vmem:[#allocation2 + $0x10] sm:$0x80]  ;;  %v5906_v22 = vsel %vm5854_vm4, %v5894_v31, %v5905_v17 }
 0x55a   : > { %10659 = vmatprep.subr.bf16.mxu1 %v11981_v12 }
 0x55d   : > { %10660 = vmatpush3.bf16.msra.mxu1 %v11981_v12  ;;  %v5918_v12 = vrot.slane %v14320_v15, 7 }
 0x55e   : > { %10709 = vmatprep.subr.bf16.mxu1 %v11982_v33 }
 0x560   : > { %10614 = vmatmul.mubr.bf16.gmra.mrb[16].mxu1 %v14080_v36  ;;  %v5461_v36 = vrot.slane %v5459_v39, 4  ;;  %v14330_v39 = vld [vmem:[#allocation2 + $0x60] sm:$0xff] }
 0x561   : > { %10617 = vmatprep.mubr.bf16.mxu1 %v14087_v44  ;;  %v5464_v44 = vrot.slane %v5462_v21, 5  ;;  %15315 = vst [vmem:[#allocation31_spill] sm:$0xff] %v14330_v39  ;;  %v14333_v21 = vshll.u32 %v14308_v47, 16 }
 0x568   : > { %10618 = vmatmul.mubr.bf16.gmra.mrb[20].mxu1 %v14094_v32  ;;  %v5856_v32 = vshrl.u32 %v5812_v1, 16  ;;  %v14335_v1 = vld [vmem:[#allocation2 + $0x68] sm:$0xff] }
 0x569   : > { %10621 = vmatprep.mubr.bf16.mxu1 %v14101_v63  ;;  %v5862_v63 = vrot.slane %v5860_v51, 7  ;;  %v11983_v51 = vld [vmem:[#allocation8 + $0x108] sm:$0xff]   ;;  %15316 = vst [vmem:[#allocation32_spill] sm:$0xff] %v14335_v1 }
 0x570   : > { %10622 = vmatmul.mubr.bf16.gmra.mrb[24].mxu1 %v14104_v13  ;;  %v14253_v13 = vld [vmem:[#allocation2 + $0x28] sm:$0xff] }
 0x571   : > { %10625 = vmatprep.mubr.bf16.mxu1 %v14114_v8  ;;  %15308 = vst [vmem:[#allocation24_spill] sm:$0xff] %v14253_v13  ;;  %v5465_v8 = vor.u32 %v5464_v44, %v5461_v36  ;;  %v14271_v57 = vshll.u32 %v14253_v13, 16  ;;  %v14338_v36 = vshll.u32 %v14313_v18, 16  ;;  %v11988_v44 = vld [vmem:[#allocation8 + $0x130] sm:$0xff]  }
 0x578   : > { %10626 = vmatmul.mubr.bf16.gmra.mrb[28].mxu1 %v14117_v30  ;;  %v5858_v30 = vrot.slane %v5856_v32, 7  ;;  %v5921_v32 = vor.u32 %v14333_v21, %v5918_v12 }
 0x579   : > { %10629 = vmatprep.mubr.bf16.mxu1 %v14137_v29  ;;  %v5865_v29 = vor.u32 %v5863_v59, %v5862_v63 }
 0x580   : > { %10630 = vmatmul.mubr.bf16.gmra.mrb[32].mxu1 %v14142_v40  ;;  %v14258_v40 = vshrl.u32 %v14253_v13, 16 }
 0x581   : > { %10633 = vmatprep.mubr.bf16.mxu1 %v14149_v9  ;;  %v5466_v9 = vsel %vm5357_vm2, %v14164_v3, %v5465_v8  ;;  %v5929_v8 = vor.u32 %v14338_v36, %v5926_v52 }
 0x588   : > { %10634 = vmatmul.mubr.bf16.gmra.mrb[36].mxu1 %v14156_v62  ;;  %v5870_v62 = vrot.slane %v5868_v0, 7 }
 0x589   : > { %10637 = vmatprep.mubr.bf16.mxu1 %v14162_v7  ;;  %v5866_v7 = vsel %vm5854_vm4, %v5858_v30, %v5865_v29  ;;  %v14346_v30 = vshrl.u32 %v14335_v1, 16  ;;  %v11989_v29 = vld [vmem:[#allocation8 + $0x138] sm:$0xff]  }
 0x58a   : > { %v5873_v45 = vor.u32 %v5871_v43, %v5870_v62 }
 0x58c   : > { %v5874_v0 = vsel %vm5854_vm4, %v5862_v63, %v5873_v45  ;;  %v14342_v63 = vshrl.u32 %v14330_v39, 16  ;;  %v14352_v45 = vld [vmem:[#allocation2 + $0x70] sm:$0xff] }
 0x58d   : > { %15317 = vst [vmem:[#allocation33_spill] sm:$0xff] %v14352_v45  ;;  %v14366_v31 = vshrl.u32 %v14352_v45, 16 }
 0x590   : > { %10638 = vmatmul.mubr.bf16.gmra.mrb[40].mxu1 %v14167_v58  ;;  %v5878_v58 = vrot.slane %v14258_v40, 7 }
 0x591   : > { %10641 = vmatprep.mubr.bf16.mxu1 %v14173_v26  ;;  %v14266_v26 = vld [vmem:[#allocation2 + $0x30] sm:$0xff] }
 0x592   : > { %15309 = vst [vmem:[#allocation25_spill] sm:$0xff] %v14266_v26  ;;  %v14276_v3 = vshrl.u32 %v14266_v26, 16  ;;  %v5881_v59 = vor.u32 %v14271_v57, %v5878_v58  ;;  %v14289_v43 = vshll.u32 %v14266_v26, 16 }
 0x594   : > { %v5886_v10 = vrot.slane %v14276_v3, 7  ;;  %v5882_v60 = vsel %vm5854_vm4, %v5870_v62, %v5881_v59  ;;  %v5934_v62 = vrot.slane %v14342_v63, 7  ;;  %v14355_v59 = vshll.u32 %v14330_v39, 16 }
 0x596   : > { %v5889_v42 = vor.u32 %v14289_v43, %v5886_v10  ;;  %v5898_v35 = vsel %vm5854_vm4, %v5886_v10, %v5897_v38  ;;  %v14362_v10 = vld [vmem:[#allocation8 + $0x140] sm:$0xff]  }
 0x598   : > { %10642 = vmatmul.mubr.bf16.gmra.mrb[44].mxu1 %v5466_v9  ;;  %v5890_v46 = vsel %vm5854_vm4, %v5878_v58, %v5889_v42  ;;  %v5922_v9 = vsel %vm5854_vm4, %v5910_v41, %v5921_v32  ;;  %v5942_v58 = vrot.slane %v14346_v30, 7  ;;  %v14380_v41 = vshll.u32 %v14352_v45, 16 }
 0x599   : > { %10661 = vmatprep.mubr.bf16.mxu1 %v5866_v7  ;;  %v5930_v7 = vsel %vm5854_vm4, %v5918_v12, %v5929_v8  ;;  %v14399_v8 = vld [vmem:[#allocation2 + $0x90] sm:$0xff] }
 0x59a   : > { %15323 = vst [vmem:[#allocation39_spill] sm:$0xff] %v14399_v8 }
 0x5a0   : > { %10662 = vmatmul.mubr.bf16.vlgmr.msra.gmra.mrb[0].mxu1 %v5874_v0  ;;  %v14360_v0 = vshll.u32 %v14335_v1, 16 }
 0x5a1   : > { %10665 = vmatprep.mubr.bf16.mxu1 %v5882_v60  ;;  %10710 = vmatpush3.bf16.msra.mxu1 %v11982_v33  ;;  %v5914_v33 = vsel %vm5854_vm4, %v5902_v25, %v5913_v50  ;;  %v5937_v60 = vor.u32 %v14355_v59, %v5934_v62 }
 0x5a2   : > { %10711 = vmatprep.subr.bf16.mxu1 %v11983_v51 }
 0x5a3   : > { %v5938_v38 = vsel %vm5854_vm4, %v5926_v52, %v5937_v60 }
 0x5a5   : > { %10712 = vmatpush3.bf16.msra.mxu1 %v11983_v51  ;;  %v14357_v51 = vld [vmem:[#allocation2 + $0x78] sm:$0xff] }
 0x5a6   : > { %10713 = vmatprep.subr.bf16.mxu1 %v11984_v55  ;;  %15318 = vst [vmem:[#allocation34_spill] sm:$0xff] %v14357_v51  ;;  %v14370_v42 = vshrl.u32 %v14357_v51, 16  ;;  %v14385_v17 = vshll.u32 %v14357_v51, 16 }
 0x5a8   : > { %10666 = vmatmul.mubr.bf16.gmra.mrb[4].mxu1 %v5890_v46  ;;  %v5958_v25 = vrot.slane %v14370_v42, 7 }
 0x5a9   : > { %10669 = vmatprep.mubr.bf16.mxu1 %v5898_v35  ;;  %10714 = vmatpush3.bf16.msra.mxu1 %v11984_v55  ;;  %v5945_v55 = vor.u32 %v14360_v0, %v5942_v58  ;;  %v14377_v35 = vld [vmem:[#allocation2 + $0x80] sm:$0xff] }
 0x5aa   : > { %10715 = vmatprep.subr.bf16.mxu1 %v11985_v49  ;;  %15319 = vst [vmem:[#allocation35_spill] sm:$0xff] %v14377_v35 }
 0x5ab   : > { %v5946_v46 = vsel %vm5854_vm4, %v5934_v62, %v5945_v55 }
 0x5ad   : > { %10716 = vmatpush3.bf16.msra.mxu1 %v11985_v49  ;;  %v5950_v49 = vrot.slane %v14366_v31, 7 }
 0x5ae   : > { %10717 = vmatprep.subr.bf16.mxu1 %v11986_v24 }
 0x5af   : > { %v5953_v50 = vor.u32 %v14380_v41, %v5950_v49 }
 0x5b0   : > { %10670 = vmatmul.mubr.bf16.gmra.mrb[8].mxu1 %v5906_v22  ;;  %v5961_v22 = vor.u32 %v14385_v17, %v5958_v25 }
 0x5b1   : > { %10673 = vmatprep.mubr.bf16.mxu1 %v5914_v33  ;;  %10718 = vmatpush3.bf16.msra.mxu1 %v11986_v24  ;;  %v14382_v24 = vld [vmem:[#allocation2 + $0x88] sm:$0xff]  ;;  %v5954_v33 = vsel %vm5854_vm4, %v5942_v58, %v5953_v50  ;;  %v14411_v58 = vshrl.u32 %v14399_v8, 16 }
 0x5b2   : > { %10719 = vmatprep.subr.bf16.mxu1 %v11987_v48  ;;  %15320 = vst [vmem:[#allocation36_spill] sm:$0xff] %v14382_v24  ;;  %v14393_v12 = vshrl.u32 %v14382_v24, 16  ;;  %v14407_v62 = vshll.u32 %v14382_v24, 16 }
 0x5b3   : > { %15326 = vst [vmem:[#allocation42_spill] sm:$0xff] %v14411_v58 }
 0x5b4   : > { %15322 = vst [vmem:[#allocation38_spill] sm:$0xff] %v14393_v12  ;;  %v5974_v32 = vrot.slane %v14393_v12, 7  ;;  %15325 = vst [vmem:[#allocation41_spill] sm:$0xff] %v14407_v62  ;;  %v14487_v12 = vld [vmem:[#allocation2 + $0xd0] sm:$0xff] }
 0x5b5   : > { %10720 = vmatpush3.bf16.msra.mxu1 %v11987_v48  ;;  %v14389_v48 = vshrl.u32 %v14377_v35, 16  ;;  %15346 = vst [vmem:[#allocation17_spill] sm:$0xff] %v14487_v12 }
 0x5b6   : > { %10721 = vmatprep.subr.bf16.mxu1 %v11988_v44  ;;  %v5977_v60 = vor.u32 %v14407_v62, %v5974_v32 }
 0x5b7   : > { %15321 = vst [vmem:[#allocation37_spill] sm:$0xff] %v14389_v48  ;;  %v5966_v52 = vrot.slane %v14389_v48, 7  ;;  %v14470_v48 = vld [vmem:[#allocation2 + $0xc8] sm:$0xff] }
 0x5b8   : > { %10674 = vmatmul.mubr.bf16.gmra.mrb[12].mxu1 %v5922_v9  ;;  %v14404_v9 = vld [vmem:[#allocation2 + $0x98] sm:$0xff]  ;;  %15342 = vst [vmem:[#allocation13_spill] sm:$0xff] %v14470_v48 }
 0x5b9   : > { %10677 = vmatprep.mubr.bf16.mxu1 %v5930_v7  ;;  %10722 = vmatpush3.bf16.msra.mxu1 %v11988_v44  ;;  %v5962_v44 = vsel %vm5854_vm4, %v5950_v49, %v5961_v22  ;;  %15324 = vst [vmem:[#allocation40_spill] sm:$0xff] %v14404_v9  ;;  %v14415_v55 = vshrl.u32 %v14404_v9, 16  ;;  %v5982_v49 = vrot.slane %v14411_v58, 7  ;;  %v14421_v22 = vld [vmem:[#allocation2 + $0xa0] sm:$0xff]  ;;  %v14429_v37 = vshll.u32 %v14404_v9, 16 }
 0x5ba   : > { %10723 = vmatprep.subr.bf16.mxu1 %v11989_v29  ;;  %15328 = vst [vmem:[#allocation44_spill] sm:$0xff] %v14421_v22  ;;  %v14446_v58 = vshll.u32 %v14421_v22, 16 }
 0x5bb   : > { %15327 = vst [vmem:[#allocation43_spill] sm:$0xff] %v14415_v55  ;;  %v5990_v50 = vrot.slane %v14415_v55, 7  ;;  %15331 = vst [vmem:[#allocation47_spill] sm:$0xff] %v14429_v37  ;;  %v14448_v55 = vld [vmem:[#allocation2 + $0xb8] sm:$0xff] }
 0x5bc   : > { %15335 = vst [vmem:[#allocation51_spill] sm:$0xff] %v14446_v58  ;;  %15336 = vst [vmem:[#allocation52_spill] sm:$0xff] %v14448_v55 }
 0x5bd   : > { %10724 = vmatpush3.bf16.msra.mxu1 %v11989_v29  ;;  %v14402_v29 = vshll.u32 %v14377_v35, 16 }
 0x5be   : > { %10773 = vmatprep.subr.bf16.mxu1 %v14362_v10 }
 0x5bf   : > { %v5969_v7 = vor.u32 %v14402_v29, %v5966_v52 }
 0x5c0   : > { %10678 = vmatmul.mubr.bf16.gmra.mrb[16].mxu1 %v5938_v38 }
 0x5c1   : > { %10681 = vmatprep.mubr.bf16.mxu1 %v5946_v46  ;;  %v5970_v38 = vsel %vm5854_vm4, %v5958_v25, %v5969_v7  ;;  %v5978_v46 = vsel %vm5854_vm4, %v5966_v52, %v5977_v60  ;;  %v14433_v7 = vshrl.u32 %v14421_v22, 16  ;;  %v5993_v52 = vor.u32 %v14429_v37, %v5990_v50 }
 0x5c3   : > { %15332 = vst [vmem:[#allocation48_spill] sm:$0xff] %v14433_v7  ;;  %v5994_v4 = vsel %vm5854_vm4, %v5982_v49, %v5993_v52  ;;  %v14459_v52 = vshrl.u32 %v14448_v55, 16 }
 0x5c5   : > { %15339 = vst [vmem:[#allocation19_spill] sm:$0xff] %v14459_v52 }
 0x5c8   : > { %10682 = vmatmul.mubr.bf16.gmra.mrb[20].mxu1 %v5954_v33  ;;  %v14424_v33 = vshll.u32 %v14399_v8, 16 }
 0x5c9   : > { %10685 = vmatprep.mubr.bf16.mxu1 %v5962_v44  ;;  %v14426_v44 = vld [vmem:[#allocation2 + $0xa8] sm:$0xff] }
 0x5ca   : > { %15329 = vst [vmem:[#allocation45_spill] sm:$0xff] %v14424_v33  ;;  %15330 = vst [vmem:[#allocation46_spill] sm:$0xff] %v14426_v44  ;;  %v5985_v25 = vor.u32 %v14424_v33, %v5982_v49  ;;  %v14437_v60 = vshrl.u32 %v14426_v44, 16  ;;  %v14451_v37 = vshll.u32 %v14426_v44, 16  ;;  %v14465_v33 = vld [vmem:[#allocation2 + $0xc0] sm:$0xff] }
 0x5cb   : > { %15340 = vst [vmem:[#allocation20_spill] sm:$0xff] %v14465_v33 }
 0x5cc   : > { %15333 = vst [vmem:[#allocation49_spill] sm:$0xff] %v14437_v60  ;;  %v6006_v2 = vrot.slane %v14437_v60, 7  ;;  %15337 = vst [vmem:[#allocation53_spill] sm:$0xff] %v14451_v37  ;;  %v6022_v60 = vrot.slane %v14459_v52, 7 }
 0x5ce   : > { %v6009_v49 = vor.u32 %v14451_v37, %v6006_v2  ;;  %v14473_v37 = vshll.u32 %v14448_v55, 16 }
 0x5d0   : > { %10686 = vmatmul.mubr.bf16.gmra.mrb[24].mxu1 %v5970_v38  ;;  %v5986_v38 = vsel %vm5854_vm4, %v5974_v32, %v5985_v25  ;;  %v14455_v25 = vshrl.u32 %v14443_v34, 16  ;;  %15343 = vst [vmem:[#allocation14_spill] sm:$0xff] %v14473_v37 }
 0x5d1   : > { %10689 = vmatprep.mubr.bf16.mxu1 %v5978_v46  ;;  %v5998_v46 = vrot.slane %v14433_v7, 7 }
 0x5d2   : > { %15338 = vst [vmem:[#allocation18_spill] sm:$0xff] %v14455_v25 }
 0x5d3   : > { %v6001_v32 = vor.u32 %v14446_v58, %v5998_v46  ;;  %v6010_v7 = vsel %vm5854_vm4, %v5998_v46, %v6009_v49  ;;  %v14468_v58 = vshll.u32 %v14443_v34, 16  ;;  %v6025_v46 = vor.u32 %v14473_v37, %v6022_v60 }
 0x5d4   : > { %v14481_v49 = vshrl.u32 %v14470_v48, 16  ;;  %v14493_v37 = vshll.u32 %v14470_v48, 16 }
 0x5d5   : > { %15341 = vst [vmem:[#allocation21_spill] sm:$0xff] %v14468_v58 }
 0x5d6   : > { %15345 = vst [vmem:[#allocation16_spill] sm:$0xff] %v14481_v49  ;;  %v6038_v52 = vrot.slane %v14481_v49, 7 }
 0x5d8   : > { %10690 = vmatmul.mubr.bf16.gmra.mrb[28].mxu1 %v5986_v38  ;;  %v6014_v38 = vrot.slane %v14455_v25, 7 }
 0x5d9   : > { %10693 = vmatprep.mubr.bf16.mxu1 %v5994_v4  ;;  %v6002_v4 = vsel %vm5854_vm4, %v5990_v50, %v6001_v32  ;;  %v14477_v32 = vshrl.u32 %v14465_v33, 16 }
 0x5da   : > { %v6017_v50 = vor.u32 %v14468_v58, %v6014_v38  ;;  %v6026_v25 = vsel %vm5854_vm4, %v6014_v38, %v6025_v46  ;;  %v14490_v58 = vshll.u32 %v14465_v33, 16 }
 0x5db   : > { %15344 = vst [vmem:[#allocation15_spill] sm:$0xff] %v14477_v32 }
 0x5dc   : > { %15347 = vst [vmem:[#allocation54_spill] sm:$0xff] %v14490_v58 }
 0x5e0   : > { %10694 = vmatmul.mubr.bf16.gmra.mrb[32].mxu1 %v6002_v4  ;;  %v6030_v4 = vrot.slane %v14477_v32, 7 }
 0x5e1   : > { %10697 = vmatprep.mubr.bf16.mxu1 %v6010_v7  ;;  %v6018_v7 = vsel %vm5854_vm4, %v6006_v2, %v6017_v50  ;;  %v14497_v2 = vshrl.u32 %v14487_v12, 16  ;;  %v6041_v50 = vor.u32 %v14493_v37, %v6038_v52 }
 0x5e2   : > { %v6033_v62 = vor.u32 %v14490_v58, %v6030_v4  ;;  %v11991_v58 = vld [vmem:[#allocation8 + $0x148] sm:$0xff]  }
 0x5e3   : > { %v6046_v46 = vrot.slane %v14497_v2, 7 }
 0x5e4   : > { %v6034_v38 = vsel %vm5854_vm4, %v6022_v60, %v6033_v62  ;;  %v11992_v62 = vld [vmem:[#allocation8 + $0x150] sm:$0xff]   ;;  %v11993_v60 = vld [vmem:[#allocation8 + $0x158] sm:$0xff]  }
 0x5e8   : > { %10698 = vmatmul.mubr.bf16.gmra.mrb[36].mxu1 %v6018_v7  ;;  %v14504_v7 = vshll.u32 %v14487_v12, 16 }
 0x5e9   : > { %10701 = vmatprep.mubr.bf16.mxu1 %v6026_v25  ;;  %v6042_v25 = vsel %vm5854_vm4, %v6030_v4, %v6041_v50  ;;  %v6803_v4 = vrot.slane %v14289_v43, 1  ;;  %v11999_v50 = vld [vmem:[#allocation8 + $0x188] sm:$0xff]  }
 0x5ea   : > { %15348 = vst [vmem:[#allocation55_spill] sm:$0xff] %v14504_v7  ;;  %v6049_v32 = vor.u32 %v14504_v7, %v6046_v46 }
 0x5ec   : > { %v6050_v49 = vsel %vm5854_vm4, %v6038_v52, %v6049_v32  ;;  %v11994_v52 = vld [vmem:[#allocation8 + $0x160] sm:$0xff]   ;;  %v6795_v32 = vrot.slane %v14271_v57, 1 }
 0x5f0   : > { %10702 = vmatmul.mubr.bf16.gmra.mrb[40].mxu1 %v6034_v38  ;;  %v6796_v38 = vsel %vm6776_vm3, %v14197_v56, %v6795_v32 }
 0x5f1   : > { %10705 = vmatprep.mubr.bf16.mxu1 %v6042_v25  ;;  %v6811_v25 = vrot.slane %v14294_v5, 1 }
 0x5f8   : > { %10706 = vmatmul.mubr.bf16.gmra.mrb[44].mxu1 %v6050_v49  ;;  %v6799_v49 = vor.u32 %v6795_v32, %v14258_v40 }
 0x5f9   : > { %10725 = vmatprep.mubr.bf16.mxu1 %v14179_v27  ;;  %v11995_v27 = vld [vmem:[#allocation8 + $0x168] sm:$0xff]  }
 0x5fa   : > { %v6804_v46 = vsel %vm6776_vm3, %v6799_v49, %v6803_v4 }
 0x600   : > { %10726 = vmatmul.mubr.bf16.vlgmr.msra.gmra.mrb[0].mxu1 %v14181_v14  ;;  %v11996_v14 = vld [vmem:[#allocation8 + $0x170] sm:$0xff]  }
 0x601   : > { %10729 = vmatprep.mubr.bf16.mxu1 %v14253_v13  ;;  %10774 = vmatpush3.bf16.msra.mxu1 %v14362_v10  ;;  %v11997_v10 = vld [vmem:[#allocation8 + $0x178] sm:$0xff]  }
 0x602   : > { %10775 = vmatprep.subr.bf16.mxu1 %v11991_v58 }
 0x605   : > { %10776 = vmatpush3.bf16.msra.mxu1 %v11991_v58  ;;  %v11998_v58 = vld [vmem:[#allocation8 + $0x180] sm:$0xff]  }
 0x606   : > { %10777 = vmatprep.subr.bf16.mxu1 %v11992_v62 }
 0x608   : > { %10730 = vmatmul.mubr.bf16.gmra.mrb[4].mxu1 %v14266_v26 }
 0x609   : > { %10733 = vmatprep.mubr.bf16.mxu1 %v14268_v19  ;;  %10778 = vmatpush3.bf16.msra.mxu1 %v11992_v62  ;;  %v12000_v62 = vld [vmem:[#allocation8 + $0x190] sm:$0xff]  }
 0x60a   : > { %10779 = vmatprep.subr.bf16.mxu1 %v11993_v60 }
 0x60d   : > { %10780 = vmatpush3.bf16.msra.mxu1 %v11993_v60  ;;  %v6815_v60 = vor.u32 %v6811_v25, %v14280_v11 }
 0x60e   : > { %10781 = vmatprep.subr.bf16.mxu1 %v11994_v52 }
 0x610   : > { %10734 = vmatmul.mubr.bf16.gmra.mrb[8].mxu1 %v14286_v53 }
 0x611   : > { %10737 = vmatprep.mubr.bf16.mxu1 %v14291_v54  ;;  %10782 = vmatpush3.bf16.msra.mxu1 %v11994_v52  ;;  %v6819_v52 = vrot.slane %v14311_v61, 1 }
 0x612   : > { %10783 = vmatprep.subr.bf16.mxu1 %v11995_v27 }
 0x613   : > { %v6823_v49 = vor.u32 %v6819_v52, %v14298_v23 }
 0x615   : > { %10784 = vmatpush3.bf16.msra.mxu1 %v11995_v27  ;;  %v12001_v27 = vld [vmem:[#allocation8 + $0x198] sm:$0xff]  }
 0x616   : > { %10785 = vmatprep.subr.bf16.mxu1 %v11996_v14 }
 0x618   : > { %10738 = vmatmul.mubr.bf16.gmra.mrb[12].mxu1 %v14308_v47 }
 0x619   : > { %10741 = vmatprep.mubr.bf16.mxu1 %v14313_v18  ;;  %10786 = vmatpush3.bf16.msra.mxu1 %v11996_v14  ;;  %v6820_v14 = vsel %vm6776_vm3, %v6815_v60, %v6819_v52  ;;  %v6851_v52 = vrot.slane %v14355_v59, 1  ;;  %v6963_v18 = vrot.slane %v14504_v7, 1 }
 0x61a   : > { %10787 = vmatprep.subr.bf16.mxu1 %v11997_v10 }
 0x61b   : > { %v6967_v19 = vor.u32 %v6963_v18, %v14497_v2 }
 0x61d   : > { %10788 = vmatpush3.bf16.msra.mxu1 %v11997_v10  ;;  %v6827_v10 = vrot.slane %v14316_v20, 1 }
 0x61e   : > { %10837 = vmatprep.subr.bf16.mxu1 %v11998_v58 }
 0x61f   : > { %v6831_v32 = vor.u32 %v6827_v10, %v14302_v16 }
 0x620   : > { %10742 = vmatmul.mubr.bf16.gmra.mrb[16].mxu1 %v14330_v39  ;;  %v15366_v39 = vld [vmem:[#allocation15_spill] sm:$0xff] }
 0x621   : > { %10745 = vmatprep.mubr.bf16.mxu1 %v14335_v1  ;;  %v6955_v1 = vrot.slane %v14493_v37, 1 }
 0x628   : > { %10746 = vmatmul.mubr.bf16.gmra.mrb[20].mxu1 %v14352_v45 }
 0x629   : > { %10749 = vmatprep.mubr.bf16.mxu1 %v14357_v51  ;;  %v15364_v51 = vld [vmem:[#allocation54_spill] sm:$0xff] }
 0x630   : > { %10750 = vmatmul.mubr.bf16.gmra.mrb[24].mxu1 %v14377_v35 }
 0x631   : > { %10753 = vmatprep.mubr.bf16.mxu1 %v14382_v24  ;;  %v15361_v24 = vld [vmem:[#allocation14_spill] sm:$0xff] }
 0x632   : > { %v6939_v35 = vrot.slane %v15361_v24, 1 }
 0x638   : > { %10754 = vmatmul.mubr.bf16.gmra.mrb[28].mxu1 %v14399_v8 }
 0x639   : > { %10757 = vmatprep.mubr.bf16.mxu1 %v14404_v9  ;;  %v15360_v9 = vld [vmem:[#allocation21_spill] sm:$0xff] }
 0x640   : > { %10758 = vmatmul.mubr.bf16.gmra.mrb[32].mxu1 %v14421_v22 }
 0x641   : > { %10761 = vmatprep.mubr.bf16.mxu1 %v14426_v44  ;;  %v15357_v44 = vld [vmem:[#allocation53_spill] sm:$0xff] }
 0x642   : > { %v6923_v22 = vrot.slane %v15357_v44, 1 }
 0x648   : > { %10762 = vmatmul.mubr.bf16.gmra.mrb[36].mxu1 %v14443_v34 }
 0x649   : > { %10765 = vmatprep.mubr.bf16.mxu1 %v14448_v55  ;;  %v15356_v55 = vld [vmem:[#allocation51_spill] sm:$0xff] }
 0x650   : > { %10766 = vmatmul.mubr.bf16.gmra.mrb[40].mxu1 %v14465_v33 }
 0x651   : > { %10769 = vmatprep.mubr.bf16.mxu1 %v14470_v48  ;;  %v15353_v48 = vld [vmem:[#allocation47_spill] sm:$0xff] }
 0x652   : > { %v6907_v33 = vrot.slane %v15353_v48, 1 }
 0x658   : > { %10770 = vmatmul.mubr.bf16.gmra.mrb[44].mxu1 %v14487_v12 }
 0x659   : > { %10789 = vmatprep.mubr.bf16.mxu1 %v14202_v6  ;;  %v6807_v6 = vor.u32 %v6803_v4, %v14276_v3  ;;  %v6835_v4 = vrot.slane %v14333_v21, 1 }
 0x65b   : > { %v6812_v56 = vsel %vm6776_vm3, %v6807_v6, %v6811_v25  ;;  %v6843_v25 = vrot.slane %v14338_v36, 1  ;;  %v6839_v6 = vor.u32 %v6835_v4, %v14320_v15 }
 0x65d   : > { %v6847_v60 = vor.u32 %v6843_v25, %v14324_v28 }
 0x660   : > { %10790 = vmatmul.mubr.bf16.vlgmr.msra.gmra.mrb[0].mxu1 %v6796_v38  ;;  %v6828_v38 = vsel %vm6776_vm3, %v6823_v49, %v6827_v10  ;;  %v6859_v10 = vrot.slane %v14360_v0, 1  ;;  %v6855_v49 = vor.u32 %v6851_v52, %v14342_v63 }
 0x661   : > { %10793 = vmatprep.mubr.bf16.mxu1 %v6804_v46  ;;  %10838 = vmatpush3.bf16.msra.mxu1 %v11998_v58  ;;  %v12002_v58 = vld [vmem:[#allocation8 + $0x1a0] sm:$0xff]   ;;  %v6836_v46 = vsel %vm6776_vm3, %v6831_v32, %v6835_v4  ;;  %v6867_v4 = vrot.slane %v14380_v41, 1 }
 0x662   : > { %10839 = vmatprep.subr.bf16.mxu1 %v11999_v50  ;;  %v6863_v32 = vor.u32 %v6859_v10, %v14346_v30 }
 0x665   : > { %10840 = vmatpush3.bf16.msra.mxu1 %v11999_v50  ;;  %v12003_v50 = vld [vmem:[#allocation8 + $0x1a8] sm:$0xff]  }
 0x666   : > { %10841 = vmatprep.subr.bf16.mxu1 %v12000_v62 }
 0x668   : > { %10794 = vmatmul.mubr.bf16.gmra.mrb[4].mxu1 %v6812_v56  ;;  %v6844_v56 = vsel %vm6776_vm3, %v6839_v6, %v6843_v25 }
 0x669   : > { %10797 = vmatprep.mubr.bf16.mxu1 %v6820_v14  ;;  %10842 = vmatpush3.bf16.msra.mxu1 %v12000_v62  ;;  %v12004_v62 = vld [vmem:[#allocation8 + $0x1b0] sm:$0xff]   ;;  %v6852_v14 = vsel %vm6776_vm3, %v6847_v60, %v6851_v52  ;;  %v6883_v60 = vrot.slane %v14402_v29, 1 }
 0x66a   : > { %10843 = vmatprep.subr.bf16.mxu1 %v12001_v27 }
 0x66d   : > { %10844 = vmatpush3.bf16.msra.mxu1 %v12001_v27  ;;  %v12005_v27 = vld [vmem:[#allocation8 + $0x1b8] sm:$0xff]  }
 0x66e   : > { %10845 = vmatprep.subr.bf16.mxu1 %v12002_v58 }
 0x670   : > { %10798 = vmatmul.mubr.bf16.gmra.mrb[8].mxu1 %v6828_v38  ;;  %v6868_v38 = vsel %vm6776_vm3, %v6863_v32, %v6867_v4  ;;  %v15351_v32 = vld [vmem:[#allocation37_spill] sm:$0xff] }
 0x671   : > { %10801 = vmatprep.mubr.bf16.mxu1 %v6836_v46  ;;  %10846 = vmatpush3.bf16.msra.mxu1 %v12002_v58  ;;  %v14559_v58 = vld [vmem:[#allocation8 + $0x1c0] sm:$0xff]   ;;  %v6875_v46 = vrot.slane %v14385_v17, 1 }
 0x672   : > { %10847 = vmatprep.subr.bf16.mxu1 %v12003_v50 }
 0x673   : > { %v6879_v25 = vor.u32 %v6875_v46, %v14370_v42 }
 0x675   : > { %10848 = vmatpush3.bf16.msra.mxu1 %v12003_v50  ;;  %v6860_v50 = vsel %vm6776_vm3, %v6855_v49, %v6859_v10  ;;  %v6884_v52 = vsel %vm6776_vm3, %v6879_v25, %v6883_v60  ;;  %v6887_v49 = vor.u32 %v6883_v60, %v15351_v32  ;;  %v15355_v25 = vld [vmem:[#allocation42_spill] sm:$0xff] }
 0x676   : > { %10849 = vmatprep.subr.bf16.mxu1 %v12004_v62 }
 0x678   : > { %10802 = vmatmul.mubr.bf16.gmra.mrb[12].mxu1 %v6844_v56 }
 0x679   : > { %10805 = vmatprep.mubr.bf16.mxu1 %v6852_v14  ;;  %10850 = vmatpush3.bf16.msra.mxu1 %v12004_v62  ;;  %v6871_v62 = vor.u32 %v6867_v4, %v14366_v31  ;;  %v15350_v14 = vld [vmem:[#allocation38_spill] sm:$0xff] }
 0x67a   : > { %10851 = vmatprep.subr.bf16.mxu1 %v12005_v27 }
 0x67b   : > { %v6876_v6 = vsel %vm6776_vm3, %v6871_v62, %v6875_v46  ;;  %v15354_v46 = vld [vmem:[#allocation43_spill] sm:$0xff] }
 0x67c   : > { %v6911_v62 = vor.u32 %v6907_v33, %v15354_v46 }
 0x67d   : > { %10852 = vmatpush3.bf16.msra.mxu1 %v12005_v27  ;;  %v15349_v27 = vld [vmem:[#allocation41_spill] sm:$0xff] }
 0x67e   : > { %10901 = vmatprep.subr.bf16.mxu1 %v14559_v58  ;;  %v6891_v56 = vrot.slane %v15349_v27, 1 }
 0x680   : > { %10806 = vmatmul.mubr.bf16.gmra.mrb[16].mxu1 %v6860_v50  ;;  %v6895_v10 = vor.u32 %v6891_v56, %v15350_v14  ;;  %v15352_v50 = vld [vmem:[#allocation45_spill] sm:$0xff]  ;;  %v6892_v12 = vsel %vm6776_vm3, %v6887_v49, %v6891_v56 }
 0x681   : > { %10809 = vmatprep.mubr.bf16.mxu1 %v6868_v38  ;;  %v6899_v38 = vrot.slane %v15352_v50, 1 }
 0x683   : > { %v6900_v4 = vsel %vm6776_vm3, %v6895_v10, %v6899_v38  ;;  %v15359_v10 = vld [vmem:[#allocation48_spill] sm:$0xff] }
 0x688   : > { %10810 = vmatmul.mubr.bf16.gmra.mrb[20].mxu1 %v6876_v6  ;;  %v6903_v6 = vor.u32 %v6899_v38, %v15355_v25 }
 0x689   : > { %10813 = vmatprep.mubr.bf16.mxu1 %v6884_v52  ;;  %v6915_v52 = vrot.slane %v15356_v55, 1 }
 0x68a   : > { %v6908_v34 = vsel %vm6776_vm3, %v6903_v6, %v6907_v33 }
 0x68b   : > { %v6916_v60 = vsel %vm6776_vm3, %v6911_v62, %v6915_v52  ;;  %v6919_v49 = vor.u32 %v6915_v52, %v15359_v10  ;;  %v15363_v62 = vld [vmem:[#allocation18_spill] sm:$0xff] }
 0x68d   : > { %v6924_v8 = vsel %vm6776_vm3, %v6919_v49, %v6923_v22  ;;  %v6758_v49 = vld [vmem:[#allocation2 + $0xd8] sm:$0x1] }
 0x68e   : > { %v6969_v53 = vshll.u32 %v6758_v49, 16  ;;  %v7389_v49 = vrot.slane %v14280_v11, 3 }
 0x690   : > { %10814 = vmatmul.mubr.bf16.gmra.mrb[24].mxu1 %v6892_v12  ;;  %v15358_v12 = vld [vmem:[#allocation49_spill] sm:$0xff] }
 0x691   : > { %10817 = vmatprep.mubr.bf16.mxu1 %v6900_v4  ;;  %v6927_v56 = vor.u32 %v6923_v22, %v15358_v12  ;;  %v6931_v4 = vrot.slane %v15360_v9, 1  ;;  %v15365_v22 = vld [vmem:[#allocation16_spill] sm:$0xff] }
 0x693   : > { %v6932_v38 = vsel %vm6776_vm3, %v6927_v56, %v6931_v4  ;;  %v6935_v6 = vor.u32 %v6931_v4, %v15363_v62  ;;  %v6959_v56 = vor.u32 %v6955_v1, %v15365_v22 }
 0x695   : > { %v6940_v45 = vsel %vm6776_vm3, %v6935_v6, %v6939_v35 }
 0x698   : > { %10818 = vmatmul.mubr.bf16.gmra.mrb[28].mxu1 %v6908_v34  ;;  %v15362_v34 = vld [vmem:[#allocation19_spill] sm:$0xff] }
 0x699   : > { %10821 = vmatprep.mubr.bf16.mxu1 %v6916_v60  ;;  %v6943_v33 = vor.u32 %v6939_v35, %v15362_v34  ;;  %v6947_v60 = vrot.slane %v15364_v51, 1  ;;  %v7371_v35 = vrot.slane %v14258_v40, 3 }
 0x69b   : > { %v6948_v52 = vsel %vm6776_vm3, %v6943_v33, %v6947_v60  ;;  %v7374_v33 = vrot.slane %v14271_v57, 4 }
 0x69d   : > { %v7375_v26 = vor.u32 %v7374_v33, %v7371_v35  ;;  %v7407_v33 = vrot.slane %v14302_v16, 3 }
 0x6a0   : > { %10822 = vmatmul.mubr.bf16.gmra.mrb[32].mxu1 %v6924_v8  ;;  %v7318_v8 = vld [vmem:[#allocation2 + $0x20] sm:$0xf8] }
 0x6a1   : > { %10825 = vmatprep.mubr.bf16.mxu1 %v6932_v38  ;;  %v6951_v38 = vor.u32 %v6947_v60, %v15366_v39  ;;  %v7361_v47 = vshrl.u32 %v7318_v8, 16  ;;  %v7364_v4 = vshll.u32 %v7318_v8, 16  ;;  %v6971_v60 = vrot.slane %v6969_v53, 1 }
 0x6a3   : > { %v6956_v54 = vsel %vm6776_vm3, %v6951_v38, %v6955_v1  ;;  %v7363_v6 = vrot.slane %v7361_v47, 3  ;;  %v6972_v8 = vsel %vm6776_vm3, %v6967_v19, %v6971_v60  ;;  %v7380_v1 = vrot.slane %v14276_v3, 3 }
 0x6a4   : > { %v7392_v38 = vrot.slane %v14294_v5, 4  ;;  %v7401_v19 = vrot.slane %v14311_v61, 4 }
 0x6a8   : > { %10826 = vmatmul.mubr.bf16.gmra.mrb[36].mxu1 %v6940_v45  ;;  %v6964_v45 = vsel %vm6776_vm3, %v6959_v56, %v6963_v18  ;;  %v12007_v18 = vld [vmem:[#allocation8 + $0x1c8] sm:$0xff]  }
 0x6a9   : > { %10829 = vmatprep.mubr.bf16.mxu1 %v6948_v52  ;;  %v7366_v52 = vrot.slane %v7364_v4, 4  ;;  %v7393_v4 = vor.u32 %v7392_v38, %v7389_v49  ;;  %v7425_v49 = vrot.slane %v14324_v28, 3  ;;  %v12010_v38 = vld [vmem:[#allocation8 + $0x1e0] sm:$0xff]  }
 0x6ab   : > { %v7367_v13 = vor.u32 %v7366_v52, %v7363_v6  ;;  %v12008_v6 = vld [vmem:[#allocation8 + $0x1d0] sm:$0xff]  }
 0x6ad   : > { %v7376_v56 = vsel %vm4817_vm1, %v7367_v13, %v7375_v26  ;;  %v7410_v13 = vrot.slane %v14316_v20, 4 }
 0x6af   : > { %v7411_v60 = vor.u32 %v7410_v13, %v7407_v33  ;;  %v7443_v33 = vrot.slane %v14346_v30, 3  ;;  %v7446_v13 = vrot.slane %v14360_v0, 4 }
 0x6b0   : > { %10830 = vmatmul.mubr.bf16.gmra.mrb[40].mxu1 %v6956_v54  ;;  %v7383_v54 = vrot.slane %v14289_v43, 4 }
 0x6b1   : > { %10833 = vmatprep.mubr.bf16.mxu1 %v6964_v45  ;;  %v7398_v45 = vrot.slane %v14298_v23, 3 }
 0x6b2   : > { %v7384_v47 = vor.u32 %v7383_v54, %v7380_v1  ;;  %v7416_v1 = vrot.slane %v14320_v15, 3  ;;  %v7419_v54 = vrot.slane %v14333_v21, 4 }
 0x6b3   : > { %v7402_v52 = vor.u32 %v7401_v19, %v7398_v45  ;;  %v7434_v45 = vrot.slane %v14342_v63, 3  ;;  %v7437_v19 = vrot.slane %v14355_v59, 4 }
 0x6b4   : > { %v7385_v53 = vsel %vm4817_vm1, %v7375_v26, %v7384_v47  ;;  %v7394_v35 = vsel %vm4817_vm1, %v7384_v47, %v7393_v4  ;;  %v12009_v26 = vld [vmem:[#allocation8 + $0x1d8] sm:$0xff]   ;;  %v7420_v47 = vor.u32 %v7419_v54, %v7416_v1  ;;  %v7452_v1 = vrot.slane %v14366_v31, 3 }
 0x6b5   : > { %v7455_v54 = vrot.slane %v14380_v41, 4 }
 0x6b8   : > { %10834 = vmatmul.mubr.bf16.gmra.mrb[44].mxu1 %v6972_v8  ;;  %v7403_v8 = vsel %vm4817_vm1, %v7393_v4, %v7402_v52  ;;  %v12011_v4 = vld [vmem:[#allocation8 + $0x1e8] sm:$0xff]  }
 0x6b9   : > { %10853 = vmatprep.mubr.bf16.mxu1 %v7376_v56  ;;  %v7412_v56 = vsel %vm4817_vm1, %v7402_v52, %v7411_v60  ;;  %v7438_v52 = vor.u32 %v7437_v19, %v7434_v45  ;;  %v7473_v45 = vrot.slane %v14402_v29, 4 }
 0x6c0   : > { %10854 = vmatmul.mubr.bf16.vlgmr.msra.gmra.mrb[0].mxu1 %v7385_v53  ;;  %v7421_v53 = vsel %vm4817_vm1, %v7411_v60, %v7420_v47  ;;  %v12013_v60 = vld [vmem:[#allocation8 + $0x1f8] sm:$0xff]  }
 0x6c1   : > { %10857 = vmatprep.mubr.bf16.mxu1 %v7394_v35  ;;  %10902 = vmatpush3.bf16.msra.mxu1 %v14559_v58  ;;  %v7428_v58 = vrot.slane %v14338_v36, 4 }
 0x6c2   : > { %10903 = vmatprep.subr.bf16.mxu1 %v12007_v18 }
 0x6c5   : > { %10904 = vmatpush3.bf16.msra.mxu1 %v12007_v18  ;;  %v7429_v18 = vor.u32 %v7428_v58, %v7425_v49  ;;  %v7461_v49 = vrot.slane %v14370_v42, 3  ;;  %v7464_v58 = vrot.slane %v14385_v17, 4 }
 0x6c6   : > { %10905 = vmatprep.subr.bf16.mxu1 %v12008_v6 }
 0x6c7   : > { %v7430_v35 = vsel %vm4817_vm1, %v7420_v47, %v7429_v18  ;;  %v7456_v47 = vor.u32 %v7455_v54, %v7452_v1  ;;  %v7497_v1 = vrot.slane %v15354_v46, 3  ;;  %v7500_v54 = vrot.slane %v15353_v48, 4 }
 0x6c8   : > { %10858 = vmatmul.mubr.bf16.gmra.mrb[4].mxu1 %v7403_v8  ;;  %v7439_v8 = vsel %vm4817_vm1, %v7429_v18, %v7438_v52 }
 0x6c9   : > { %10861 = vmatprep.mubr.bf16.mxu1 %v7412_v56  ;;  %10906 = vmatpush3.bf16.msra.mxu1 %v12008_v6  ;;  %v12012_v6 = vld [vmem:[#allocation8 + $0x1f0] sm:$0xff]  }
 0x6ca   : > { %10907 = vmatprep.subr.bf16.mxu1 %v12009_v26 }
 0x6cd   : > { %10908 = vmatpush3.bf16.msra.mxu1 %v12009_v26  ;;  %v7447_v26 = vor.u32 %v7446_v13, %v7443_v33  ;;  %v7482_v33 = vrot.slane %v15349_v27, 4 }
 0x6ce   : > { %10909 = vmatprep.subr.bf16.mxu1 %v12010_v38 }
 0x6cf   : > { %v7448_v56 = vsel %vm4817_vm1, %v7438_v52, %v7447_v26  ;;  %v7457_v18 = vsel %vm4817_vm1, %v7447_v26, %v7456_v47  ;;  %v7491_v26 = vrot.slane %v15352_v50, 4 }
 0x6d0   : > { %10862 = vmatmul.mubr.bf16.gmra.mrb[8].mxu1 %v7421_v53  ;;  %v7470_v53 = vrot.slane %v15351_v32, 3 }
 0x6d1   : > { %10865 = vmatprep.mubr.bf16.mxu1 %v7430_v35  ;;  %10910 = vmatpush3.bf16.msra.mxu1 %v12010_v38  ;;  %v14637_v38 = vld [vmem:[#allocation8 + $0x200] sm:$0xff]   ;;  %v7479_v35 = vrot.slane %v15350_v14, 3 }
 0x6d2   : > { %10911 = vmatprep.subr.bf16.mxu1 %v12011_v4  ;;  %v7474_v13 = vor.u32 %v7473_v45, %v7470_v53  ;;  %v7515_v53 = vrot.slane %v15358_v12, 3  ;;  %v7518_v45 = vrot.slane %v15357_v44, 4 }
 0x6d5   : > { %10912 = vmatpush3.bf16.msra.mxu1 %v12011_v4  ;;  %v7465_v4 = vor.u32 %v7464_v58, %v7461_v49  ;;  %v7501_v49 = vor.u32 %v7500_v54, %v7497_v1 }
 0x6d6   : > { %10913 = vmatprep.subr.bf16.mxu1 %v12012_v6 }
 0x6d7   : > { %v7466_v19 = vsel %vm4817_vm1, %v7456_v47, %v7465_v4  ;;  %v7475_v52 = vsel %vm4817_vm1, %v7465_v4, %v7474_v13  ;;  %v7506_v47 = vrot.slane %v15359_v10, 3  ;;  %v7509_v4 = vrot.slane %v15356_v55, 4 }
 0x6d8   : > { %10866 = vmatmul.mubr.bf16.gmra.mrb[12].mxu1 %v7439_v8 }
 0x6d9   : > { %10869 = vmatprep.mubr.bf16.mxu1 %v7448_v56  ;;  %10914 = vmatpush3.bf16.msra.mxu1 %v12012_v6  ;;  %v7483_v6 = vor.u32 %v7482_v33, %v7479_v35  ;;  %v7519_v35 = vor.u32 %v7518_v45, %v7515_v53  ;;  %v14670_v45 = vld [vmem:[#allocation2 + $0xe0] sm:$0xf] }
 0x6da   : > { %10915 = vmatprep.subr.bf16.mxu1 %v12013_v60 }
 0x6db   : > { %v7484_v8 = vsel %vm4817_vm1, %v7474_v13, %v7483_v6  ;;  %v7524_v13 = vrot.slane %v15363_v62, 3 }
 0x6dd   : > { %10916 = vmatpush3.bf16.msra.mxu1 %v12013_v60  ;;  %v7488_v60 = vrot.slane %v15355_v25, 3 }
 0x6de   : > { %10965 = vmatprep.subr.bf16.mxu1 %v14637_v38 }
 0x6df   : > { %v7492_v56 = vor.u32 %v7491_v26, %v7488_v60  ;;  %v7533_v60 = vrot.slane %v15362_v34, 3  ;;  %v7536_v26 = vrot.slane %v15361_v24, 4 }
 0x6e0   : > { %10870 = vmatmul.mubr.bf16.gmra.mrb[16].mxu1 %v7457_v18 }
 0x6e1   : > { %10873 = vmatprep.mubr.bf16.mxu1 %v7466_v19  ;;  %v7493_v58 = vsel %vm4817_vm1, %v7483_v6, %v7492_v56  ;;  %v7502_v18 = vsel %vm4817_vm1, %v7492_v56, %v7501_v49  ;;  %v7510_v19 = vor.u32 %v7509_v4, %v7506_v47  ;;  %v7527_v6 = vrot.slane %v15360_v9, 4 }
 0x6e2   : > { %v7537_v1 = vor.u32 %v7536_v26, %v7533_v60  ;;  %v7542_v56 = vrot.slane %v15366_v39, 3  ;;  %v7551_v47 = vrot.slane %v15365_v22, 3  ;;  %v7554_v4 = vrot.slane %v14493_v37, 4 }
 0x6e3   : > { %v7511_v33 = vsel %vm4817_vm1, %v7501_v49, %v7510_v19  ;;  %v7545_v49 = vrot.slane %v15364_v51, 4 }
 0x6e4   : > { %v7555_v53 = vor.u32 %v7554_v4, %v7551_v47 }
 0x6e8   : > { %10874 = vmatmul.mubr.bf16.gmra.mrb[20].mxu1 %v7475_v52  ;;  %v7520_v52 = vsel %vm4817_vm1, %v7510_v19, %v7519_v35 }
 0x6e9   : > { %10877 = vmatprep.mubr.bf16.mxu1 %v7484_v8  ;;  %v7528_v8 = vor.u32 %v7527_v6, %v7524_v13  ;;  %v15367_v6 = vld [vmem:[#allocation22_spill] sm:$0xff] }
 0x6ea   : > { %v15369_v26 = vshll.u32 %v15367_v6, 16 }
 0x6eb   : > { %v7529_v54 = vsel %vm4817_vm1, %v7519_v35, %v7528_v8  ;;  %v7560_v35 = vrot.slane %v14497_v2, 3 }
 0x6f0   : > { %10878 = vmatmul.mubr.bf16.gmra.mrb[24].mxu1 %v7493_v58  ;;  %v7538_v58 = vsel %vm4817_vm1, %v7528_v8, %v7537_v1  ;;  %v7572_v8 = vrot.slane %v15369_v26, 4 }
 0x6f1   : > { %10881 = vmatprep.mubr.bf16.mxu1 %v7502_v18  ;;  %v7546_v18 = vor.u32 %v7545_v49, %v7542_v56  ;;  %v7579_v56 = vshll.u32 %v14670_v45, 16 }
 0x6f3   : > { %v7547_v19 = vsel %vm4817_vm1, %v7537_v1, %v7546_v18  ;;  %v7556_v13 = vsel %vm4817_vm1, %v7546_v18, %v7555_v53  ;;  %v7581_v47 = vrot.slane %v7579_v56, 4 }
 0x6f8   : > { %10882 = vmatmul.mubr.bf16.gmra.mrb[28].mxu1 %v7511_v33  ;;  %v7563_v33 = vrot.slane %v14504_v7, 4 }
 0x6f9   : > { %10885 = vmatprep.mubr.bf16.mxu1 %v7520_v52  ;;  %v15368_v52 = vshrl.u32 %v15367_v6, 16  ;;  %v15370_v6 = vld [vmem:[#allocation24_spill] sm:$0xff] }
 0x6fa   : > { %v7564_v49 = vor.u32 %v7563_v33, %v7560_v35  ;;  %v7973_v26 = vrot.slane %v15370_v6, 4  ;;  %v15371_v33 = vld [vmem:[#allocation25_spill] sm:$0xff] }
 0x6fb   : > { %v7569_v60 = vrot.slane %v15368_v52, 3  ;;  %v14684_v52 = vld [vmem:[#allocation2 + $0x20] sm:$0xf0] }
 0x6fc   : > { %v7565_v4 = vsel %vm4817_vm1, %v7555_v53, %v7564_v49  ;;  %v7972_v7 = vrot.slane %v14684_v52, 4  ;;  %v15372_v53 = vld [vmem:[#allocation26_spill] sm:$0xff] }
 0x6fd   : > { %v7573_v1 = vor.u32 %v7572_v8, %v7569_v60  ;;  %v7975_v60 = vrot.slane %v15371_v33, 4  ;;  %v7977_v8 = vrot.slane %v15372_v53, 4 }
 0x6fe   : > { %v7974_v35 = vsel %vm4470_vm0, %v7972_v7, %v7973_v26 }
 0x6ff   : > { %v7574_v18 = vsel %vm4817_vm1, %v7564_v49, %v7573_v1  ;;  %v7976_v56 = vsel %vm4470_vm0, %v7973_v26, %v7975_v60  ;;  %v7978_v49 = vsel %vm4470_vm0, %v7975_v60, %v7977_v8  ;;  %v12018_v26 = vld [vmem:[#allocation8 + $0x220] sm:$0xff]   ;;  %v12019_v60 = vld [vmem:[#allocation8 + $0x228] sm:$0xff]  }
 0x700   : > { %10886 = vmatmul.mubr.bf16.gmra.mrb[32].mxu1 %v7529_v54  ;;  %v7576_v54 = vshrl.u32 %v14670_v45, 16 }
 0x701   : > { %10889 = vmatprep.mubr.bf16.mxu1 %v7538_v58 }
 0x702   : > { %v7578_v58 = vrot.slane %v7576_v54, 3  ;;  %v12015_v54 = vld [vmem:[#allocation8 + $0x208] sm:$0xff]  }
 0x708   : > { %10890 = vmatmul.mubr.bf16.gmra.mrb[36].mxu1 %v7547_v19  ;;  %v7582_v19 = vor.u32 %v7581_v47, %v7578_v58  ;;  %v15373_v58 = vld [vmem:[#allocation27_spill] sm:$0xff] }
 0x709   : > { %10893 = vmatprep.mubr.bf16.mxu1 %v7556_v13  ;;  %v7979_v47 = vrot.slane %v15373_v58, 4 }
 0x70a   : > { %v7583_v13 = vsel %vm4817_vm1, %v7573_v1, %v7582_v19  ;;  %v12016_v1 = vld [vmem:[#allocation8 + $0x210] sm:$0xff]  }
 0x70b   : > { %v7980_v19 = vsel %vm4470_vm0, %v7977_v8, %v7979_v47  ;;  %v12020_v8 = vld [vmem:[#allocation8 + $0x230] sm:$0xff]  }
 0x710   : > { %10894 = vmatmul.mubr.bf16.gmra.mrb[40].mxu1 %v7565_v4  ;;  %v15374_v4 = vld [vmem:[#allocation28_spill] sm:$0xff] }
 0x711   : > { %10897 = vmatprep.mubr.bf16.mxu1 %v7574_v18  ;;  %v7981_v7 = vrot.slane %v15374_v4, 4  ;;  %v12017_v18 = vld [vmem:[#allocation8 + $0x218] sm:$0xff]  }
 0x713   : > { %v7982_v6 = vsel %vm4470_vm0, %v7979_v47, %v7981_v7  ;;  %v12021_v47 = vld [vmem:[#allocation8 + $0x238] sm:$0xff]  }
 0x718   : > { %10898 = vmatmul.mubr.bf16.gmra.mrb[44].mxu1 %v7583_v13  ;;  %v15375_v13 = vld [vmem:[#allocation29_spill] sm:$0xff] }
 0x719   : > { %10917 = vmatprep.mubr.bf16.mxu1 %v7974_v35  ;;  %v15376_v35 = vld [vmem:[#allocation30_spill] sm:$0xff] }
 0x71a   : > { %v7985_v33 = vrot.slane %v15376_v35, 4  ;;  %v15381_v35 = vld [vmem:[#allocation35_spill] sm:$0xff] }
 0x720   : > { %10918 = vmatmul.mubr.bf16.vlgmr.msra.gmra.mrb[0].mxu1 %v7976_v56  ;;  %v15377_v56 = vld [vmem:[#allocation31_spill] sm:$0xff] }
 0x721   : > { %10921 = vmatprep.mubr.bf16.mxu1 %v7978_v49  ;;  %10966 = vmatpush3.bf16.msra.mxu1 %v14637_v38  ;;  %v7983_v38 = vrot.slane %v15375_v13, 4  ;;  %v7987_v49 = vrot.slane %v15377_v56, 4  ;;  %v15383_v56 = vld [vmem:[#allocation39_spill] sm:$0xff] }
 0x722   : > { %10967 = vmatprep.subr.bf16.mxu1 %v12015_v54 }
 0x723   : > { %v7984_v53 = vsel %vm4470_vm0, %v7981_v7, %v7983_v38  ;;  %v7988_v4 = vsel %vm4470_vm0, %v7985_v33, %v7987_v49  ;;  %v15379_v7 = vld [vmem:[#allocation33_spill] sm:$0xff] }
 0x725   : > { %10968 = vmatpush3.bf16.msra.mxu1 %v12015_v54  ;;  %v7986_v54 = vsel %vm4470_vm0, %v7983_v38, %v7985_v33  ;;  %v15382_v33 = vld [vmem:[#allocation36_spill] sm:$0xff] }
 0x726   : > { %10969 = vmatprep.subr.bf16.mxu1 %v12016_v1 }
 0x728   : > { %10922 = vmatmul.mubr.bf16.gmra.mrb[4].mxu1 %v7980_v19  ;;  %v7991_v19 = vrot.slane %v15379_v7, 4 }
 0x729   : > { %10925 = vmatprep.mubr.bf16.mxu1 %v7982_v6  ;;  %10970 = vmatpush3.bf16.msra.mxu1 %v12016_v1  ;;  %v15378_v1 = vld [vmem:[#allocation32_spill] sm:$0xff]  ;;  %v15380_v6 = vld [vmem:[#allocation34_spill] sm:$0xff] }
 0x72a   : > { %10971 = vmatprep.subr.bf16.mxu1 %v12017_v18  ;;  %v7989_v58 = vrot.slane %v15378_v1, 4  ;;  %v15384_v1 = vld [vmem:[#allocation40_spill] sm:$0xff] }
 0x72c   : > { %v7992_v13 = vsel %vm4470_vm0, %v7989_v58, %v7991_v19 }
 0x72d   : > { %10972 = vmatpush3.bf16.msra.mxu1 %v12017_v18  ;;  %v7990_v18 = vsel %vm4470_vm0, %v7987_v49, %v7989_v58  ;;  %v7999_v49 = vrot.slane %v15383_v56, 4 }
 0x72e   : > { %10973 = vmatprep.subr.bf16.mxu1 %v12018_v26 }
 0x730   : > { %10926 = vmatmul.mubr.bf16.gmra.mrb[8].mxu1 %v7984_v53  ;;  %v7997_v53 = vrot.slane %v15382_v33, 4 }
 0x731   : > { %10929 = vmatprep.mubr.bf16.mxu1 %v7986_v54  ;;  %10974 = vmatpush3.bf16.msra.mxu1 %v12018_v26  ;;  %v7993_v26 = vrot.slane %v15380_v6, 4 }
 0x732   : > { %10975 = vmatprep.subr.bf16.mxu1 %v12019_v60  ;;  %v8000_v58 = vsel %vm4470_vm0, %v7997_v53, %v7999_v49 }
 0x733   : > { %v7994_v38 = vsel %vm4470_vm0, %v7991_v19, %v7993_v26  ;;  %v15386_v19 = vld [vmem:[#allocation46_spill] sm:$0xff] }
 0x734   : > { %v8005_v6 = vrot.slane %v15386_v19, 4 }
 0x735   : > { %10976 = vmatpush3.bf16.msra.mxu1 %v12019_v60  ;;  %v7995_v60 = vrot.slane %v15381_v35, 4 }
 0x736   : > { %10977 = vmatprep.subr.bf16.mxu1 %v12020_v8 }
 0x737   : > { %v7996_v54 = vsel %vm4470_vm0, %v7993_v26, %v7995_v60 }
 0x738   : > { %10930 = vmatmul.mubr.bf16.gmra.mrb[12].mxu1 %v7988_v4 }
 0x739   : > { %10933 = vmatprep.mubr.bf16.mxu1 %v7990_v18  ;;  %10978 = vmatpush3.bf16.msra.mxu1 %v12020_v8  ;;  %v7998_v8 = vsel %vm4470_vm0, %v7995_v60, %v7997_v53  ;;  %v15385_v18 = vld [vmem:[#allocation44_spill] sm:$0xff] }
 0x73a   : > { %10979 = vmatprep.subr.bf16.mxu1 %v12021_v47  ;;  %v8003_v7 = vrot.slane %v15385_v18, 4  ;;  %v15388_v60 = vld [vmem:[#allocation52_spill] sm:$0xff] }
 0x73b   : > { %v8009_v33 = vrot.slane %v15388_v60, 4  ;;  %v8393_v60 = vrot.slane %v14271_v57, 5  ;;  %v8401_v57 = vrot.slane %v14294_v5, 5 }
 0x73d   : > { %10980 = vmatpush3.bf16.msra.mxu1 %v12021_v47  ;;  %v8001_v47 = vrot.slane %v15384_v1, 4 }
 0x73f   : > { %v8002_v4 = vsel %vm4470_vm0, %v7999_v49, %v8001_v47  ;;  %v8004_v26 = vsel %vm4470_vm0, %v8001_v47, %v8003_v7  ;;  %v15390_v49 = vld [vmem:[#allocation13_spill] sm:$0xff] }
 0x740   : > { %10934 = vmatmul.mubr.bf16.gmra.mrb[16].mxu1 %v7992_v13  ;;  %v8006_v13 = vsel %vm4470_vm0, %v8003_v7, %v8005_v6  ;;  %v8013_v1 = vrot.slane %v15390_v49, 4  ;;  %v12024_v7 = vld [vmem:[#allocation2] sm:$0xff] }
 0x741   : > { %10937 = vmatprep.mubr.bf16.mxu1 %v7994_v38  ;;  %v15387_v38 = vld [vmem:[#allocation50_spill] sm:$0xff]  ;;  %v8017_v19 = vrot.slane %v12024_v7, 4  ;;  %v8405_v7 = vrot.slane %v14311_v61, 5  ;;  %v8416_v61 = vrot.slane %v14324_v28, 4 }
 0x742   : > { %v8007_v35 = vrot.slane %v15387_v38, 4 }
 0x744   : > { %v8008_v53 = vsel %vm4470_vm0, %v8005_v6, %v8007_v35  ;;  %v8385_v6 = vshrl.u32 %v14684_v52, 16 }
 0x748   : > { %10938 = vmatmul.mubr.bf16.gmra.mrb[20].mxu1 %v7996_v54  ;;  %v8010_v54 = vsel %vm4470_vm0, %v8007_v35, %v8009_v33  ;;  %v8392_v35 = vrot.slane %v14258_v40, 4  ;;  %v8400_v40 = vrot.slane %v14280_v11, 4 }
 0x749   : > { %10941 = vmatprep.mubr.bf16.mxu1 %v7998_v8  ;;  %v15389_v8 = vld [vmem:[#allocation20_spill] sm:$0xff] }
 0x74a   : > { %v8011_v56 = vrot.slane %v15389_v8, 4  ;;  %v8394_v8 = vor.u32 %v8393_v60, %v8392_v35  ;;  %v8420_v60 = vrot.slane %v14342_v63, 4 }
 0x74c   : > { %v8012_v47 = vsel %vm4470_vm0, %v8009_v33, %v8011_v56  ;;  %v8019_v33 = vrot.slane %v14670_v45, 4  ;;  %v8402_v45 = vor.u32 %v8401_v57, %v8400_v40  ;;  %v8441_v40 = vrot.slane %v15349_v27, 5 }
 0x750   : > { %10942 = vmatmul.mubr.bf16.gmra.mrb[24].mxu1 %v8000_v58  ;;  %v8014_v58 = vsel %vm4470_vm0, %v8011_v56, %v8013_v1  ;;  %v8020_v56 = vsel %vm4470_vm0, %v8017_v19, %v8019_v33  ;;  %v8421_v33 = vrot.slane %v14355_v59, 5  ;;  %v8432_v59 = vrot.slane %v14370_v42, 4 }
 0x751   : > { %10945 = vmatprep.mubr.bf16.mxu1 %v8002_v4  ;;  %v15391_v4 = vld [vmem:[#allocation17_spill] sm:$0xff] }
 0x752   : > { %v8015_v18 = vrot.slane %v15391_v4, 4  ;;  %v8422_v28 = vor.u32 %v8421_v33, %v8420_v60 }
 0x754   : > { %v8018_v38 = vsel %vm4470_vm0, %v8015_v18, %v8017_v19  ;;  %v8409_v19 = vrot.slane %v14316_v20, 5 }
 0x758   : > { %10946 = vmatmul.mubr.bf16.gmra.mrb[28].mxu1 %v8004_v26  ;;  %v8388_v26 = vshll.u32 %v14684_v52, 16  ;;  %v8396_v52 = vrot.slane %v14276_v3, 4 }
 0x759   : > { %10949 = vmatprep.mubr.bf16.mxu1 %v8006_v13  ;;  %v8016_v13 = vsel %vm4470_vm0, %v8013_v1, %v8015_v18  ;;  %v8397_v1 = vrot.slane %v14289_v43, 5  ;;  %v8404_v18 = vrot.slane %v14298_v23, 4  ;;  %v8408_v43 = vrot.slane %v14302_v16, 4 }
 0x75b   : > { %v8406_v11 = vor.u32 %v8405_v7, %v8404_v18  ;;  %v8452_v7 = vrot.slane %v15359_v10, 4 }
 0x75d   : > { %v8407_v5 = vsel %vm5357_vm2, %v8402_v45, %v8406_v11 }
 0x760   : > { %10950 = vmatmul.mubr.bf16.gmra.mrb[32].mxu1 %v8008_v53  ;;  %v8387_v53 = vrot.slane %v8385_v6, 4  ;;  %v8410_v6 = vor.u32 %v8409_v19, %v8408_v43  ;;  %v8457_v43 = vrot.slane %v15357_v44, 5 }
 0x761   : > { %10953 = vmatprep.mubr.bf16.mxu1 %v8010_v54  ;;  %v8390_v54 = vrot.slane %v8388_v26, 5  ;;  %v8412_v26 = vrot.slane %v14320_v15, 4 }
 0x762   : > { %v8411_v23 = vsel %vm5357_vm2, %v8406_v11, %v8410_v6  ;;  %v8460_v11 = vrot.slane %v15363_v62, 4 }
 0x763   : > { %v8391_v49 = vor.u32 %v8390_v54, %v8387_v53  ;;  %v8425_v53 = vrot.slane %v14360_v0, 5 }
 0x768   : > { %10954 = vmatmul.mubr.bf16.gmra.mrb[36].mxu1 %v8012_v47  ;;  %v8395_v47 = vsel %vm5357_vm2, %v8391_v49, %v8394_v8  ;;  %v8433_v49 = vrot.slane %v14385_v17, 5 }
 0x769   : > { %10957 = vmatprep.mubr.bf16.mxu1 %v8014_v58  ;;  %v8398_v58 = vor.u32 %v8397_v1, %v8396_v52  ;;  %v8436_v1 = vrot.slane %v15351_v32, 4 }
 0x76a   : > { %v8434_v52 = vor.u32 %v8433_v49, %v8432_v59 }
 0x76b   : > { %v8399_v4 = vsel %vm5357_vm2, %v8394_v8, %v8398_v58  ;;  %v8403_v3 = vsel %vm5357_vm2, %v8398_v58, %v8402_v45  ;;  %v8428_v8 = vrot.slane %v14366_v31, 4  ;;  %v8444_v58 = vrot.slane %v15355_v25, 4 }
 0x76c   : > { %v8445_v45 = vrot.slane %v15352_v50, 5  ;;  %v8456_v50 = vrot.slane %v15358_v12, 4 }
 0x76e   : > { %v8458_v19 = vor.u32 %v8457_v43, %v8456_v50 }
 0x770   : > { %10958 = vmatmul.mubr.bf16.gmra.mrb[40].mxu1 %v8016_v13  ;;  %v8413_v13 = vrot.slane %v14333_v21, 5  ;;  %v8424_v21 = vrot.slane %v14346_v30, 4 }
 0x771   : > { %10961 = vmatprep.mubr.bf16.mxu1 %v8018_v38  ;;  %v8417_v38 = vrot.slane %v14338_v36, 5 }
 0x772   : > { %v8414_v16 = vor.u32 %v8413_v13, %v8412_v26  ;;  %v8426_v54 = vor.u32 %v8425_v53, %v8424_v21  ;;  %v8468_v13 = vrot.slane %v15366_v39, 4  ;;  %v15393_v53 = vld [vmem:[#allocation23_spill] sm:$0xff] }
 0x773   : > { %v8418_v35 = vor.u32 %v8417_v38, %v8416_v61  ;;  %v8473_v61 = vrot.slane %v14493_v37, 5 }
 0x774   : > { %v8415_v20 = vsel %vm5357_vm2, %v8410_v6, %v8414_v16  ;;  %v8427_v63 = vsel %vm5357_vm2, %v8422_v28, %v8426_v54  ;;  %v8461_v6 = vrot.slane %v15360_v9, 5  ;;  %v8472_v9 = vrot.slane %v15365_v22, 4 }
 0x775   : > { %v8419_v15 = vsel %vm5357_vm2, %v8414_v16, %v8418_v35  ;;  %v8423_v36 = vsel %vm5357_vm2, %v8418_v35, %v8422_v28  ;;  %v8476_v35 = vrot.slane %v14497_v2, 4 }
 0x776   : > { %v8462_v12 = vor.u32 %v8461_v6, %v8460_v11  ;;  %v8474_v38 = vor.u32 %v8473_v61, %v8472_v9  ;;  %v12031_v6 = vld [vmem:[%s12453_s12 + $0x51] sm:$0xff] }
 0x778   : > { %10962 = vmatmul.mubr.bf16.gmra.mrb[44].mxu1 %v8020_v56  ;;  %v8429_v56 = vrot.slane %v14380_v41, 5  ;;  %v8440_v41 = vrot.slane %v15350_v14, 4  ;;  %v8446_v14 = vor.u32 %v8445_v45, %v8444_v58  ;;  %v8463_v44 = vsel %vm5357_vm2, %v8458_v19, %v8462_v12  ;;  %v12028_v58 = vld [vmem:[%s12453_s12 + $0x21] sm:$0xff] }
 0x779   : > { %10981 = vmatprep.mubr.bf16.mxu1 %v8395_v47  ;;  %v8437_v47 = vrot.slane %v14402_v29, 5  ;;  %v8448_v29 = vrot.slane %v15354_v46, 4 }
 0x77a   : > { %v8430_v30 = vor.u32 %v8429_v56, %v8428_v8  ;;  %v8442_v57 = vor.u32 %v8441_v40, %v8440_v41 }
 0x77b   : > { %v8438_v42 = vor.u32 %v8437_v47, %v8436_v1  ;;  %v12026_v47 = vld [vmem:[%s12453_s12 + $0x19] sm:$0xff] }
 0x77c   : > { %v8431_v0 = vsel %vm5357_vm2, %v8426_v54, %v8430_v30  ;;  %v8435_v31 = vsel %vm5357_vm2, %v8430_v30, %v8434_v52  ;;  %v8447_v27 = vsel %vm5357_vm2, %v8442_v57, %v8446_v14  ;;  %v12025_v30 = vld [vmem:[%s12453_s12 + $0x29] sm:$0xff] }
 0x77d   : > { %v8439_v17 = vsel %vm5357_vm2, %v8434_v52, %v8438_v42  ;;  %v8443_v32 = vsel %vm5357_vm2, %v8438_v42, %v8442_v57  ;;  %v12027_v42 = vld [vmem:[%s12453_s12 + $0x31] sm:$0xff] }
 0x780   : > { %10982 = vmatmul.mubr.bf16.vlgmr.msra.gmra.mrb[0].mxu1 %v8399_v4  ;;  %v8449_v4 = vrot.slane %v15353_v48, 5 }
 0x781   : > { %10985 = vmatprep.mubr.bf16.mxu1 %v8403_v3  ;;  %v8453_v3 = vrot.slane %v15356_v55, 5  ;;  %v8464_v55 = vrot.slane %v15362_v34, 4 }
 0x782   : > { %v8450_v18 = vor.u32 %v8449_v4, %v8448_v29 }
 0x783   : > { %v8454_v46 = vor.u32 %v8453_v3, %v8452_v7  ;;  %v12029_v3 = vld [vmem:[%s12453_s12 + $0x49] sm:$0xff] }
 0x784   : > { %v8451_v25 = vsel %vm5357_vm2, %v8446_v14, %v8450_v18 }
 0x785   : > { %v8455_v48 = vsel %vm5357_vm2, %v8450_v18, %v8454_v46  ;;  %v8459_v10 = vsel %vm5357_vm2, %v8454_v46, %v8458_v19  ;;  %v12030_v46 = vld [vmem:[%s12453_s12 + $0x39] sm:$0xff] }
 0x788   : > { %10986 = vmatmul.mubr.bf16.gmra.mrb[4].mxu1 %v8407_v5  ;;  %v8465_v5 = vrot.slane %v15361_v24, 5  ;;  %v8366_v24 = vld [vmem:[#allocation2 + $0xe0] sm:$0x1f] }
 0x789   : > { %10989 = vmatprep.mubr.bf16.mxu1 %v8411_v23  ;;  %v8469_v23 = vrot.slane %v15364_v51, 5  ;;  %v8485_v51 = vshrl.u32 %v8366_v24, 16  ;;  %v8488_v33 = vshll.u32 %v8366_v24, 16 }
 0x78a   : > { %v8466_v26 = vor.u32 %v8465_v5, %v8464_v55  ;;  %v12032_v5 = vld [vmem:[%s12453_s12 + $0x41] sm:$0xff] }
 0x78b   : > { %v8470_v34 = vor.u32 %v8469_v23, %v8468_v13  ;;  %v8490_v37 = vrot.slane %v8488_v33, 5 }
 0x78c   : > { %v8467_v62 = vsel %vm5357_vm2, %v8462_v12, %v8466_v26 }
 0x78d   : > { %v8471_v16 = vsel %vm5357_vm2, %v8466_v26, %v8470_v34  ;;  %v8475_v39 = vsel %vm5357_vm2, %v8470_v34, %v8474_v38  ;;  %v12033_v34 = vld [vmem:[%s12453_s12 + $0x69] sm:$0xff] }
 0x790   : > { %10990 = vmatmul.mubr.bf16.gmra.mrb[8].mxu1 %v8415_v20  ;;  %v15392_v20 = vld [vmem:[#allocation55_spill] sm:$0xff] }
 0x791   : > { %10993 = vmatprep.mubr.bf16.mxu1 %v8419_v15  ;;  %v8477_v60 = vrot.slane %v15392_v20, 5  ;;  %v8487_v15 = vrot.slane %v8485_v51, 4  ;;  %v12035_v51 = vld [vmem:[%s12453_s12 + $0x71] sm:$0xff] }
 0x793   : > { %v8478_v22 = vor.u32 %v8477_v60, %v8476_v35  ;;  %v8491_v2 = vor.u32 %v8490_v37, %v8487_v15  ;;  %v12034_v35 = vld [vmem:[%s12453_s12 + $0x59] sm:$0xff]  ;;  %v12036_v15 = vld [vmem:[%s12453_s12 + $0x61] sm:$0xff] }
 0x795   : > { %v8479_v21 = vsel %vm5357_vm2, %v8474_v38, %v8478_v22  ;;  %v8483_v28 = vsel %vm5357_vm2, %v8478_v22, %v15393_v53  ;;  %v8492_v54 = vsel %vm5357_vm2, %v15393_v53, %v8491_v2 }
 0x798   : > { %10994 = vmatmul.mubr.bf16.gmra.mrb[12].mxu1 %v8423_v36  ;;  %v14811_v36 = vld [vmem:[%s15015_s4] ss:$0 sm:$0xff] }
 0x799   : > { %10997 = vmatprep.mubr.bf16.mxu1 %v8427_v63 }
 0x7a0   : > { %10998 = vmatmul.mubr.bf16.gmra.mrb[16].mxu1 %v8431_v0 }
 0x7a1   : > { %11001 = vmatprep.mubr.bf16.mxu1 %v8435_v31 }
 0x7a8   : > { %11002 = vmatmul.mubr.bf16.gmra.mrb[20].mxu1 %v8439_v17 }
 0x7a9   : > { %11005 = vmatprep.mubr.bf16.mxu1 %v8443_v32 }
 0x7b0   : > { %11006 = vmatmul.mubr.bf16.gmra.mrb[24].mxu1 %v8447_v27 }
 0x7b1   : > { %11009 = vmatprep.mubr.bf16.mxu1 %v8451_v25 }
 0x7b8   : > { %11010 = vmatmul.mubr.bf16.gmra.mrb[28].mxu1 %v8455_v48 }
 0x7b9   : > { %11013 = vmatprep.mubr.bf16.mxu1 %v8459_v10 }
 0x7c0   : > { %11014 = vmatmul.mubr.bf16.gmra.mrb[32].mxu1 %v8463_v44 }
 0x7c1   : > { %11017 = vmatprep.mubr.bf16.mxu1 %v8467_v62 }
 0x7c8   : > { %11018 = vmatmul.mubr.bf16.gmra.mrb[36].mxu1 %v8471_v16 }
 0x7c9   : > { %11021 = vmatprep.mubr.bf16.mxu1 %v8475_v39 }
 0x7d0   : > { %11022 = vmatmul.mubr.bf16.gmra.mrb[40].mxu1 %v8479_v21 }
 0x7d1   : > { %11025 = vmatprep.mubr.bf16.mxu1 %v8483_v28 }
 0x7d8   : > { %11026 = vmatmul.mubr.bf16.gmra.mrb[44].mxu1 %v8492_v54 }
 0x853   : > { %v10983_v8 = vpop.f32.mrb[0].mxu1 }
 0x854   : > { %v8847_v56 = vadd.f32 %v10983_v8, %v14811_v36  ;;  %v8599_v63 = vpop.f32.mrb[1].mxu1 }
 0x855   : > { %v8845_v59 = vadd.f32 %v14811_v36, %v8599_v63  ;;  %v10984_v49 = vpop.f32.mrb[2].mxu1  ;;  %v12037_v63 = vld [vmem:[%s12453_s12 + $0x89] sm:$0xff] }
 0x856   : > { %v8895_v52 = vadd.f32 %v12025_v30, %v8847_v56  ;;  %v8848_v0 = vadd.f32 %v10984_v49, %v14811_v36  ;;  %v8602_v1 = vpop.f32.mrb[3].mxu1 }
 0x857   : > { %v8893_v31 = vadd.f32 %v12026_v47, %v8845_v59  ;;  %v8846_v41 = vadd.f32 %v14811_v36, %v8602_v1 }
 0x858   : > { %v8943_v40 = vmax.f32 %v8895_v52, 0.0  ;;  %v8896_v57 = vadd.f32 %v12027_v42, %v8848_v0  ;;  %v12038_v52 = vld [vmem:[%s12453_s12 + $0x79] sm:$0xff]  ;;  %v12040_v42 = vld [vmem:[%s12453_s12 + $0x81] sm:$0xff] }
 0x859   : > { %v8941_v17 = vmax.f32 %v8893_v31, 0.0  ;;  %v8894_v45 = vadd.f32 %v12028_v58, %v8846_v41  ;;  %v12039_v31 = vld [vmem:[%s12453_s12 + $0x91] sm:$0xff] }
 0x85a   : > { %8991 = vst [vmem:[%s14822_s30 + $0x10] sm:$0xff] %v8943_v40  ;;  %v8944_v32 = vmax.f32 %v8896_v57, 0.0 }
 0x85b   : > { %8989 = vst [vmem:[%s14822_s30] sm:$0xff] %v8941_v17  ;;  %v8942_v29 = vmax.f32 %v8894_v45, 0.0  ;;  %v10987_v4 = vpop.f32.mrb[4].mxu1 }
 0x85c   : > { %8992 = vst [vmem:[%s14822_s30 + $0x18] sm:$0xff] %v8944_v32  ;;  %v8851_v14 = vadd.f32 %v10987_v4, %v14811_v36  ;;  %v8615_v18 = vpop.f32.mrb[5].mxu1 }
 0x85d   : > { %8990 = vst [vmem:[%s14822_s30 + $0x8] sm:$0xff] %v8942_v29  ;;  %v8849_v27 = vadd.f32 %v14811_v36, %v8615_v18  ;;  %v10988_v7 = vpop.f32.mrb[6].mxu1  ;;  %v12041_v18 = vld [vmem:[%s12453_s12 + $0xa9] sm:$0xff] }
 0x85e   : > { %v8899_v25 = vadd.f32 %v12029_v3, %v8851_v14  ;;  %v8852_v50 = vadd.f32 %v10988_v7, %v14811_v36  ;;  %v8618_v43 = vpop.f32.mrb[7].mxu1 }
 0x85f   : > { %v8897_v19 = vadd.f32 %v12030_v46, %v8849_v27  ;;  %v8850_v48 = vadd.f32 %v14811_v36, %v8618_v43 }
 0x860   : > { %v8947_v11 = vmax.f32 %v8899_v25, 0.0  ;;  %v8900_v10 = vadd.f32 %v12031_v6, %v8852_v50  ;;  %v12042_v25 = vld [vmem:[%s12453_s12 + $0x99] sm:$0xff]  ;;  %v12044_v6 = vld [vmem:[%s12453_s12 + $0xa1] sm:$0xff] }
 0x861   : > { %v8945_v55 = vmax.f32 %v8897_v19, 0.0  ;;  %v8898_v12 = vadd.f32 %v12032_v5, %v8850_v48  ;;  %v12043_v19 = vld [vmem:[%s12453_s12 + $0xb1] sm:$0xff] }
 0x862   : > { %8995 = vst [vmem:[%s14822_s30 + $0x30] sm:$0xff] %v8947_v11  ;;  %v8948_v26 = vmax.f32 %v8900_v10, 0.0 }
 0x863   : > { %8993 = vst [vmem:[%s14822_s30 + $0x20] sm:$0xff] %v8945_v55  ;;  %v8946_v44 = vmax.f32 %v8898_v12, 0.0  ;;  %v10991_v13 = vpop.f32.mrb[8].mxu1 }
 0x864   : > { %8996 = vst [vmem:[%s14822_s30 + $0x38] sm:$0xff] %v8948_v26  ;;  %v8855_v23 = vadd.f32 %v10991_v13, %v14811_v36  ;;  %v8631_v62 = vpop.f32.mrb[9].mxu1 }
 0x865   : > { %8994 = vst [vmem:[%s14822_s30 + $0x28] sm:$0xff] %v8946_v44  ;;  %v8853_v9 = vadd.f32 %v14811_v36, %v8631_v62  ;;  %v10992_v61 = vpop.f32.mrb[10].mxu1  ;;  %v12045_v62 = vld [vmem:[%s12453_s12 + $0xc9] sm:$0xff] }
 0x866   : > { %v8903_v38 = vadd.f32 %v12033_v34, %v8855_v23  ;;  %v8856_v24 = vadd.f32 %v10992_v61, %v14811_v36  ;;  %v8634_v16 = vpop.f32.mrb[11].mxu1 }
 0x867   : > { %v8901_v20 = vadd.f32 %v12034_v35, %v8853_v9  ;;  %v8854_v60 = vadd.f32 %v14811_v36, %v8634_v16 }
 0x868   : > { %v8951_v39 = vmax.f32 %v8903_v38, 0.0  ;;  %v8904_v33 = vadd.f32 %v12035_v51, %v8856_v24  ;;  %v12046_v38 = vld [vmem:[%s12453_s12 + $0xb9] sm:$0xff]  ;;  %v12048_v51 = vld [vmem:[%s12453_s12 + $0xc1] sm:$0xff] }
 0x869   : > { %v8949_v22 = vmax.f32 %v8901_v20, 0.0  ;;  %v8902_v37 = vadd.f32 %v12036_v15, %v8854_v60  ;;  %v12047_v20 = vld [vmem:[%s12453_s12 + $0xd1] sm:$0xff] }
 0x86a   : > { %8999 = vst [vmem:[%s14822_s30 + $0x50] sm:$0xff] %v8951_v39  ;;  %v8952_v21 = vmax.f32 %v8904_v33, 0.0 }
 0x86b   : > { %8997 = vst [vmem:[%s14822_s30 + $0x40] sm:$0xff] %v8949_v22  ;;  %v8950_v53 = vmax.f32 %v8902_v37, 0.0  ;;  %v10995_v28 = vpop.f32.mrb[12].mxu1 }
 0x86c   : > { %9000 = vst [vmem:[%s14822_s30 + $0x58] sm:$0xff] %v8952_v21  ;;  %v8859_v2 = vadd.f32 %v10995_v28, %v14811_v36  ;;  %v8647_v54 = vpop.f32.mrb[13].mxu1 }
 0x86d   : > { %8998 = vst [vmem:[%s14822_s30 + $0x48] sm:$0xff] %v8950_v53  ;;  %v8857_v8 = vadd.f32 %v14811_v36, %v8647_v54  ;;  %v10996_v56 = vpop.f32.mrb[14].mxu1  ;;  %v12049_v54 = vld [vmem:[%s12453_s12 + $0xe9] sm:$0xff] }
 0x86e   : > { %v8907_v59 = vadd.f32 %v12037_v63, %v8859_v2  ;;  %v8860_v49 = vadd.f32 %v10996_v56, %v14811_v36  ;;  %v8650_v30 = vpop.f32.mrb[15].mxu1 }
 0x86f   : > { %v8905_v0 = vadd.f32 %v12038_v52, %v8857_v8  ;;  %v8858_v1 = vadd.f32 %v14811_v36, %v8650_v30 }
 0x870   : > { %v8955_v47 = vmax.f32 %v8907_v59, 0.0  ;;  %v8908_v41 = vadd.f32 %v12039_v31, %v8860_v49  ;;  %v12050_v59 = vld [vmem:[%s12453_s12 + $0xd9] sm:$0xff]  ;;  %v12052_v31 = vld [vmem:[%s12453_s12 + $0xe1] sm:$0xff] }
 0x871   : > { %v8953_v40 = vmax.f32 %v8905_v0, 0.0  ;;  %v8906_v57 = vadd.f32 %v12040_v42, %v8858_v1  ;;  %v12051_v0 = vld [vmem:[%s12453_s12 + $0xf1] sm:$0xff] }
 0x872   : > { %9003 = vst [vmem:[%s14822_s30 + $0x70] sm:$0xff] %v8955_v47  ;;  %v8956_v17 = vmax.f32 %v8908_v41, 0.0 }
 0x873   : > { %9001 = vst [vmem:[%s14822_s30 + $0x60] sm:$0xff] %v8953_v40  ;;  %v8954_v58 = vmax.f32 %v8906_v57, 0.0  ;;  %v10999_v45 = vpop.f32.mrb[16].mxu1 }
 0x874   : > { %9004 = vst [vmem:[%s14822_s30 + $0x78] sm:$0xff] %v8956_v17  ;;  %v8863_v32 = vadd.f32 %v10999_v45, %v14811_v36  ;;  %v8663_v29 = vpop.f32.mrb[17].mxu1 }
 0x875   : > { %9002 = vst [vmem:[%s14822_s30 + $0x68] sm:$0xff] %v8954_v58  ;;  %v8861_v4 = vadd.f32 %v14811_v36, %v8663_v29  ;;  %v11000_v14 = vpop.f32.mrb[18].mxu1  ;;  %v12053_v29 = vld [vmem:[%s12453_s12 + $0x109] sm:$0xff] }
 0x876   : > { %v8911_v27 = vadd.f32 %v12041_v18, %v8863_v32  ;;  %v8864_v7 = vadd.f32 %v11000_v14, %v14811_v36  ;;  %v8666_v3 = vpop.f32.mrb[19].mxu1 }
 0x877   : > { %v8909_v50 = vadd.f32 %v12042_v25, %v8861_v4  ;;  %v8862_v43 = vadd.f32 %v14811_v36, %v8666_v3 }
 0x878   : > { %v8959_v46 = vmax.f32 %v8911_v27, 0.0  ;;  %v8912_v48 = vadd.f32 %v12043_v19, %v8864_v7  ;;  %v12054_v27 = vld [vmem:[%s12453_s12 + $0xf9] sm:$0xff]  ;;  %v12056_v19 = vld [vmem:[%s12453_s12 + $0x101] sm:$0xff] }
 0x879   : > { %v8957_v11 = vmax.f32 %v8909_v50, 0.0  ;;  %v8910_v10 = vadd.f32 %v12044_v6, %v8862_v43  ;;  %v12055_v50 = vld [vmem:[%s12453_s12 + $0x111] sm:$0xff] }
 0x87a   : > { %9007 = vst [vmem:[%s14822_s30 + $0x90] sm:$0xff] %v8959_v46  ;;  %v8960_v55 = vmax.f32 %v8912_v48, 0.0 }
 0x87b   : > { %9005 = vst [vmem:[%s14822_s30 + $0x80] sm:$0xff] %v8957_v11  ;;  %v8958_v5 = vmax.f32 %v8910_v10, 0.0  ;;  %v11003_v12 = vpop.f32.mrb[20].mxu1 }
 0x87c   : > { %9008 = vst [vmem:[%s14822_s30 + $0x98] sm:$0xff] %v8960_v55  ;;  %v8867_v26 = vadd.f32 %v11003_v12, %v14811_v36  ;;  %v8679_v44 = vpop.f32.mrb[21].mxu1 }
 0x87d   : > { %9006 = vst [vmem:[%s14822_s30 + $0x88] sm:$0xff] %v8958_v5  ;;  %v8865_v13 = vadd.f32 %v14811_v36, %v8679_v44  ;;  %v11004_v23 = vpop.f32.mrb[22].mxu1  ;;  %v12057_v44 = vld [vmem:[%s12453_s12 + $0x129] sm:$0xff] }
 0x87e   : > { %v8915_v9 = vadd.f32 %v12045_v62, %v8867_v26  ;;  %v8868_v61 = vadd.f32 %v11004_v23, %v14811_v36  ;;  %v8682_v34 = vpop.f32.mrb[23].mxu1 }
 0x87f   : > { %v8913_v24 = vadd.f32 %v12046_v38, %v8865_v13  ;;  %v8866_v16 = vadd.f32 %v14811_v36, %v8682_v34 }
 0x880   : > { %v8963_v35 = vmax.f32 %v8915_v9, 0.0  ;;  %v8916_v60 = vadd.f32 %v12047_v20, %v8868_v61  ;;  %v12058_v9 = vld [vmem:[%s12453_s12 + $0x119] sm:$0xff]  ;;  %v12060_v20 = vld [vmem:[%s12453_s12 + $0x121] sm:$0xff] }
 0x881   : > { %v8961_v39 = vmax.f32 %v8913_v24, 0.0  ;;  %v8914_v33 = vadd.f32 %v12048_v51, %v8866_v16  ;;  %v12059_v24 = vld [vmem:[%s12453_s12 + $0x131] sm:$0xff] }
 0x882   : > { %9011 = vst [vmem:[%s14822_s30 + $0xb0] sm:$0xff] %v8963_v35  ;;  %v8964_v22 = vmax.f32 %v8916_v60, 0.0 }
 0x883   : > { %9009 = vst [vmem:[%s14822_s30 + $0xa0] sm:$0xff] %v8961_v39  ;;  %v8962_v15 = vmax.f32 %v8914_v33, 0.0  ;;  %v11007_v37 = vpop.f32.mrb[24].mxu1 }
 0x884   : > { %9012 = vst [vmem:[%s14822_s30 + $0xb8] sm:$0xff] %v8964_v22  ;;  %v8871_v21 = vadd.f32 %v11007_v37, %v14811_v36  ;;  %v8695_v53 = vpop.f32.mrb[25].mxu1 }
 0x885   : > { %9010 = vst [vmem:[%s14822_s30 + $0xa8] sm:$0xff] %v8962_v15  ;;  %v8869_v28 = vadd.f32 %v14811_v36, %v8695_v53  ;;  %v11008_v2 = vpop.f32.mrb[26].mxu1  ;;  %v12061_v53 = vld [vmem:[%s12453_s12 + $0x149] sm:$0xff] }
 0x886   : > { %v8919_v8 = vadd.f32 %v12049_v54, %v8871_v21  ;;  %v8872_v56 = vadd.f32 %v11008_v2, %v14811_v36  ;;  %v8698_v63 = vpop.f32.mrb[27].mxu1 }
 0x887   : > { %v8917_v49 = vadd.f32 %v12050_v59, %v8869_v28  ;;  %v8870_v30 = vadd.f32 %v14811_v36, %v8698_v63 }
 0x888   : > { %v8967_v52 = vmax.f32 %v8919_v8, 0.0  ;;  %v8920_v1 = vadd.f32 %v12051_v0, %v8872_v56  ;;  %v12062_v8 = vld [vmem:[%s12453_s12 + $0x139] sm:$0xff]  ;;  %v12064_v0 = vld [vmem:[%s12453_s12 + $0x141] sm:$0xff] }
 0x889   : > { %v8965_v47 = vmax.f32 %v8917_v49, 0.0  ;;  %v8918_v41 = vadd.f32 %v12052_v31, %v8870_v30  ;;  %v12063_v49 = vld [vmem:[%s12453_s12 + $0x151] sm:$0xff] }
 0x88a   : > { %9015 = vst [vmem:[%s14822_s30 + $0xd0] sm:$0xff] %v8967_v52  ;;  %v8968_v40 = vmax.f32 %v8920_v1, 0.0 }
 0x88b   : > { %9013 = vst [vmem:[%s14822_s30 + $0xc0] sm:$0xff] %v8965_v47  ;;  %v8966_v42 = vmax.f32 %v8918_v41, 0.0  ;;  %v11011_v57 = vpop.f32.mrb[28].mxu1 }
 0x88c   : > { %9016 = vst [vmem:[%s14822_s30 + $0xd8] sm:$0xff] %v8968_v40  ;;  %v8875_v17 = vadd.f32 %v11011_v57, %v14811_v36  ;;  %v8711_v58 = vpop.f32.mrb[29].mxu1 }
 0x88d   : > { %9014 = vst [vmem:[%s14822_s30 + $0xc8] sm:$0xff] %v8966_v42  ;;  %v8873_v45 = vadd.f32 %v14811_v36, %v8711_v58  ;;  %v11012_v32 = vpop.f32.mrb[30].mxu1  ;;  %v12065_v58 = vld [vmem:[%s12453_s12 + $0x169] sm:$0xff] }
 0x88e   : > { %v8923_v4 = vadd.f32 %v12053_v29, %v8875_v17  ;;  %v8876_v14 = vadd.f32 %v11012_v32, %v14811_v36  ;;  %v8714_v18 = vpop.f32.mrb[31].mxu1 }
 0x88f   : > { %v8921_v7 = vadd.f32 %v12054_v27, %v8873_v45  ;;  %v8874_v3 = vadd.f32 %v14811_v36, %v8714_v18 }
 0x890   : > { %v8971_v25 = vmax.f32 %v8923_v4, 0.0  ;;  %v8924_v43 = vadd.f32 %v12055_v50, %v8876_v14  ;;  %v12066_v4 = vld [vmem:[%s12453_s12 + $0x159] sm:$0xff]  ;;  %v12068_v50 = vld [vmem:[%s12453_s12 + $0x161] sm:$0xff] }
 0x891   : > { %v8969_v46 = vmax.f32 %v8921_v7, 0.0  ;;  %v8922_v48 = vadd.f32 %v12056_v19, %v8874_v3  ;;  %v12067_v7 = vld [vmem:[%s12453_s12 + $0x171] sm:$0xff] }
 0x892   : > { %9019 = vst [vmem:[%s14822_s30 + $0xf0] sm:$0xff] %v8971_v25  ;;  %v8972_v11 = vmax.f32 %v8924_v43, 0.0 }
 0x893   : > { %9017 = vst [vmem:[%s14822_s30 + $0xe0] sm:$0xff] %v8969_v46  ;;  %v8970_v6 = vmax.f32 %v8922_v48, 0.0  ;;  %v11015_v10 = vpop.f32.mrb[32].mxu1 }
 0x894   : > { %9020 = vst [vmem:[%s14822_s30 + $0xf8] sm:$0xff] %v8972_v11  ;;  %v8879_v55 = vadd.f32 %v11015_v10, %v14811_v36  ;;  %v8727_v5 = vpop.f32.mrb[33].mxu1 }
 0x895   : > { %9018 = vst [vmem:[%s14822_s30 + $0xe8] sm:$0xff] %v8970_v6  ;;  %v8877_v12 = vadd.f32 %v14811_v36, %v8727_v5  ;;  %v11016_v26 = vpop.f32.mrb[34].mxu1  ;;  %v12069_v5 = vld [vmem:[%s12453_s12 + $0x189] sm:$0xff] }
 0x896   : > { %v8927_v13 = vadd.f32 %v12057_v44, %v8879_v55  ;;  %v8880_v23 = vadd.f32 %v11016_v26, %v14811_v36  ;;  %v8730_v62 = vpop.f32.mrb[35].mxu1 }
 0x897   : > { %v8925_v61 = vadd.f32 %v12058_v9, %v8877_v12  ;;  %v8878_v34 = vadd.f32 %v14811_v36, %v8730_v62 }
 0x898   : > { %v8975_v38 = vmax.f32 %v8927_v13, 0.0  ;;  %v8928_v16 = vadd.f32 %v12059_v24, %v8880_v23  ;;  %v12070_v13 = vld [vmem:[%s12453_s12 + $0x179] sm:$0xff]  ;;  %v12072_v24 = vld [vmem:[%s12453_s12 + $0x181] sm:$0xff] }
 0x899   : > { %v8973_v35 = vmax.f32 %v8925_v61, 0.0  ;;  %v8926_v60 = vadd.f32 %v12060_v20, %v8878_v34  ;;  %v12071_v61 = vld [vmem:[%s12453_s12 + $0x191] sm:$0xff]  ;;  %s12239_s12 = smov [#allocation9]  }
 0x89a   : > { %9023 = vst [vmem:[%s14822_s30 + $0x110] sm:$0xff] %v8975_v38  ;;  %v8976_v39 = vmax.f32 %v8928_v16, 0.0  ;;  %s12163_s7 = sshll.u32 %s12239_s12, 4  ;;  %s12164_s7 = int_to_ptr.vmem [resolvable:$false] %s12163_s7 }
 0x89b   : > { %9021 = vst [vmem:[%s14822_s30 + $0x100] sm:$0xff] %v8973_v35  ;;  %v8974_v51 = vmax.f32 %v8926_v60, 0.0  ;;  %v11019_v33 = vpop.f32.mrb[36].mxu1  ;;  %s12165_s17 = scalar_lea.vmem %s12164_s7, 12288  ;;  %p12166_p7 = scmp.lt.s32.totalorder %s14965_s14, %s12164_s7 }
 0x89c   : > { %9024 = vst [vmem:[%s14822_s30 + $0x118] sm:$0xff] %v8976_v39  ;;  %v8883_v22 = vadd.f32 %v11019_v33, %v14811_v36  ;;  %v8743_v15 = vpop.f32.mrb[37].mxu1  ;;  %p12167_p9 = scmp.lt.s32.totalorder %s12165_s17, %s12159_s15 }
 0x89d   : > { %9022 = vst [vmem:[%s14822_s30 + $0x108] sm:$0xff] %v8974_v51  ;;  %v8881_v37 = vadd.f32 %v14811_v36, %v8743_v15  ;;  %v11020_v21 = vpop.f32.mrb[38].mxu1 }
 0x89e   : > { %v8931_v28 = vadd.f32 %v12061_v53, %v8883_v22  ;;  %v8884_v2 = vadd.f32 %v11020_v21, %v14811_v36  ;;  %v8746_v54 = vpop.f32.mrb[39].mxu1  ;;  %p12168_p12 = por %p12167_p9, %p12166_p7 }
 0x89f   : > { %v8929_v56 = vadd.f32 %v12062_v8, %v8881_v37  ;;  %v8882_v63 = vadd.f32 %v14811_v36, %v8746_v54 }
 0x8a0   : > { %v8979_v59 = vmax.f32 %v8931_v28, 0.0  ;;  %v8932_v30 = vadd.f32 %v12063_v49, %v8884_v2  ;;  %p12169_p2 = pnand %p12168_p12, %p12162_p3 }
 0x8a1   : > { %v8977_v52 = vmax.f32 %v8929_v56, 0.0  ;;  %v8930_v1 = vadd.f32 %v12064_v0, %v8882_v63 }
 0x8a2   : > { %9027 = vst [vmem:[%s14822_s30 + $0x130] sm:$0xff] %v8979_v59  ;;  %v8980_v47 = vmax.f32 %v8932_v30, 0.0 }
 0x8a3   : > { %9025 = vst [vmem:[%s14822_s30 + $0x120] sm:$0xff] %v8977_v52  ;;  %v8978_v31 = vmax.f32 %v8930_v1, 0.0  ;;  %v11023_v41 = vpop.f32.mrb[40].mxu1 }
 0x8a4   : > { %9028 = vst [vmem:[%s14822_s30 + $0x138] sm:$0xff] %v8980_v47  ;;  %v8887_v40 = vadd.f32 %v11023_v41, %v14811_v36  ;;  %v8759_v42 = vpop.f32.mrb[41].mxu1 }
 0x8a5   : > { %9026 = vst [vmem:[%s14822_s30 + $0x128] sm:$0xff] %v8978_v31  ;;  %v8885_v57 = vadd.f32 %v14811_v36, %v8759_v42  ;;  %v11024_v17 = vpop.f32.mrb[42].mxu1 }
 0x8a6   : > { %v8935_v45 = vadd.f32 %v12065_v58, %v8887_v40  ;;  %v8888_v32 = vadd.f32 %v11024_v17, %v14811_v36  ;;  %v8762_v29 = vpop.f32.mrb[43].mxu1 }
 0x8a7   : > { %v8933_v14 = vadd.f32 %v12066_v4, %v8885_v57  ;;  %v8886_v18 = vadd.f32 %v14811_v36, %v8762_v29 }
 0x8a8   : > { %v8983_v27 = vmax.f32 %v8935_v45, 0.0  ;;  %v8936_v3 = vadd.f32 %v12067_v7, %v8888_v32 }
 0x8a9   : > { %v8981_v25 = vmax.f32 %v8933_v14, 0.0  ;;  %v8934_v43 = vadd.f32 %v12068_v50, %v8886_v18 }
 0x8aa   : > { %9031 = vst [vmem:[%s14822_s30 + $0x150] sm:$0xff] %v8983_v27  ;;  %v8984_v46 = vmax.f32 %v8936_v3, 0.0 }
 0x8ab   : > { %9029 = vst [vmem:[%s14822_s30 + $0x140] sm:$0xff] %v8981_v25  ;;  %v8982_v19 = vmax.f32 %v8934_v43, 0.0  ;;  %v11027_v48 = vpop.f32.mrb[44].mxu1 }
 0x8ac   : > { %9032 = vst [vmem:[%s14822_s30 + $0x158] sm:$0xff] %v8984_v46  ;;  %v8891_v11 = vadd.f32 %v11027_v48, %v14811_v36  ;;  %v8775_v6 = vpop.f32.mrb[45].mxu1 }
 0x8ad   : > { %9030 = vst [vmem:[%s14822_s30 + $0x148] sm:$0xff] %v8982_v19  ;;  %v8889_v10 = vadd.f32 %v14811_v36, %v8775_v6  ;;  %v11028_v55 = vpop.f32.mrb[46].mxu1 }
 0x8ae   : > { %v8939_v12 = vadd.f32 %v12069_v5, %v8891_v11  ;;  %v8892_v26 = vadd.f32 %v11028_v55, %v14811_v36  ;;  %v8778_v44 = vpop.f32.mrb[47].mxu1 }
 0x8af   : > { %v8937_v23 = vadd.f32 %v12070_v13, %v8889_v10  ;;  %v8890_v62 = vadd.f32 %v14811_v36, %v8778_v44 }
 0x8b0   : > { %v8987_v9 = vmax.f32 %v8939_v12, 0.0  ;;  %v8940_v34 = vadd.f32 %v12071_v61, %v8892_v26 }
 0x8b1   : > { %v8985_v38 = vmax.f32 %v8937_v23, 0.0  ;;  %v8938_v16 = vadd.f32 %v12072_v24, %v8890_v62 }
 0x8b2   : > { %9035 = vst [vmem:[%s14822_s30 + $0x170] sm:$0xff] %v8987_v9  ;;  %v8988_v35 = vmax.f32 %v8940_v34, 0.0 }
 0x8b3   : > { %9033 = vst [vmem:[%s14822_s30 + $0x160] sm:$0xff] %v8985_v38  ;;  %v8986_v20 = vmax.f32 %v8938_v16, 0.0 }
 0x8b4   : > { %9036 = vst [vmem:[%s14822_s30 + $0x178] sm:$0xff] %v8988_v35 }
 0x8b5   : > { %9034 = vst [vmem:[%s14822_s30 + $0x168] sm:$0xff] %v8986_v20 }
 0x8b6   : > { %12172 = shalt.err (!%p12169_p2)
}
 0x8b7   : > { %s12173_s13 = scalar_lea.hbm %s14962_s25, 6144  ;;  %s12177_s18 = scalar_lea.hbm %s15017_s6, 12288 }
 0x8b8   : > { %p12174_p13 = scmp.ne.s32.totalorder %s14962_s25, %s12173_s13  ;;  %p12178_p4 = scmp.lt.u32.totalorder %s14962_s25, %s15017_s6 }
 0x8b9   : > { %p12179_p5 = scmp.lt.u32.totalorder %s12177_s18, %s12173_s13  ;;  %p12181_p11 = scmp.lt.u32.totalorder %s12173_s13, %s14962_s25 }
 0x8ba   : > { %p12175_p6 = pnand %p12174_p13, %p15394_p0 }
 0x8bb   : > { %p12180_p8 = por %p12179_p5, %p12178_p4 }
 0x8bc   : > { %p12176_p10 = pneg %p12175_p6 }
 0x8bd   : > { %p12182_p1 = por %p12181_p11, %p12180_p8 }
 0x8bf   : > { %p12183_p3 = pnand %p12182_p1, %p12176_p10 }
 0x8c1   : > { %12186 = shalt.err (!%p12183_p3)
}
 0x8c2   : > { %s12240_s27 = smov 128   ;;  %s12241_s29 = smov 8  }
 0x8c3   : > { %11812 = dma.vmem_to_hbm [thread:$0]  (%p15394_p0), %s14965_s14, 6144, %s14962_s25, %s9038_s19, %s12240_s27, %s12240_s27, %s12241_s29  }
 0x8c4 PF: > { %s9066_s15 = sand.u32 1, %s12217_s21   ;;  %p15395_p7 = scmp.ne.s32.totalorder %s15161_s28, 0 }
 0x8c5   : > { %p15396_p9 = scmp.ge.s32.totalorder %s12229_s24, 2  ;;  %s9067_s12 = scalar_lea.sflag [#allocation5], %s9066_s15 }
 0x8c7   : > { %p11826_p12 = pnand %p15396_p9, %p15395_p7 }
 0x8c9   : > { %12212 = dma.done.wait (!%p11826_p12), %s9067_s12, 6144  }
 0x8ca   : > { %12214 = vsyncadd (!%p11826_p12), %s9067_s12, 4294961152  ;;  %p20_p2 = scmp.ge.s32.totalorder %s12387_s26, 4   ;;  %s15397_s21 = smov %s12221_s22 }
 0x8cb   : > { %s15398_s22 = smov %s12225_s23  ;;  %s15399_s23 = smov %s12403_s11 }
 0x8cc   : > { %s15400_s24 = smov %s12387_s26  ;;  %22 = sbr.rel (!%p20_p2) target bundleno = 6 (0x6), region = 113 }
 0x8d3   :  { %9072 = vsyncpa [#allocation4], 1 }
 0x8d4   :  { %9074 = vsyncpa [#allocation4 + $0x1], 1 }
 0x8d5   :  { %9075 = vsyncpa [#allocation7], 1 }
 0x8d6   :  { %9076 = vsyncpa [#allocation5], 1 }
 0x8d7   :  { %9078 = vsyncpa [#allocation5 + $0x1], 1 }

</bundles_post_ra>
